<compile_context>
chip_gen: v5e
topology: v5e:2x2
jax: 0.10.0
libtpu: 0.0.40
codegen_flags: <defaults>
</compile_context>

<pallas_src>
import jax
import jax.numpy as jnp
import numpy as np
from jax.experimental import pallas as pl
from jax.experimental.pallas import tpu as pltpu

# ------------------------- model dimensions (small, deterministic) -------------------------
BS, SEQ, HIMG, WIMG = 4, 8, 16, 16
BSP = 8                          # batch padded to a full (8,128) sublane tile
NUM_PLAYERS = 22                 # target_type == 'ball'
RNN_DIM = 64                     # == lstm_hidden_dim (undefined in source; chosen)
SET_OUT = RNN_DIM // 2           # SetTransformer out_dimension
ENC_DIM = 2 * SET_OUT            # coords_encoded = cat(team1, team2) = 64
HID = 2 * RNN_DIM                # LSTMCell hidden size = 128
G4 = 4 * HID                     # gate width = 512
OUT_DIM = 2 + 88                 # linear output dim for 'ball' = 90
IN_DIM = 2 * NUM_PLAYERS + ENC_DIM + 1 + 2   # 44 + 64 + 1 + 2 = 111 (rnn_cell input_size)
FEAT_PAD = 128                   # lane-dense packed feature width (incl. bias/indicator cols)
OUT_PAD = 128                    # lane-dense padded output width
BIAS_COL = 2 * NUM_PLAYERS + ENC_DIM         # 108: constant-1 column  -> carries b
IND_COL = BIAS_COL + 1                       # 109: (t>0) indicator    -> carries prev-bias fold
SENT = 1.0e6                     # sentinel for unused px/py lanes (never wins the min)


# ------------------------------------- Pallas kernel --------------------------------------
def _seq_kernel(feat_ref, pxs_ref, pys_ref, w_in_ref, w_hh_ref, w_d_ref, w_xy_ref,
                b_xy_ref, w_lin_ref, b_lin_ref, out_ref, g_in_ref, hxs_ref):
    # ---- prologue: whole-sequence input projection, one (64,128)x(128,512) bf16 MXU pass.
    # Bias and the (t>0) prev-bias fold ride along as constant feature columns.
    g_in_ref[...] = jnp.dot(feat_ref[...].astype(jnp.bfloat16), w_in_ref[...],
                            preferred_element_type=jnp.float32)

    w_x = w_xy_ref[0:1, :]        # (1, HID) f32 — pitch-folded W_lin column 88
    w_y = w_xy_ref[1:2, :]        # (1, HID) f32 — pitch-folded W_lin column 89
    b_x = b_xy_ref[0]             # f32 scalars from SMEM
    b_y = b_xy_ref[1]

    hx = jnp.zeros((BSP, HID), jnp.float32)
    cx = jnp.zeros((BSP, HID), jnp.float32)
    prev_x = jnp.zeros((BSP, 1), jnp.float32)   # step_out[:, -2:] is zeros at i == 0
    prev_y = jnp.zeros((BSP, 1), jnp.float32)

    for t in range(SEQ):                        # static unroll; every slice is 8-row aligned
        row = t * BSP

        # closest-distance side branch (VPU + full-lane XLU min + one EUP sqrt).  Sentinel
        # lanes stay huge, so no masked lane ops; hides under the recurrent MXU dot below.
        dx = pxs_ref[row:row + BSP, :] - prev_x                               # (8,128)
        dy = pys_ref[row:row + BSP, :] - prev_y
        closest = jnp.sqrt(jnp.min(dx * dx + dy * dy, axis=-1, keepdims=True))  # (8,1)

        # LSTMCell gates: hoisted input projection + ONE K=128 recurrent MXU dot (W_prev folded
        # into W_hh_eff offline) + a cheap VPU rank-1 term for closest.  hx==0 at t==0, so the
        # recurrent dot is statically skipped there.
        gates = g_in_ref[row:row + BSP, :] + closest * w_d_ref[...]           # (8,512)
        if t > 0:
            gates = gates + jnp.dot(hx.astype(jnp.bfloat16), w_hh_ref[...],
                                    preferred_element_type=jnp.float32)

        i_g = jax.nn.sigmoid(gates[:, 0 * HID:1 * HID])
        f_g = jax.nn.sigmoid(gates[:, 1 * HID:2 * HID])
        g_g = jnp.tanh(gates[:, 2 * HID:3 * HID])
        o_g = jax.nn.sigmoid(gates[:, 3 * HID:4 * HID])
        cx = f_g * cx + i_g * g_g
        hx = o_g * jnp.tanh(cx)
        hxs_ref[row:row + BSP, :] = hx                                        # aligned store

        # prev prediction (pitch-folded linear cols 88:90) via VPU mul + lane reduce; the full
        # output projection stays out of the recurrence (epilogue).
        prev_x = jnp.sum(hx * w_x, axis=-1, keepdims=True) + b_x
        prev_y = jnp.sum(hx * w_y, axis=-1, keepdims=True) + b_y

    # ---- epilogue: ONE (64,128)x(128,128) output projection + one aligned full-slab store.
    out_ref[...] = (jnp.dot(hxs_ref[...].astype(jnp.bfloat16), w_lin_ref[...],
                            preferred_element_type=jnp.float32) + b_lin_ref[...])


def run_seq(feat, pxs, pys, w_in, w_hh_eff, w_d, w_xy, b_xy, w_lin_pad, b_lin_pad):
    vmem = lambda: pl.BlockSpec(memory_space=pltpu.MemorySpace.VMEM)
    smem = lambda: pl.BlockSpec(memory_space=pltpu.MemorySpace.SMEM)
    return pl.pallas_call(
        _seq_kernel,
        out_shape=jax.ShapeDtypeStruct((SEQ * BSP, OUT_PAD), jnp.float32),
        in_specs=[vmem(), vmem(), vmem(),            # feat, pxs, pys
                  vmem(), vmem(), vmem(), vmem(),    # w_in, w_hh_eff, w_d, w_xy
                  smem(),                            # b_xy scalars
                  vmem(), vmem()],                   # w_lin_pad, b_lin_pad
        out_specs=vmem(),
        scratch_shapes=[pltpu.VMEM((SEQ * BSP, G4), jnp.float32),     # g_in
                        pltpu.VMEM((SEQ * BSP, HID), jnp.float32)],   # hx stack
    )(feat, pxs, pys, w_in, w_hh_eff, w_d, w_xy, b_xy, w_lin_pad, b_lin_pad)


# -------------------------------------- JAX glue -------------------------------------------
def set_encode(points, w, b):
    # points: (N, 11, 2) -> (N, SET_OUT); permutation-invariant stand-in for SetTransformer.
    h = jnp.maximum(jnp.einsum("npd,de->npe", points, w) + b, 0.0)
    return jnp.mean(h, axis=1)


def _features(x, coords, params):
    bs, seq_len = x.shape[0], x.shape[1]
    pitch = jnp.asarray(x.shape[-2:], jnp.float32)                       # (2,) = [H, W]

    c = coords.reshape(bs * seq_len, NUM_PLAYERS, 4)
    enc1 = set_encode(c[:, :NUM_PLAYERS // 2, :2], params["set_w"], params["set_b"])
    enc2 = set_encode(c[:, NUM_PLAYERS // 2:, :2], params["set_w"], params["set_b"])
    enc1 = enc1.reshape(bs, seq_len, SET_OUT).transpose(1, 0, 2)
    enc2 = enc2.reshape(bs, seq_len, SET_OUT).transpose(1, 0, 2)
    coords_enc = jnp.concatenate([enc1, enc2], axis=-1)                  # (seq, bs, ENC_DIM)

    coords_t = jnp.transpose(coords, (1, 0, 2))                          # (seq, bs, 88)
    player_x = coords_t[:, :, 0:88:4]                                    # (seq, bs, 22)
    player_y = coords_t[:, :, 1:88:4]                                    # (seq, bs, 22)

    pitch_rep = jnp.tile(pitch, OUT_DIM // 2)[None, :]                   # (1, 90) = [H,W,H,W,...]
    return player_x, player_y, coords_enc, pitch_rep


def trace_seq2seq_forward(x, coords, params):
    px, py, cenc, pitch_rep = _features(x, coords, params)
    seq_len, bs = px.shape[0], px.shape[1]

    # Packed matmul features: [px | py | enc | 1(bias) | (t>0) | 0-pad] -> (SEQ*BSP, 128),
    # batch padded to 8 rows per step so every in-kernel slice is tile-aligned.
    ones = jnp.ones((seq_len, bs, 1), jnp.float32)
    ind = jnp.broadcast_to(
        (jnp.arange(seq_len) > 0).astype(jnp.float32)[:, None, None], (seq_len, bs, 1))
    zpad = jnp.zeros((seq_len, bs, FEAT_PAD - IND_COL - 1), jnp.float32)
    feat_core = jnp.concatenate([px, py, cenc, ones, ind, zpad], axis=-1)      # (seq, bs, 128)
    feat = jnp.zeros((seq_len, BSP, FEAT_PAD), jnp.float32).at[:, :bs, :].set(feat_core)
    feat = feat.reshape(seq_len * BSP, FEAT_PAD)

    # Sentinel-padded px / py slabs for the mask-free closest-distance branch (pad rows are 0).
    lane_pad = jnp.full((seq_len, bs, FEAT_PAD - NUM_PLAYERS), SENT, jnp.float32)
    pxs = jnp.zeros((seq_len, BSP, FEAT_PAD), jnp.float32).at[:, :bs, :].set(
        jnp.concatenate([px, lane_pad], axis=-1)).reshape(seq_len * BSP, FEAT_PAD)
    pys = jnp.zeros((seq_len, BSP, FEAT_PAD), jnp.float32).at[:, :bs, :].set(
        jnp.concatenate([py, lane_pad], axis=-1)).reshape(seq_len * BSP, FEAT_PAD)

    # Offline param prep: pitch fold, W_prev fold, permuted/packed W_in (bias via constant col).
    W_lin_p = params["W_lin"] * pitch_rep                                  # (HID, 90)
    b_lin_p = params["b_lin"] * pitch_rep                                  # (1, 90)
    Wl_xy = W_lin_p[:, OUT_DIM - 2:OUT_DIM]                                # (HID, 2)
    bl_xy = b_lin_p[:, OUT_DIM - 2:OUT_DIM]                                # (1, 2)

    W_hh_eff = params["W_hh"] + Wl_xy @ params["W_prev"]                   # prev@W_prev fold
    c_fold = bl_xy @ params["W_prev"]                                      # (1, 512), t>0 only

    W_p = params["W_p"]
    W_in = jnp.concatenate(
        [W_p[0::2], W_p[1::2], params["W_c"],        # interleaved rows -> packed [px | py | enc]
         params["b"],                                # bias via constant-1 column
         c_fold,                                     # prev-bias fold via (t>0) indicator column
         jnp.zeros((FEAT_PAD - IND_COL - 1, G4), jnp.float32)], axis=0)    # (128, 512)

    W_lin_pad = jnp.concatenate(
        [W_lin_p, jnp.zeros((HID, OUT_PAD - OUT_DIM), jnp.float32)], axis=1)
    b_lin_pad = jnp.concatenate(
        [b_lin_p, jnp.zeros((1, OUT_PAD - OUT_DIM), jnp.float32)], axis=1)

    out = run_seq(feat, pxs, pys,
                  W_in.astype(jnp.bfloat16), W_hh_eff.astype(jnp.bfloat16),
                  params["w_d"], Wl_xy.T, bl_xy.reshape(2),
                  W_lin_pad.astype(jnp.bfloat16), b_lin_pad)               # (SEQ*BSP, 128)
    out = out.reshape(seq_len, BSP, OUT_PAD)[:, :bs, :OUT_DIM]             # (seq, bs, 90)
    return jnp.transpose(out, (1, 0, 2))                                   # (bs, seq, 90)


def reference_forward(x, coords, params):
    # Pure-JAX f32 reference of the original module semantics (interleaved player_trace, single
    # W_ih matmul, min-of-norms, pitch multiply on the output; no weight folding).
    px, py, cenc, pitch_rep = _features(x, coords, params)
    bs, seq_len = x.shape[0], x.shape[1]
    hp = jax.lax.Precision.HIGHEST
    pflat = jnp.stack([px, py], axis=-1).reshape(seq_len, bs, 2 * NUM_PLAYERS)
    W_ih = jnp.concatenate(
        [params["W_p"], params["W_c"], params["w_d"], params["W_prev"]], axis=0)
    hx = jnp.zeros((bs, HID), jnp.float32)
    cx = jnp.zeros((bs, HID), jnp.float32)
    prev = jnp.zeros((bs, 2), jnp.float32)
    outs = []
    for i in range(seq_len):
        dx = px[i] - prev[:, 0:1]
        dy = py[i] - prev[:, 1:2]
        closest = jnp.min(jnp.sqrt(dx * dx + dy * dy), axis=-1, keepdims=True)
        rnn_in = jnp.concatenate([pflat[i], cenc[i], closest, prev], axis=-1)
        gates = (jnp.dot(rnn_in, W_ih, precision=hp)
                 + jnp.dot(hx, params["W_hh"], precision=hp) + params["b"])
        i_g = jax.nn.sigmoid(gates[:, :HID])
        f_g = jax.nn.sigmoid(gates[:, HID:2 * HID])
        g_g = jnp.tanh(gates[:, 2 * HID:3 * HID])
        o_g = jax.nn.sigmoid(gates[:, 3 * HID:])
        cx = f_g * cx + i_g * g_g
        hx = o_g * jnp.tanh(cx)
        step_out = (jnp.dot(hx, params["W_lin"], precision=hp) + params["b_lin"]) * pitch_rep
        outs.append(step_out)
        prev = step_out[:, -2:]
    return jnp.transpose(jnp.stack(outs, axis=0), (1, 0, 2))


def init_params(key):
    ks = jax.random.split(key, 8)
    s = 0.1
    W_ih = s * jax.random.normal(ks[0], (IN_DIM, 4 * HID), jnp.float32)
    p0, p1, p2 = 2 * NUM_PLAYERS, 2 * NUM_PLAYERS + ENC_DIM, 2 * NUM_PLAYERS + ENC_DIM + 1
    return {
        "set_w": s * jax.random.normal(ks[1], (2, SET_OUT), jnp.float32),
        "set_b": s * jax.random.normal(ks[2], (SET_OUT,), jnp.float32),
        "W_p": W_ih[:p0],          # player_trace_flat block of W_ih^T (interleaved x,y rows)
        "W_c": W_ih[p0:p1],        # coords_encoded block
        "w_d": W_ih[p1:p2],        # closest_dist block (1, 4*HID)
        "W_prev": W_ih[p2:],       # previous-prediction block (2, 4*HID)
        "W_hh": s * jax.random.normal(ks[3], (HID, 4 * HID), jnp.float32),
        "b": s * jax.random.normal(ks[4], (1, 4 * HID), jnp.float32),   # b_ih + b_hh combined
        "W_lin": s * jax.random.normal(ks[5], (HID, OUT_DIM), jnp.float32),
        "b_lin": s * jax.random.normal(ks[6], (1, OUT_DIM), jnp.float32),
    }


if __name__ == "__main__":
    key = jax.random.PRNGKey(0)
    kx, kc, kp = jax.random.split(key, 3)
    x = jax.random.normal(kx, (BS, SEQ, 2, HIMG, WIMG), jnp.float32)
    coords = jax.random.uniform(kc, (BS, SEQ, NUM_PLAYERS * 4), jnp.float32) * 10.0
    params = init_params(kp)

    out = jax.block_until_ready(jax.jit(trace_seq2seq_forward)(x, coords, params))
    ref = jax.block_until_ready(jax.jit(reference_forward)(x, coords, params))

    assert out.shape == (BS, SEQ, OUT_DIM), out.shape
    out_np, ref_np = np.asarray(out), np.asarray(ref)
    # Kernel uses bf16 MXU operands (f32 accumulate) through an 8-step recurrence; compare
    # against the f32 reference with a bf16-class tolerance normalized to the output scale.
    scale = max(1.0, float(np.max(np.abs(ref_np))))
    max_err = float(np.max(np.abs(out_np - ref_np)))
    assert np.isfinite(max_err) and max_err <= 4e-2 * scale, (
        f"max |err| {max_err:.5f} exceeds bf16-class tol {4e-2 * scale:.5f}")
    print("KERNEL_OK")
</pallas_src>

<mosaic_0001>
module attributes {stable_mosaic.version = 11 : i64} {
  func.func @_seq_kernel(%arg0: memref<64x128xf32, #tpu.memory_space<vmem>>, %arg1: memref<64x128xf32, #tpu.memory_space<vmem>>, %arg2: memref<64x128xf32, #tpu.memory_space<vmem>>, %arg3: memref<128x512xbf16, #tpu.memory_space<vmem>>, %arg4: memref<128x512xbf16, #tpu.memory_space<vmem>>, %arg5: memref<1x512xf32, #tpu.memory_space<vmem>>, %arg6: memref<2x128xf32, #tpu.memory_space<vmem>>, %arg7: memref<2xf32, #tpu.memory_space<smem>>, %arg8: memref<128x128xbf16, #tpu.memory_space<vmem>>, %arg9: memref<1x128xf32, #tpu.memory_space<vmem>>, %arg10: memref<64x128xf32, #tpu.memory_space<vmem>>, %arg11: memref<64x512xf32, #tpu.memory_space<vmem>>, %arg12: memref<64x128xf32, #tpu.memory_space<vmem>>) attributes {dimension_semantics = [], scalar_prefetch = 0 : i64, scratch_operands = 2 : i64, tpu.core_type = #tpu.core_type<tc>} {
    %c0 = arith.constant 0 : index
    %c0_0 = arith.constant 0 : index
    %0 = vector.load %arg0[%c0, %c0_0] : memref<64x128xf32, #tpu.memory_space<vmem>>, vector<64x128xf32>
    %1 = arith.truncf %0 : vector<64x128xf32> to vector<64x128xbf16>
    %c0_1 = arith.constant 0 : index
    %c0_2 = arith.constant 0 : index
    %2 = vector.load %arg3[%c0_1, %c0_2] : memref<128x512xbf16, #tpu.memory_space<vmem>>, vector<128x512xbf16>
    %cst = arith.constant dense<0.000000e+00> : vector<64x512xf32>
    %3 = tpu.matmul %1, %2, %cst {dimension_numbers = #tpu.dot_dimension_numbers<[1], [0], [0], [1], [0, 0, 1, 1], [], []>} : vector<64x128xbf16>, vector<128x512xbf16>, vector<64x512xf32> -> vector<64x512xf32>
    %c0_3 = arith.constant 0 : index
    %c0_4 = arith.constant 0 : index
    %4 = vector.load %arg11[%c0_3, %c0_4] : memref<64x512xf32, #tpu.memory_space<vmem>>, vector<64x512xf32>
    tpu.vector_store %arg11[%c0_3, %c0_4], %3 {strides = array<i32>} : memref<64x512xf32, #tpu.memory_space<vmem>>, vector<64x512xf32>,
    %c0_5 = arith.constant 0 : index
    %c0_6 = arith.constant 0 : index
    %5 = vector.load %arg6[%c0_5, %c0_6] : memref<2x128xf32, #tpu.memory_space<vmem>>, vector<1x128xf32>
    %c1 = arith.constant 1 : index
    %c0_7 = arith.constant 0 : index
    %6 = vector.load %arg6[%c1, %c0_7] : memref<2x128xf32, #tpu.memory_space<vmem>>, vector<1x128xf32>
    %c0_8 = arith.constant 0 : index
    %7 = memref.load %arg7[%c0_8] : memref<2xf32, #tpu.memory_space<smem>>
    %c1_9 = arith.constant 1 : index
    %8 = memref.load %arg7[%c1_9] : memref<2xf32, #tpu.memory_space<smem>>
    %cst_10 = arith.constant 0.000000e+00 : f32
    %9 = vector.broadcast %cst_10 : f32 to vector<8x128xf32>
    %cst_11 = arith.constant 0.000000e+00 : f32
    %10 = vector.broadcast %cst_11 : f32 to vector<8x1xf32>
    %cst_12 = arith.constant 0.000000e+00 : f32
    %11 = vector.broadcast %cst_12 : f32 to vector<8x1xf32>
    %c0_13 = arith.constant 0 : index
    %c0_14 = arith.constant 0 : index
    %12 = vector.load %arg1[%c0_13, %c0_14] : memref<64x128xf32, #tpu.memory_space<vmem>>, vector<8x128xf32>
    %13 = vector.broadcast %10 : vector<8x1xf32> to vector<8x128xf32>
    %14 = arith.subf %12, %13 : vector<8x128xf32>
    %c0_15 = arith.constant 0 : index
    %c0_16 = arith.constant 0 : index
    %15 = vector.load %arg2[%c0_15, %c0_16] : memref<64x128xf32, #tpu.memory_space<vmem>>, vector<8x128xf32>
    %16 = vector.broadcast %11 : vector<8x1xf32> to vector<8x128xf32>
    %17 = arith.subf %15, %16 : vector<8x128xf32>
    %18 = arith.mulf %14, %14 : vector<8x128xf32>
    %19 = arith.mulf %17, %17 : vector<8x128xf32>
    %20 = arith.addf %18, %19 : vector<8x128xf32>
    %cst_17 = arith.constant dense<0x7F800000> : vector<8xf32>
    %21 = vector.multi_reduction <minimumf>, %20, %cst_17 [1] : vector<8x128xf32> to vector<8xf32>
    %22 = vector.shape_cast %21 : vector<8xf32> to vector<8x1xf32>
    %23 = math.sqrt %22 : vector<8x1xf32>
    %c0_18 = arith.constant 0 : index
    %c0_19 = arith.constant 0 : index
    %24 = vector.load %arg11[%c0_18, %c0_19] : memref<64x512xf32, #tpu.memory_space<vmem>>, vector<8x512xf32>
    %c0_20 = arith.constant 0 : index
    %c0_21 = arith.constant 0 : index
    %25 = vector.load %arg5[%c0_20, %c0_21] : memref<1x512xf32, #tpu.memory_space<vmem>>, vector<1x512xf32>
    %26 = vector.broadcast %23 : vector<8x1xf32> to vector<8x512xf32>
    %27 = vector.broadcast %25 : vector<1x512xf32> to vector<8x512xf32>
    %28 = arith.mulf %26, %27 : vector<8x512xf32>
    %29 = arith.addf %24, %28 : vector<8x512xf32>
    %30 = vector.extract_strided_slice %29 {offsets = [0, 0], sizes = [8, 128], strides = [1, 1]} : vector<8x512xf32> to vector<8x128xf32>
    %31 = arith.negf %30 : vector<8x128xf32>
    %32 = math.exp %31 : vector<8x128xf32>
    %cst_22 = arith.constant 1.000000e+00 : f32
    %33 = vector.broadcast %cst_22 : f32 to vector<8x128xf32>
    %34 = arith.addf %33, %32 : vector<8x128xf32>
    %35 = arith.divf %33, %34 : vector<8x128xf32>
    %36 = vector.extract_strided_slice %29 {offsets = [0, 128], sizes = [8, 128], strides = [1, 1]} : vector<8x512xf32> to vector<8x128xf32>
    %37 = arith.negf %36 : vector<8x128xf32>
    %38 = math.exp %37 : vector<8x128xf32>
    %cst_23 = arith.constant 1.000000e+00 : f32
    %39 = vector.broadcast %cst_23 : f32 to vector<8x128xf32>
    %40 = arith.addf %39, %38 : vector<8x128xf32>
    %41 = arith.divf %39, %40 : vector<8x128xf32>
    %42 = vector.extract_strided_slice %29 {offsets = [0, 256], sizes = [8, 128], strides = [1, 1]} : vector<8x512xf32> to vector<8x128xf32>
    %43 = math.tanh %42 : vector<8x128xf32>
    %44 = vector.extract_strided_slice %29 {offsets = [0, 384], sizes = [8, 128], strides = [1, 1]} : vector<8x512xf32> to vector<8x128xf32>
    %45 = arith.negf %44 : vector<8x128xf32>
    %46 = math.exp %45 : vector<8x128xf32>
    %cst_24 = arith.constant 1.000000e+00 : f32
    %47 = vector.broadcast %cst_24 : f32 to vector<8x128xf32>
    %48 = arith.addf %47, %46 : vector<8x128xf32>
    %49 = arith.divf %47, %48 : vector<8x128xf32>
    %50 = arith.mulf %41, %9 : vector<8x128xf32>
    %51 = arith.mulf %35, %43 : vector<8x128xf32>
    %52 = arith.addf %50, %51 : vector<8x128xf32>
    %53 = math.tanh %52 : vector<8x128xf32>
    %54 = arith.mulf %49, %53 : vector<8x128xf32>
    %c0_25 = arith.constant 0 : index
    %c0_26 = arith.constant 0 : index
    %55 = vector.load %arg12[%c0_25, %c0_26] : memref<64x128xf32, #tpu.memory_space<vmem>>, vector<8x128xf32>
    tpu.vector_store %arg12[%c0_25, %c0_26], %54 {strides = array<i32>} : memref<64x128xf32, #tpu.memory_space<vmem>>, vector<8x128xf32>,
    %56 = vector.broadcast %5 : vector<1x128xf32> to vector<8x128xf32>
    %57 = arith.mulf %54, %56 : vector<8x128xf32>
    %cst_27 = arith.constant dense<0.000000e+00> : vector<8xf32>
    %58 = vector.multi_reduction <add>, %57, %cst_27 [1] : vector<8x128xf32> to vector<8xf32>
    %59 = vector.shape_cast %58 : vector<8xf32> to vector<8x1xf32>
    %60 = vector.broadcast %7 : f32 to vector<8x1xf32>
    %61 = arith.addf %59, %60 : vector<8x1xf32>
    %62 = vector.broadcast %6 : vector<1x128xf32> to vector<8x128xf32>
    %63 = arith.mulf %54, %62 : vector<8x128xf32>
    %cst_28 = arith.constant dense<0.000000e+00> : vector<8xf32>
    %64 = vector.multi_reduction <add>, %63, %cst_28 [1] : vector<8x128xf32> to vector<8xf32>
    %65 = vector.shape_cast %64 : vector<8xf32> to vector<8x1xf32>
    %66 = vector.broadcast %8 : f32 to vector<8x1xf32>
    %67 = arith.addf %65, %66 : vector<8x1xf32>
    %c8 = arith.constant 8 : index
    %c0_29 = arith.constant 0 : index
    %68 = vector.load %arg1[%c8, %c0_29] : memref<64x128xf32, #tpu.memory_space<vmem>>, vector<8x128xf32>
    %69 = vector.broadcast %61 : vector<8x1xf32> to vector<8x128xf32>
    %70 = arith.subf %68, %69 : vector<8x128xf32>
    %c8_30 = arith.constant 8 : index
    %c0_31 = arith.constant 0 : index
    %71 = vector.load %arg2[%c8_30, %c0_31] : memref<64x128xf32, #tpu.memory_space<vmem>>, vector<8x128xf32>
    %72 = vector.broadcast %67 : vector<8x1xf32> to vector<8x128xf32>
    %73 = arith.subf %71, %72 : vector<8x128xf32>
    %74 = arith.mulf %70, %70 : vector<8x128xf32>
    %75 = arith.mulf %73, %73 : vector<8x128xf32>
    %76 = arith.addf %74, %75 : vector<8x128xf32>
    %cst_32 = arith.constant dense<0x7F800000> : vector<8xf32>
    %77 = vector.multi_reduction <minimumf>, %76, %cst_32 [1] : vector<8x128xf32> to vector<8xf32>
    %78 = vector.shape_cast %77 : vector<8xf32> to vector<8x1xf32>
    %79 = math.sqrt %78 : vector<8x1xf32>
    %c8_33 = arith.constant 8 : index
    %c0_34 = arith.constant 0 : index
    %80 = vector.load %arg11[%c8_33, %c0_34] : memref<64x512xf32, #tpu.memory_space<vmem>>, vector<8x512xf32>
    %c0_35 = arith.constant 0 : index
    %c0_36 = arith.constant 0 : index
    %81 = vector.load %arg5[%c0_35, %c0_36] : memref<1x512xf32, #tpu.memory_space<vmem>>, vector<1x512xf32>
    %82 = vector.broadcast %79 : vector<8x1xf32> to vector<8x512xf32>
    %83 = vector.broadcast %81 : vector<1x512xf32> to vector<8x512xf32>
    %84 = arith.mulf %82, %83 : vector<8x512xf32>
    %85 = arith.addf %80, %84 : vector<8x512xf32>
    %86 = arith.truncf %54 : vector<8x128xf32> to vector<8x128xbf16>
    %c0_37 = arith.constant 0 : index
    %c0_38 = arith.constant 0 : index
    %87 = vector.load %arg4[%c0_37, %c0_38] : memref<128x512xbf16, #tpu.memory_space<vmem>>, vector<128x512xbf16>
    %cst_39 = arith.constant dense<0.000000e+00> : vector<8x512xf32>
    %88 = tpu.matmul %86, %87, %cst_39 {dimension_numbers = #tpu.dot_dimension_numbers<[1], [0], [0], [1], [0, 0, 1, 1], [], []>} : vector<8x128xbf16>, vector<128x512xbf16>, vector<8x512xf32> -> vector<8x512xf32>
    %89 = arith.addf %85, %88 : vector<8x512xf32>
    %90 = vector.extract_strided_slice %89 {offsets = [0, 0], sizes = [8, 128], strides = [1, 1]} : vector<8x512xf32> to vector<8x128xf32>
    %91 = arith.negf %90 : vector<8x128xf32>
    %92 = math.exp %91 : vector<8x128xf32>
    %cst_40 = arith.constant 1.000000e+00 : f32
    %93 = vector.broadcast %cst_40 : f32 to vector<8x128xf32>
    %94 = arith.addf %93, %92 : vector<8x128xf32>
    %95 = arith.divf %93, %94 : vector<8x128xf32>
    %96 = vector.extract_strided_slice %89 {offsets = [0, 128], sizes = [8, 128], strides = [1, 1]} : vector<8x512xf32> to vector<8x128xf32>
    %97 = arith.negf %96 : vector<8x128xf32>
    %98 = math.exp %97 : vector<8x128xf32>
    %cst_41 = arith.constant 1.000000e+00 : f32
    %99 = vector.broadcast %cst_41 : f32 to vector<8x128xf32>
    %100 = arith.addf %99, %98 : vector<8x128xf32>
    %101 = arith.divf %99, %100 : vector<8x128xf32>
    %102 = vector.extract_strided_slice %89 {offsets = [0, 256], sizes = [8, 128], strides = [1, 1]} : vector<8x512xf32> to vector<8x128xf32>
    %103 = math.tanh %102 : vector<8x128xf32>
    %104 = vector.extract_strided_slice %89 {offsets = [0, 384], sizes = [8, 128], strides = [1, 1]} : vector<8x512xf32> to vector<8x128xf32>
    %105 = arith.negf %104 : vector<8x128xf32>
    %106 = math.exp %105 : vector<8x128xf32>
    %cst_42 = arith.constant 1.000000e+00 : f32
    %107 = vector.broadcast %cst_42 : f32 to vector<8x128xf32>
    %108 = arith.addf %107, %106 : vector<8x128xf32>
    %109 = arith.divf %107, %108 : vector<8x128xf32>
    %110 = arith.mulf %101, %52 : vector<8x128xf32>
    %111 = arith.mulf %95, %103 : vector<8x128xf32>
    %112 = arith.addf %110, %111 : vector<8x128xf32>
    %113 = math.tanh %112 : vector<8x128xf32>
    %114 = arith.mulf %109, %113 : vector<8x128xf32>
    %c8_43 = arith.constant 8 : index
    %c0_44 = arith.constant 0 : index
    %115 = vector.load %arg12[%c8_43, %c0_44] : memref<64x128xf32, #tpu.memory_space<vmem>>, vector<8x128xf32>
    tpu.vector_store %arg12[%c8_43, %c0_44], %114 {strides = array<i32>} : memref<64x128xf32, #tpu.memory_space<vmem>>, vector<8x128xf32>,
    %116 = vector.broadcast %5 : vector<1x128xf32> to vector<8x128xf32>
    %117 = arith.mulf %114, %116 : vector<8x128xf32>
    %cst_45 = arith.constant dense<0.000000e+00> : vector<8xf32>
    %118 = vector.multi_reduction <add>, %117, %cst_45 [1] : vector<8x128xf32> to vector<8xf32>
    %119 = vector.shape_cast %118 : vector<8xf32> to vector<8x1xf32>
    %120 = vector.broadcast %7 : f32 to vector<8x1xf32>
    %121 = arith.addf %119, %120 : vector<8x1xf32>
    %122 = vector.broadcast %6 : vector<1x128xf32> to vector<8x128xf32>
    %123 = arith.mulf %114, %122 : vector<8x128xf32>
    %cst_46 = arith.constant dense<0.000000e+00> : vector<8xf32>
    %124 = vector.multi_reduction <add>, %123, %cst_46 [1] : vector<8x128xf32> to vector<8xf32>
    %125 = vector.shape_cast %124 : vector<8xf32> to vector<8x1xf32>
    %126 = vector.broadcast %8 : f32 to vector<8x1xf32>
    %127 = arith.addf %125, %126 : vector<8x1xf32>
    %c16 = arith.constant 16 : index
    %c0_47 = arith.constant 0 : index
    %128 = vector.load %arg1[%c16, %c0_47] : memref<64x128xf32, #tpu.memory_space<vmem>>, vector<8x128xf32>
    %129 = vector.broadcast %121 : vector<8x1xf32> to vector<8x128xf32>
    %130 = arith.subf %128, %129 : vector<8x128xf32>
    %c16_48 = arith.constant 16 : index
    %c0_49 = arith.constant 0 : index
    %131 = vector.load %arg2[%c16_48, %c0_49] : memref<64x128xf32, #tpu.memory_space<vmem>>, vector<8x128xf32>
    %132 = vector.broadcast %127 : vector<8x1xf32> to vector<8x128xf32>
    %133 = arith.subf %131, %132 : vector<8x128xf32>
    %134 = arith.mulf %130, %130 : vector<8x128xf32>
    %135 = arith.mulf %133, %133 : vector<8x128xf32>
    %136 = arith.addf %134, %135 : vector<8x128xf32>
    %cst_50 = arith.constant dense<0x7F800000> : vector<8xf32>
    %137 = vector.multi_reduction <minimumf>, %136, %cst_50 [1] : vector<8x128xf32> to vector<8xf32>
    %138 = vector.shape_cast %137 : vector<8xf32> to vector<8x1xf32>
    %139 = math.sqrt %138 : vector<8x1xf32>
    %c16_51 = arith.constant 16 : index
    %c0_52 = arith.constant 0 : index
    %140 = vector.load %arg11[%c16_51, %c0_52] : memref<64x512xf32, #tpu.memory_space<vmem>>, vector<8x512xf32>
    %c0_53 = arith.constant 0 : index
    %c0_54 = arith.constant 0 : index
    %141 = vector.load %arg5[%c0_53, %c0_54] : memref<1x512xf32, #tpu.memory_space<vmem>>, vector<1x512xf32>
    %142 = vector.broadcast %139 : vector<8x1xf32> to vector<8x512xf32>
    %143 = vector.broadcast %141 : vector<1x512xf32> to vector<8x512xf32>
    %144 = arith.mulf %142, %143 : vector<8x512xf32>
    %145 = arith.addf %140, %144 : vector<8x512xf32>
    %146 = arith.truncf %114 : vector<8x128xf32> to vector<8x128xbf16>
    %c0_55 = arith.constant 0 : index
    %c0_56 = arith.constant 0 : index
    %147 = vector.load %arg4[%c0_55, %c0_56] : memref<128x512xbf16, #tpu.memory_space<vmem>>, vector<128x512xbf16>
    %cst_57 = arith.constant dense<0.000000e+00> : vector<8x512xf32>
    %148 = tpu.matmul %146, %147, %cst_57 {dimension_numbers = #tpu.dot_dimension_numbers<[1], [0], [0], [1], [0, 0, 1, 1], [], []>} : vector<8x128xbf16>, vector<128x512xbf16>, vector<8x512xf32> -> vector<8x512xf32>
    %149 = arith.addf %145, %148 : vector<8x512xf32>
    %150 = vector.extract_strided_slice %149 {offsets = [0, 0], sizes = [8, 128], strides = [1, 1]} : vector<8x512xf32> to vector<8x128xf32>
    %151 = arith.negf %150 : vector<8x128xf32>
    %152 = math.exp %151 : vector<8x128xf32>
    %cst_58 = arith.constant 1.000000e+00 : f32
    %153 = vector.broadcast %cst_58 : f32 to vector<8x128xf32>
    %154 = arith.addf %153, %152 : vector<8x128xf32>
    %155 = arith.divf %153, %154 : vector<8x128xf32>
    %156 = vector.extract_strided_slice %149 {offsets = [0, 128], sizes = [8, 128], strides = [1, 1]} : vector<8x512xf32> to vector<8x128xf32>
    %157 = arith.negf %156 : vector<8x128xf32>
    %158 = math.exp %157 : vector<8x128xf32>
    %cst_59 = arith.constant 1.000000e+00 : f32
    %159 = vector.broadcast %cst_59 : f32 to vector<8x128xf32>
    %160 = arith.addf %159, %158 : vector<8x128xf32>
    %161 = arith.divf %159, %160 : vector<8x128xf32>
    %162 = vector.extract_strided_slice %149 {offsets = [0, 256], sizes = [8, 128], strides = [1, 1]} : vector<8x512xf32> to vector<8x128xf32>
    %163 = math.tanh %162 : vector<8x128xf32>
    %164 = vector.extract_strided_slice %149 {offsets = [0, 384], sizes = [8, 128], strides = [1, 1]} : vector<8x512xf32> to vector<8x128xf32>
    %165 = arith.negf %164 : vector<8x128xf32>
    %166 = math.exp %165 : vector<8x128xf32>
    %cst_60 = arith.constant 1.000000e+00 : f32
    %167 = vector.broadcast %cst_60 : f32 to vector<8x128xf32>
    %168 = arith.addf %167, %166 : vector<8x128xf32>
    %169 = arith.divf %167, %168 : vector<8x128xf32>
    %170 = arith.mulf %161, %112 : vector<8x128xf32>
    %171 = arith.mulf %155, %163 : vector<8x128xf32>
    %172 = arith.addf %170, %171 : vector<8x128xf32>
    %173 = math.tanh %172 : vector<8x128xf32>
    %174 = arith.mulf %169, %173 : vector<8x128xf32>
    %c16_61 = arith.constant 16 : index
    %c0_62 = arith.constant 0 : index
    %175 = vector.load %arg12[%c16_61, %c0_62] : memref<64x128xf32, #tpu.memory_space<vmem>>, vector<8x128xf32>
    tpu.vector_store %arg12[%c16_61, %c0_62], %174 {strides = array<i32>} : memref<64x128xf32, #tpu.memory_space<vmem>>, vector<8x128xf32>,
    %176 = vector.broadcast %5 : vector<1x128xf32> to vector<8x128xf32>
    %177 = arith.mulf %174, %176 : vector<8x128xf32>
    %cst_63 = arith.constant dense<0.000000e+00> : vector<8xf32>
    %178 = vector.multi_reduction <add>, %177, %cst_63 [1] : vector<8x128xf32> to vector<8xf32>
    %179 = vector.shape_cast %178 : vector<8xf32> to vector<8x1xf32>
    %180 = vector.broadcast %7 : f32 to vector<8x1xf32>
    %181 = arith.addf %179, %180 : vector<8x1xf32>
    %182 = vector.broadcast %6 : vector<1x128xf32> to vector<8x128xf32>
    %183 = arith.mulf %174, %182 : vector<8x128xf32>
    %cst_64 = arith.constant dense<0.000000e+00> : vector<8xf32>
    %184 = vector.multi_reduction <add>, %183, %cst_64 [1] : vector<8x128xf32> to vector<8xf32>
    %185 = vector.shape_cast %184 : vector<8xf32> to vector<8x1xf32>
    %186 = vector.broadcast %8 : f32 to vector<8x1xf32>
    %187 = arith.addf %185, %186 : vector<8x1xf32>
    %c24 = arith.constant 24 : index
    %c0_65 = arith.constant 0 : index
    %188 = vector.load %arg1[%c24, %c0_65] : memref<64x128xf32, #tpu.memory_space<vmem>>, vector<8x128xf32>
    %189 = vector.broadcast %181 : vector<8x1xf32> to vector<8x128xf32>
    %190 = arith.subf %188, %189 : vector<8x128xf32>
    %c24_66 = arith.constant 24 : index
    %c0_67 = arith.constant 0 : index
    %191 = vector.load %arg2[%c24_66, %c0_67] : memref<64x128xf32, #tpu.memory_space<vmem>>, vector<8x128xf32>
    %192 = vector.broadcast %187 : vector<8x1xf32> to vector<8x128xf32>
    %193 = arith.subf %191, %192 : vector<8x128xf32>
    %194 = arith.mulf %190, %190 : vector<8x128xf32>
    %195 = arith.mulf %193, %193 : vector<8x128xf32>
    %196 = arith.addf %194, %195 : vector<8x128xf32>
    %cst_68 = arith.constant dense<0x7F800000> : vector<8xf32>
    %197 = vector.multi_reduction <minimumf>, %196, %cst_68 [1] : vector<8x128xf32> to vector<8xf32>
    %198 = vector.shape_cast %197 : vector<8xf32> to vector<8x1xf32>
    %199 = math.sqrt %198 : vector<8x1xf32>
    %c24_69 = arith.constant 24 : index
    %c0_70 = arith.constant 0 : index
    %200 = vector.load %arg11[%c24_69, %c0_70] : memref<64x512xf32, #tpu.memory_space<vmem>>, vector<8x512xf32>
    %c0_71 = arith.constant 0 : index
    %c0_72 = arith.constant 0 : index
    %201 = vector.load %arg5[%c0_71, %c0_72] : memref<1x512xf32, #tpu.memory_space<vmem>>, vector<1x512xf32>
    %202 = vector.broadcast %199 : vector<8x1xf32> to vector<8x512xf32>
    %203 = vector.broadcast %201 : vector<1x512xf32> to vector<8x512xf32>
    %204 = arith.mulf %202, %203 : vector<8x512xf32>
    %205 = arith.addf %200, %204 : vector<8x512xf32>
    %206 = arith.truncf %174 : vector<8x128xf32> to vector<8x128xbf16>
    %c0_73 = arith.constant 0 : index
    %c0_74 = arith.constant 0 : index
    %207 = vector.load %arg4[%c0_73, %c0_74] : memref<128x512xbf16, #tpu.memory_space<vmem>>, vector<128x512xbf16>
    %cst_75 = arith.constant dense<0.000000e+00> : vector<8x512xf32>
    %208 = tpu.matmul %206, %207, %cst_75 {dimension_numbers = #tpu.dot_dimension_numbers<[1], [0], [0], [1], [0, 0, 1, 1], [], []>} : vector<8x128xbf16>, vector<128x512xbf16>, vector<8x512xf32> -> vector<8x512xf32>
    %209 = arith.addf %205, %208 : vector<8x512xf32>
    %210 = vector.extract_strided_slice %209 {offsets = [0, 0], sizes = [8, 128], strides = [1, 1]} : vector<8x512xf32> to vector<8x128xf32>
    %211 = arith.negf %210 : vector<8x128xf32>
    %212 = math.exp %211 : vector<8x128xf32>
    %cst_76 = arith.constant 1.000000e+00 : f32
    %213 = vector.broadcast %cst_76 : f32 to vector<8x128xf32>
    %214 = arith.addf %213, %212 : vector<8x128xf32>
    %215 = arith.divf %213, %214 : vector<8x128xf32>
    %216 = vector.extract_strided_slice %209 {offsets = [0, 128], sizes = [8, 128], strides = [1, 1]} : vector<8x512xf32> to vector<8x128xf32>
    %217 = arith.negf %216 : vector<8x128xf32>
    %218 = math.exp %217 : vector<8x128xf32>
    %cst_77 = arith.constant 1.000000e+00 : f32
    %219 = vector.broadcast %cst_77 : f32 to vector<8x128xf32>
    %220 = arith.addf %219, %218 : vector<8x128xf32>
    %221 = arith.divf %219, %220 : vector<8x128xf32>
    %222 = vector.extract_strided_slice %209 {offsets = [0, 256], sizes = [8, 128], strides = [1, 1]} : vector<8x512xf32> to vector<8x128xf32>
    %223 = math.tanh %222 : vector<8x128xf32>
    %224 = vector.extract_strided_slice %209 {offsets = [0, 384], sizes = [8, 128], strides = [1, 1]} : vector<8x512xf32> to vector<8x128xf32>
    %225 = arith.negf %224 : vector<8x128xf32>
    %226 = math.exp %225 : vector<8x128xf32>
    %cst_78 = arith.constant 1.000000e+00 : f32
    %227 = vector.broadcast %cst_78 : f32 to vector<8x128xf32>
    %228 = arith.addf %227, %226 : vector<8x128xf32>
    %229 = arith.divf %227, %228 : vector<8x128xf32>
    %230 = arith.mulf %221, %172 : vector<8x128xf32>
    %231 = arith.mulf %215, %223 : vector<8x128xf32>
    %232 = arith.addf %230, %231 : vector<8x128xf32>
    %233 = math.tanh %232 : vector<8x128xf32>
    %234 = arith.mulf %229, %233 : vector<8x128xf32>
    %c24_79 = arith.constant 24 : index
    %c0_80 = arith.constant 0 : index
    %235 = vector.load %arg12[%c24_79, %c0_80] : memref<64x128xf32, #tpu.memory_space<vmem>>, vector<8x128xf32>
    tpu.vector_store %arg12[%c24_79, %c0_80], %234 {strides = array<i32>} : memref<64x128xf32, #tpu.memory_space<vmem>>, vector<8x128xf32>,
    %236 = vector.broadcast %5 : vector<1x128xf32> to vector<8x128xf32>
    %237 = arith.mulf %234, %236 : vector<8x128xf32>
    %cst_81 = arith.constant dense<0.000000e+00> : vector<8xf32>
    %238 = vector.multi_reduction <add>, %237, %cst_81 [1] : vector<8x128xf32> to vector<8xf32>
    %239 = vector.shape_cast %238 : vector<8xf32> to vector<8x1xf32>
    %240 = vector.broadcast %7 : f32 to vector<8x1xf32>
    %241 = arith.addf %239, %240 : vector<8x1xf32>
    %242 = vector.broadcast %6 : vector<1x128xf32> to vector<8x128xf32>
    %243 = arith.mulf %234, %242 : vector<8x128xf32>
    %cst_82 = arith.constant dense<0.000000e+00> : vector<8xf32>
    %244 = vector.multi_reduction <add>, %243, %cst_82 [1] : vector<8x128xf32> to vector<8xf32>
    %245 = vector.shape_cast %244 : vector<8xf32> to vector<8x1xf32>
    %246 = vector.broadcast %8 : f32 to vector<8x1xf32>
    %247 = arith.addf %245, %246 : vector<8x1xf32>
    %c32 = arith.constant 32 : index
    %c0_83 = arith.constant 0 : index
    %248 = vector.load %arg1[%c32, %c0_83] : memref<64x128xf32, #tpu.memory_space<vmem>>, vector<8x128xf32>
    %249 = vector.broadcast %241 : vector<8x1xf32> to vector<8x128xf32>
    %250 = arith.subf %248, %249 : vector<8x128xf32>
    %c32_84 = arith.constant 32 : index
    %c0_85 = arith.constant 0 : index
    %251 = vector.load %arg2[%c32_84, %c0_85] : memref<64x128xf32, #tpu.memory_space<vmem>>, vector<8x128xf32>
    %252 = vector.broadcast %247 : vector<8x1xf32> to vector<8x128xf32>
    %253 = arith.subf %251, %252 : vector<8x128xf32>
    %254 = arith.mulf %250, %250 : vector<8x128xf32>
    %255 = arith.mulf %253, %253 : vector<8x128xf32>
    %256 = arith.addf %254, %255 : vector<8x128xf32>
    %cst_86 = arith.constant dense<0x7F800000> : vector<8xf32>
    %257 = vector.multi_reduction <minimumf>, %256, %cst_86 [1] : vector<8x128xf32> to vector<8xf32>
    %258 = vector.shape_cast %257 : vector<8xf32> to vector<8x1xf32>
    %259 = math.sqrt %258 : vector<8x1xf32>
    %c32_87 = arith.constant 32 : index
    %c0_88 = arith.constant 0 : index
    %260 = vector.load %arg11[%c32_87, %c0_88] : memref<64x512xf32, #tpu.memory_space<vmem>>, vector<8x512xf32>
    %c0_89 = arith.constant 0 : index
    %c0_90 = arith.constant 0 : index
    %261 = vector.load %arg5[%c0_89, %c0_90] : memref<1x512xf32, #tpu.memory_space<vmem>>, vector<1x512xf32>
    %262 = vector.broadcast %259 : vector<8x1xf32> to vector<8x512xf32>
    %263 = vector.broadcast %261 : vector<1x512xf32> to vector<8x512xf32>
    %264 = arith.mulf %262, %263 : vector<8x512xf32>
    %265 = arith.addf %260, %264 : vector<8x512xf32>
    %266 = arith.truncf %234 : vector<8x128xf32> to vector<8x128xbf16>
    %c0_91 = arith.constant 0 : index
    %c0_92 = arith.constant 0 : index
    %267 = vector.load %arg4[%c0_91, %c0_92] : memref<128x512xbf16, #tpu.memory_space<vmem>>, vector<128x512xbf16>
    %cst_93 = arith.constant dense<0.000000e+00> : vector<8x512xf32>
    %268 = tpu.matmul %266, %267, %cst_93 {dimension_numbers = #tpu.dot_dimension_numbers<[1], [0], [0], [1], [0, 0, 1, 1], [], []>} : vector<8x128xbf16>, vector<128x512xbf16>, vector<8x512xf32> -> vector<8x512xf32>
    %269 = arith.addf %265, %268 : vector<8x512xf32>
    %270 = vector.extract_strided_slice %269 {offsets = [0, 0], sizes = [8, 128], strides = [1, 1]} : vector<8x512xf32> to vector<8x128xf32>
    %271 = arith.negf %270 : vector<8x128xf32>
    %272 = math.exp %271 : vector<8x128xf32>
    %cst_94 = arith.constant 1.000000e+00 : f32
    %273 = vector.broadcast %cst_94 : f32 to vector<8x128xf32>
    %274 = arith.addf %273, %272 : vector<8x128xf32>
    %275 = arith.divf %273, %274 : vector<8x128xf32>
    %276 = vector.extract_strided_slice %269 {offsets = [0, 128], sizes = [8, 128], strides = [1, 1]} : vector<8x512xf32> to vector<8x128xf32>
    %277 = arith.negf %276 : vector<8x128xf32>
    %278 = math.exp %277 : vector<8x128xf32>
    %cst_95 = arith.constant 1.000000e+00 : f32
    %279 = vector.broadcast %cst_95 : f32 to vector<8x128xf32>
    %280 = arith.addf %279, %278 : vector<8x128xf32>
    %281 = arith.divf %279, %280 : vector<8x128xf32>
    %282 = vector.extract_strided_slice %269 {offsets = [0, 256], sizes = [8, 128], strides = [1, 1]} : vector<8x512xf32> to vector<8x128xf32>
    %283 = math.tanh %282 : vector<8x128xf32>
    %284 = vector.extract_strided_slice %269 {offsets = [0, 384], sizes = [8, 128], strides = [1, 1]} : vector<8x512xf32> to vector<8x128xf32>
    %285 = arith.negf %284 : vector<8x128xf32>
    %286 = math.exp %285 : vector<8x128xf32>
    %cst_96 = arith.constant 1.000000e+00 : f32
    %287 = vector.broadcast %cst_96 : f32 to vector<8x128xf32>
    %288 = arith.addf %287, %286 : vector<8x128xf32>
    %289 = arith.divf %287, %288 : vector<8x128xf32>
    %290 = arith.mulf %281, %232 : vector<8x128xf32>
    %291 = arith.mulf %275, %283 : vector<8x128xf32>
    %292 = arith.addf %290, %291 : vector<8x128xf32>
    %293 = math.tanh %292 : vector<8x128xf32>
    %294 = arith.mulf %289, %293 : vector<8x128xf32>
    %c32_97 = arith.constant 32 : index
    %c0_98 = arith.constant 0 : index
    %295 = vector.load %arg12[%c32_97, %c0_98] : memref<64x128xf32, #tpu.memory_space<vmem>>, vector<8x128xf32>
    tpu.vector_store %arg12[%c32_97, %c0_98], %294 {strides = array<i32>} : memref<64x128xf32, #tpu.memory_space<vmem>>, vector<8x128xf32>,
    %296 = vector.broadcast %5 : vector<1x128xf32> to vector<8x128xf32>
    %297 = arith.mulf %294, %296 : vector<8x128xf32>
    %cst_99 = arith.constant dense<0.000000e+00> : vector<8xf32>
    %298 = vector.multi_reduction <add>, %297, %cst_99 [1] : vector<8x128xf32> to vector<8xf32>
    %299 = vector.shape_cast %298 : vector<8xf32> to vector<8x1xf32>
    %300 = vector.broadcast %7 : f32 to vector<8x1xf32>
    %301 = arith.addf %299, %300 : vector<8x1xf32>
    %302 = vector.broadcast %6 : vector<1x128xf32> to vector<8x128xf32>
    %303 = arith.mulf %294, %302 : vector<8x128xf32>
    %cst_100 = arith.constant dense<0.000000e+00> : vector<8xf32>
    %304 = vector.multi_reduction <add>, %303, %cst_100 [1] : vector<8x128xf32> to vector<8xf32>
    %305 = vector.shape_cast %304 : vector<8xf32> to vector<8x1xf32>
    %306 = vector.broadcast %8 : f32 to vector<8x1xf32>
    %307 = arith.addf %305, %306 : vector<8x1xf32>
    %c40 = arith.constant 40 : index
    %c0_101 = arith.constant 0 : index
    %308 = vector.load %arg1[%c40, %c0_101] : memref<64x128xf32, #tpu.memory_space<vmem>>, vector<8x128xf32>
    %309 = vector.broadcast %301 : vector<8x1xf32> to vector<8x128xf32>
    %310 = arith.subf %308, %309 : vector<8x128xf32>
    %c40_102 = arith.constant 40 : index
    %c0_103 = arith.constant 0 : index
    %311 = vector.load %arg2[%c40_102, %c0_103] : memref<64x128xf32, #tpu.memory_space<vmem>>, vector<8x128xf32>
    %312 = vector.broadcast %307 : vector<8x1xf32> to vector<8x128xf32>
    %313 = arith.subf %311, %312 : vector<8x128xf32>
    %314 = arith.mulf %310, %310 : vector<8x128xf32>
    %315 = arith.mulf %313, %313 : vector<8x128xf32>
    %316 = arith.addf %314, %315 : vector<8x128xf32>
    %cst_104 = arith.constant dense<0x7F800000> : vector<8xf32>
    %317 = vector.multi_reduction <minimumf>, %316, %cst_104 [1] : vector<8x128xf32> to vector<8xf32>
    %318 = vector.shape_cast %317 : vector<8xf32> to vector<8x1xf32>
    %319 = math.sqrt %318 : vector<8x1xf32>
    %c40_105 = arith.constant 40 : index
    %c0_106 = arith.constant 0 : index
    %320 = vector.load %arg11[%c40_105, %c0_106] : memref<64x512xf32, #tpu.memory_space<vmem>>, vector<8x512xf32>
    %c0_107 = arith.constant 0 : index
    %c0_108 = arith.constant 0 : index
    %321 = vector.load %arg5[%c0_107, %c0_108] : memref<1x512xf32, #tpu.memory_space<vmem>>, vector<1x512xf32>
    %322 = vector.broadcast %319 : vector<8x1xf32> to vector<8x512xf32>
    %323 = vector.broadcast %321 : vector<1x512xf32> to vector<8x512xf32>
    %324 = arith.mulf %322, %323 : vector<8x512xf32>
    %325 = arith.addf %320, %324 : vector<8x512xf32>
    %326 = arith.truncf %294 : vector<8x128xf32> to vector<8x128xbf16>
    %c0_109 = arith.constant 0 : index
    %c0_110 = arith.constant 0 : index
    %327 = vector.load %arg4[%c0_109, %c0_110] : memref<128x512xbf16, #tpu.memory_space<vmem>>, vector<128x512xbf16>
    %cst_111 = arith.constant dense<0.000000e+00> : vector<8x512xf32>
    %328 = tpu.matmul %326, %327, %cst_111 {dimension_numbers = #tpu.dot_dimension_numbers<[1], [0], [0], [1], [0, 0, 1, 1], [], []>} : vector<8x128xbf16>, vector<128x512xbf16>, vector<8x512xf32> -> vector<8x512xf32>
    %329 = arith.addf %325, %328 : vector<8x512xf32>
    %330 = vector.extract_strided_slice %329 {offsets = [0, 0], sizes = [8, 128], strides = [1, 1]} : vector<8x512xf32> to vector<8x128xf32>
    %331 = arith.negf %330 : vector<8x128xf32>
    %332 = math.exp %331 : vector<8x128xf32>
    %cst_112 = arith.constant 1.000000e+00 : f32
    %333 = vector.broadcast %cst_112 : f32 to vector<8x128xf32>
    %334 = arith.addf %333, %332 : vector<8x128xf32>
    %335 = arith.divf %333, %334 : vector<8x128xf32>
    %336 = vector.extract_strided_slice %329 {offsets = [0, 128], sizes = [8, 128], strides = [1, 1]} : vector<8x512xf32> to vector<8x128xf32>
    %337 = arith.negf %336 : vector<8x128xf32>
    %338 = math.exp %337 : vector<8x128xf32>
    %cst_113 = arith.constant 1.000000e+00 : f32
    %339 = vector.broadcast %cst_113 : f32 to vector<8x128xf32>
    %340 = arith.addf %339, %338 : vector<8x128xf32>
    %341 = arith.divf %339, %340 : vector<8x128xf32>
    %342 = vector.extract_strided_slice %329 {offsets = [0, 256], sizes = [8, 128], strides = [1, 1]} : vector<8x512xf32> to vector<8x128xf32>
    %343 = math.tanh %342 : vector<8x128xf32>
    %344 = vector.extract_strided_slice %329 {offsets = [0, 384], sizes = [8, 128], strides = [1, 1]} : vector<8x512xf32> to vector<8x128xf32>
    %345 = arith.negf %344 : vector<8x128xf32>
    %346 = math.exp %345 : vector<8x128xf32>
    %cst_114 = arith.constant 1.000000e+00 : f32
    %347 = vector.broadcast %cst_114 : f32 to vector<8x128xf32>
    %348 = arith.addf %347, %346 : vector<8x128xf32>
    %349 = arith.divf %347, %348 : vector<8x128xf32>
    %350 = arith.mulf %341, %292 : vector<8x128xf32>
    %351 = arith.mulf %335, %343 : vector<8x128xf32>
    %352 = arith.addf %350, %351 : vector<8x128xf32>
    %353 = math.tanh %352 : vector<8x128xf32>
    %354 = arith.mulf %349, %353 : vector<8x128xf32>
    %c40_115 = arith.constant 40 : index
    %c0_116 = arith.constant 0 : index
    %355 = vector.load %arg12[%c40_115, %c0_116] : memref<64x128xf32, #tpu.memory_space<vmem>>, vector<8x128xf32>
    tpu.vector_store %arg12[%c40_115, %c0_116], %354 {strides = array<i32>} : memref<64x128xf32, #tpu.memory_space<vmem>>, vector<8x128xf32>,
    %356 = vector.broadcast %5 : vector<1x128xf32> to vector<8x128xf32>
    %357 = arith.mulf %354, %356 : vector<8x128xf32>
    %cst_117 = arith.constant dense<0.000000e+00> : vector<8xf32>
    %358 = vector.multi_reduction <add>, %357, %cst_117 [1] : vector<8x128xf32> to vector<8xf32>
    %359 = vector.shape_cast %358 : vector<8xf32> to vector<8x1xf32>
    %360 = vector.broadcast %7 : f32 to vector<8x1xf32>
    %361 = arith.addf %359, %360 : vector<8x1xf32>
    %362 = vector.broadcast %6 : vector<1x128xf32> to vector<8x128xf32>
    %363 = arith.mulf %354, %362 : vector<8x128xf32>
    %cst_118 = arith.constant dense<0.000000e+00> : vector<8xf32>
    %364 = vector.multi_reduction <add>, %363, %cst_118 [1] : vector<8x128xf32> to vector<8xf32>
    %365 = vector.shape_cast %364 : vector<8xf32> to vector<8x1xf32>
    %366 = vector.broadcast %8 : f32 to vector<8x1xf32>
    %367 = arith.addf %365, %366 : vector<8x1xf32>
    %c48 = arith.constant 48 : index
    %c0_119 = arith.constant 0 : index
    %368 = vector.load %arg1[%c48, %c0_119] : memref<64x128xf32, #tpu.memory_space<vmem>>, vector<8x128xf32>
    %369 = vector.broadcast %361 : vector<8x1xf32> to vector<8x128xf32>
    %370 = arith.subf %368, %369 : vector<8x128xf32>
    %c48_120 = arith.constant 48 : index
    %c0_121 = arith.constant 0 : index
    %371 = vector.load %arg2[%c48_120, %c0_121] : memref<64x128xf32, #tpu.memory_space<vmem>>, vector<8x128xf32>
    %372 = vector.broadcast %367 : vector<8x1xf32> to vector<8x128xf32>
    %373 = arith.subf %371, %372 : vector<8x128xf32>
    %374 = arith.mulf %370, %370 : vector<8x128xf32>
    %375 = arith.mulf %373, %373 : vector<8x128xf32>
    %376 = arith.addf %374, %375 : vector<8x128xf32>
    %cst_122 = arith.constant dense<0x7F800000> : vector<8xf32>
    %377 = vector.multi_reduction <minimumf>, %376, %cst_122 [1] : vector<8x128xf32> to vector<8xf32>
    %378 = vector.shape_cast %377 : vector<8xf32> to vector<8x1xf32>
    %379 = math.sqrt %378 : vector<8x1xf32>
    %c48_123 = arith.constant 48 : index
    %c0_124 = arith.constant 0 : index
    %380 = vector.load %arg11[%c48_123, %c0_124] : memref<64x512xf32, #tpu.memory_space<vmem>>, vector<8x512xf32>
    %c0_125 = arith.constant 0 : index
    %c0_126 = arith.constant 0 : index
    %381 = vector.load %arg5[%c0_125, %c0_126] : memref<1x512xf32, #tpu.memory_space<vmem>>, vector<1x512xf32>
    %382 = vector.broadcast %379 : vector<8x1xf32> to vector<8x512xf32>
    %383 = vector.broadcast %381 : vector<1x512xf32> to vector<8x512xf32>
    %384 = arith.mulf %382, %383 : vector<8x512xf32>
    %385 = arith.addf %380, %384 : vector<8x512xf32>
    %386 = arith.truncf %354 : vector<8x128xf32> to vector<8x128xbf16>
    %c0_127 = arith.constant 0 : index
    %c0_128 = arith.constant 0 : index
    %387 = vector.load %arg4[%c0_127, %c0_128] : memref<128x512xbf16, #tpu.memory_space<vmem>>, vector<128x512xbf16>
    %cst_129 = arith.constant dense<0.000000e+00> : vector<8x512xf32>
    %388 = tpu.matmul %386, %387, %cst_129 {dimension_numbers = #tpu.dot_dimension_numbers<[1], [0], [0], [1], [0, 0, 1, 1], [], []>} : vector<8x128xbf16>, vector<128x512xbf16>, vector<8x512xf32> -> vector<8x512xf32>
    %389 = arith.addf %385, %388 : vector<8x512xf32>
    %390 = vector.extract_strided_slice %389 {offsets = [0, 0], sizes = [8, 128], strides = [1, 1]} : vector<8x512xf32> to vector<8x128xf32>
    %391 = arith.negf %390 : vector<8x128xf32>
    %392 = math.exp %391 : vector<8x128xf32>
    %cst_130 = arith.constant 1.000000e+00 : f32
    %393 = vector.broadcast %cst_130 : f32 to vector<8x128xf32>
    %394 = arith.addf %393, %392 : vector<8x128xf32>
    %395 = arith.divf %393, %394 : vector<8x128xf32>
    %396 = vector.extract_strided_slice %389 {offsets = [0, 128], sizes = [8, 128], strides = [1, 1]} : vector<8x512xf32> to vector<8x128xf32>
    %397 = arith.negf %396 : vector<8x128xf32>
    %398 = math.exp %397 : vector<8x128xf32>
    %cst_131 = arith.constant 1.000000e+00 : f32
    %399 = vector.broadcast %cst_131 : f32 to vector<8x128xf32>
    %400 = arith.addf %399, %398 : vector<8x128xf32>
    %401 = arith.divf %399, %400 : vector<8x128xf32>
    %402 = vector.extract_strided_slice %389 {offsets = [0, 256], sizes = [8, 128], strides = [1, 1]} : vector<8x512xf32> to vector<8x128xf32>
    %403 = math.tanh %402 : vector<8x128xf32>
    %404 = vector.extract_strided_slice %389 {offsets = [0, 384], sizes = [8, 128], strides = [1, 1]} : vector<8x512xf32> to vector<8x128xf32>
    %405 = arith.negf %404 : vector<8x128xf32>
    %406 = math.exp %405 : vector<8x128xf32>
    %cst_132 = arith.constant 1.000000e+00 : f32
    %407 = vector.broadcast %cst_132 : f32 to vector<8x128xf32>
    %408 = arith.addf %407, %406 : vector<8x128xf32>
    %409 = arith.divf %407, %408 : vector<8x128xf32>
    %410 = arith.mulf %401, %352 : vector<8x128xf32>
    %411 = arith.mulf %395, %403 : vector<8x128xf32>
    %412 = arith.addf %410, %411 : vector<8x128xf32>
    %413 = math.tanh %412 : vector<8x128xf32>
    %414 = arith.mulf %409, %413 : vector<8x128xf32>
    %c48_133 = arith.constant 48 : index
    %c0_134 = arith.constant 0 : index
    %415 = vector.load %arg12[%c48_133, %c0_134] : memref<64x128xf32, #tpu.memory_space<vmem>>, vector<8x128xf32>
    tpu.vector_store %arg12[%c48_133, %c0_134], %414 {strides = array<i32>} : memref<64x128xf32, #tpu.memory_space<vmem>>, vector<8x128xf32>,
    %416 = vector.broadcast %5 : vector<1x128xf32> to vector<8x128xf32>
    %417 = arith.mulf %414, %416 : vector<8x128xf32>
    %cst_135 = arith.constant dense<0.000000e+00> : vector<8xf32>
    %418 = vector.multi_reduction <add>, %417, %cst_135 [1] : vector<8x128xf32> to vector<8xf32>
    %419 = vector.shape_cast %418 : vector<8xf32> to vector<8x1xf32>
    %420 = vector.broadcast %7 : f32 to vector<8x1xf32>
    %421 = arith.addf %419, %420 : vector<8x1xf32>
    %422 = vector.broadcast %6 : vector<1x128xf32> to vector<8x128xf32>
    %423 = arith.mulf %414, %422 : vector<8x128xf32>
    %cst_136 = arith.constant dense<0.000000e+00> : vector<8xf32>
    %424 = vector.multi_reduction <add>, %423, %cst_136 [1] : vector<8x128xf32> to vector<8xf32>
    %425 = vector.shape_cast %424 : vector<8xf32> to vector<8x1xf32>
    %426 = vector.broadcast %8 : f32 to vector<8x1xf32>
    %427 = arith.addf %425, %426 : vector<8x1xf32>
    %c56 = arith.constant 56 : index
    %c0_137 = arith.constant 0 : index
    %428 = vector.load %arg1[%c56, %c0_137] : memref<64x128xf32, #tpu.memory_space<vmem>>, vector<8x128xf32>
    %429 = vector.broadcast %421 : vector<8x1xf32> to vector<8x128xf32>
    %430 = arith.subf %428, %429 : vector<8x128xf32>
    %c56_138 = arith.constant 56 : index
    %c0_139 = arith.constant 0 : index
    %431 = vector.load %arg2[%c56_138, %c0_139] : memref<64x128xf32, #tpu.memory_space<vmem>>, vector<8x128xf32>
    %432 = vector.broadcast %427 : vector<8x1xf32> to vector<8x128xf32>
    %433 = arith.subf %431, %432 : vector<8x128xf32>
    %434 = arith.mulf %430, %430 : vector<8x128xf32>
    %435 = arith.mulf %433, %433 : vector<8x128xf32>
    %436 = arith.addf %434, %435 : vector<8x128xf32>
    %cst_140 = arith.constant dense<0x7F800000> : vector<8xf32>
    %437 = vector.multi_reduction <minimumf>, %436, %cst_140 [1] : vector<8x128xf32> to vector<8xf32>
    %438 = vector.shape_cast %437 : vector<8xf32> to vector<8x1xf32>
    %439 = math.sqrt %438 : vector<8x1xf32>
    %c56_141 = arith.constant 56 : index
    %c0_142 = arith.constant 0 : index
    %440 = vector.load %arg11[%c56_141, %c0_142] : memref<64x512xf32, #tpu.memory_space<vmem>>, vector<8x512xf32>
    %c0_143 = arith.constant 0 : index
    %c0_144 = arith.constant 0 : index
    %441 = vector.load %arg5[%c0_143, %c0_144] : memref<1x512xf32, #tpu.memory_space<vmem>>, vector<1x512xf32>
    %442 = vector.broadcast %439 : vector<8x1xf32> to vector<8x512xf32>
    %443 = vector.broadcast %441 : vector<1x512xf32> to vector<8x512xf32>
    %444 = arith.mulf %442, %443 : vector<8x512xf32>
    %445 = arith.addf %440, %444 : vector<8x512xf32>
    %446 = arith.truncf %414 : vector<8x128xf32> to vector<8x128xbf16>
    %c0_145 = arith.constant 0 : index
    %c0_146 = arith.constant 0 : index
    %447 = vector.load %arg4[%c0_145, %c0_146] : memref<128x512xbf16, #tpu.memory_space<vmem>>, vector<128x512xbf16>
    %cst_147 = arith.constant dense<0.000000e+00> : vector<8x512xf32>
    %448 = tpu.matmul %446, %447, %cst_147 {dimension_numbers = #tpu.dot_dimension_numbers<[1], [0], [0], [1], [0, 0, 1, 1], [], []>} : vector<8x128xbf16>, vector<128x512xbf16>, vector<8x512xf32> -> vector<8x512xf32>
    %449 = arith.addf %445, %448 : vector<8x512xf32>
    %450 = vector.extract_strided_slice %449 {offsets = [0, 0], sizes = [8, 128], strides = [1, 1]} : vector<8x512xf32> to vector<8x128xf32>
    %451 = arith.negf %450 : vector<8x128xf32>
    %452 = math.exp %451 : vector<8x128xf32>
    %cst_148 = arith.constant 1.000000e+00 : f32
    %453 = vector.broadcast %cst_148 : f32 to vector<8x128xf32>
    %454 = arith.addf %453, %452 : vector<8x128xf32>
    %455 = arith.divf %453, %454 : vector<8x128xf32>
    %456 = vector.extract_strided_slice %449 {offsets = [0, 128], sizes = [8, 128], strides = [1, 1]} : vector<8x512xf32> to vector<8x128xf32>
    %457 = arith.negf %456 : vector<8x128xf32>
    %458 = math.exp %457 : vector<8x128xf32>
    %cst_149 = arith.constant 1.000000e+00 : f32
    %459 = vector.broadcast %cst_149 : f32 to vector<8x128xf32>
    %460 = arith.addf %459, %458 : vector<8x128xf32>
    %461 = arith.divf %459, %460 : vector<8x128xf32>
    %462 = vector.extract_strided_slice %449 {offsets = [0, 256], sizes = [8, 128], strides = [1, 1]} : vector<8x512xf32> to vector<8x128xf32>
    %463 = math.tanh %462 : vector<8x128xf32>
    %464 = vector.extract_strided_slice %449 {offsets = [0, 384], sizes = [8, 128], strides = [1, 1]} : vector<8x512xf32> to vector<8x128xf32>
    %465 = arith.negf %464 : vector<8x128xf32>
    %466 = math.exp %465 : vector<8x128xf32>
    %cst_150 = arith.constant 1.000000e+00 : f32
    %467 = vector.broadcast %cst_150 : f32 to vector<8x128xf32>
    %468 = arith.addf %467, %466 : vector<8x128xf32>
    %469 = arith.divf %467, %468 : vector<8x128xf32>
    %470 = arith.mulf %461, %412 : vector<8x128xf32>
    %471 = arith.mulf %455, %463 : vector<8x128xf32>
    %472 = arith.addf %470, %471 : vector<8x128xf32>
    %473 = math.tanh %472 : vector<8x128xf32>
    %474 = arith.mulf %469, %473 : vector<8x128xf32>
    %c56_151 = arith.constant 56 : index
    %c0_152 = arith.constant 0 : index
    %475 = vector.load %arg12[%c56_151, %c0_152] : memref<64x128xf32, #tpu.memory_space<vmem>>, vector<8x128xf32>
    tpu.vector_store %arg12[%c56_151, %c0_152], %474 {strides = array<i32>} : memref<64x128xf32, #tpu.memory_space<vmem>>, vector<8x128xf32>,
    %c0_153 = arith.constant 0 : index
    %c0_154 = arith.constant 0 : index
    %476 = vector.load %arg12[%c0_153, %c0_154] : memref<64x128xf32, #tpu.memory_space<vmem>>, vector<64x128xf32>
    %477 = arith.truncf %476 : vector<64x128xf32> to vector<64x128xbf16>
    %c0_155 = arith.constant 0 : index
    %c0_156 = arith.constant 0 : index
    %478 = vector.load %arg8[%c0_155, %c0_156] : memref<128x128xbf16, #tpu.memory_space<vmem>>, vector<128x128xbf16>
    %cst_157 = arith.constant dense<0.000000e+00> : vector<64x128xf32>
    %479 = tpu.matmul %477, %478, %cst_157 {dimension_numbers = #tpu.dot_dimension_numbers<[1], [0], [0], [1], [0, 0, 1, 1], [], []>} : vector<64x128xbf16>, vector<128x128xbf16>, vector<64x128xf32> -> vector<64x128xf32>
    %c0_158 = arith.constant 0 : index
    %c0_159 = arith.constant 0 : index
    %480 = vector.load %arg9[%c0_158, %c0_159] : memref<1x128xf32, #tpu.memory_space<vmem>>, vector<1x128xf32>
    %481 = vector.broadcast %480 : vector<1x128xf32> to vector<64x128xf32>
    %482 = arith.addf %479, %481 : vector<64x128xf32>
    %c0_160 = arith.constant 0 : index
    %c0_161 = arith.constant 0 : index
    %483 = vector.load %arg10[%c0_160, %c0_161] : memref<64x128xf32, #tpu.memory_space<vmem>>, vector<64x128xf32>
    tpu.vector_store %arg10[%c0_160, %c0_161], %482 {strides = array<i32>} : memref<64x128xf32, #tpu.memory_space<vmem>>, vector<64x128xf32>,
    return
  }
}

</mosaic_0001>

<bundles_post_ra>
// kernel: trace_seq2seq_forward.1
= control target key start
LH: loop header
LB: loop body
LE: loop exit
PB: predicated region body
PF: predicated region fallthrough
CT: control target
= control target key end

     0   :  { %15 = vsyncpa [#allocation5], 0  ;;  %s4702_s16 = smov [#allocation4]   ;;  %s6960_s0 = inlined_call_operand.vmem [shape: f32[64,128], index: 0, kind: input, shape index: {}]   ;;  %s6961_s1 = inlined_call_operand.vmem [shape: f32[64,128], index: 1, kind: input, shape index: {}]   ;;  %s6962_s2 = inlined_call_operand.vmem [shape: f32[64,128], index: 2, kind: input, shape index: {}]   ;;  %s6963_s3 = inlined_call_operand.vmem [shape: bf16[128,512], index: 3, kind: input, shape index: {}]   ;;  %s6964_s4 = inlined_call_operand.vmem [shape: bf16[128,512], index: 4, kind: input, shape index: {}]   ;;  %s6965_s5 = inlined_call_operand.vmem [shape: f32[1,512], index: 5, kind: input, shape index: {}]   ;;  %s6966_s6 = inlined_call_operand.vmem [shape: f32[2,128], index: 6, kind: input, shape index: {}]   ;;  %s6967_s7 = inlined_call_operand.vmem [shape: f32[2], index: 7, kind: input, shape index: {}]   ;;  %s6968_s8 = inlined_call_operand.vmem [shape: bf16[128,128], index: 8, kind: input, shape index: {}]   ;;  %s6969_s9 = inlined_call_operand.vmem [shape: f32[1,128], index: 9, kind: input, shape index: {}]   ;;  %s6970_s10 = inlined_call_operand.vmem [shape: f32[64,128], index: 10, kind: output, shape index: {}]  }
   0x1   :  { %s35_s15 = sshll.u32 %s6967_s7, 4  ;;  %s36_s15 = int_to_ptr.vmem [resolvable:$true] %s35_s15 }
   0x2   :  { %38 = dma.vmem_to_smem %s36_s15, 16, %s4702_s16, [#allocation5]  }
   0x3   :  { %4700 = dma.done.wait [#allocation5], 16  }
   0x4   :  { %4701 = vsyncadd [#allocation5], 4294967280 }
   0x5   :  { %47 = sfence }
   0x6   :  { %v3297_v0 = vld [vmem:[%s6963_s3 + $0xe0] sm:$0xf]  ;;  %v4294_v1 = vld [vmem:[%s6963_s3 + $0xec] sm:$0xf0]  ;;  %v4293_v2 = vld [vmem:[%s6963_s3 + $0xec] sm:$0xf] }
   0x7   :  { %v3298_v3 = vor.u32 %v4294_v1, %v3297_v0  ;;  %v3307_v4 = vld [vmem:[%s6963_s3 + $0xf8] sm:$0xf0]  ;;  %v3281_v5 = vld [vmem:[%s6963_s3 + $0xc0] sm:$0xf]  ;;  %v4290_v6 = vld [vmem:[%s6963_s3 + $0xcc] sm:$0xf0] }
   0x8   :  { %v3310_v7 = vor.u32 %v4293_v2, %v3307_v4  ;;  %v4289_v8 = vld [vmem:[%s6963_s3 + $0xcc] sm:$0xf]  ;;  %v3291_v9 = vld [vmem:[%s6963_s3 + $0xd8] sm:$0xf0]  ;;  %v3282_v10 = vor.u32 %v4290_v6, %v3281_v5  ;;  %v3265_v12 = vld [vmem:[%s6963_s3 + $0xa0] sm:$0xf] }
   0x9   :  { %252 = vmatpush.bf16.msra.mxu1 %v3298_v3  ;;  %4528 = vmatpush.bf16.msra.mxu2 %v3298_v3  ;;  %v3294_v11 = vor.u32 %v4289_v8, %v3291_v9  ;;  %v4286_v13 = vld [vmem:[%s6963_s3 + $0xac] sm:$0xf0]  ;;  %v4285_v14 = vld [vmem:[%s6963_s3 + $0xac] sm:$0xf]  ;;  %v3275_v15 = vld [vmem:[%s6963_s3 + $0xb8] sm:$0xf0] }
   0xa   :  { %339 = vmatpush.bf16.msra.mxu3 %v3310_v7  ;;  %v404_v16 = vld [vmem:[%s6961_s1] sm:$0xff]  ;;  %v3266_v17 = vor.u32 %v4286_v13, %v3265_v12  ;;  %v3278_v20 = vor.u32 %v4285_v14, %v3275_v15  ;;  %v4282_v22 = vld [vmem:[%s6963_s3 + $0x8c] sm:$0xf0]  ;;  %v4281_v24 = vld [vmem:[%s6963_s3 + $0x8c] sm:$0xf]  ;;  %s3311_s13 = sld [smem:[#allocation4 + $0x1]] }
   0xb   :  { %v405_v18 = vld [vmem:[%s6962_s2] sm:$0xff]  ;;  %v406_v19 = vmul.f32 %v404_v16, %v404_v16  ;;  %v3259_v25 = vld [vmem:[%s6963_s3 + $0x98] sm:$0xf0]  ;;  %v4278_v30 = vld [vmem:[%s6963_s3 + $0x6c] sm:$0xf0]  ;;  %s402_s14 = sld [smem:[#allocation4]] }
   0xc   :  { %v3249_v21 = vld [vmem:[%s6963_s3 + $0x80] sm:$0xf]  ;;  %v407_v23 = vmul.f32 %v405_v18, %v405_v18  ;;  %v3262_v28 = vor.u32 %v4281_v24, %v3259_v25  ;;  %v4277_v31 = vld [vmem:[%s6963_s3 + $0x6c] sm:$0xf]  ;;  %v3243_v32 = vld [vmem:[%s6963_s3 + $0x78] sm:$0xf0] }
   0xd   :  { %253 = vmatpush.bf16.msra.mxu1 %v3282_v10  ;;  %4529 = vmatpush.bf16.msra.mxu2 %v3282_v10  ;;  %v3250_v27 = vor.u32 %v4282_v22, %v3249_v21  ;;  %v3233_v29 = vld [vmem:[%s6963_s3 + $0x60] sm:$0xf]  ;;  %v3246_v34 = vor.u32 %v4277_v31, %v3243_v32  ;;  %v4274_v36 = vld [vmem:[%s6963_s3 + $0x4c] sm:$0xf0]  ;;  %v4273_v37 = vld [vmem:[%s6963_s3 + $0x4c] sm:$0xf] }
   0xe   :  { %340 = vmatpush.bf16.msra.mxu3 %v3294_v11  ;;  %v408_v26 = vadd.f32 %v407_v23, %v406_v19  ;;  %v3234_v33 = vor.u32 %v4278_v30, %v3233_v29  ;;  %v3217_v35 = vld [vmem:[%s6963_s3 + $0x40] sm:$0xf]  ;;  %v3227_v38 = vld [vmem:[%s6963_s3 + $0x58] sm:$0xf0]  ;;  %v4270_v42 = vld [vmem:[%s6963_s3 + $0x2c] sm:$0xf0] }
   0xf   :  { %v3218_v39 = vor.u32 %v4274_v36, %v3217_v35  ;;  %v3230_v40 = vor.u32 %v4273_v37, %v3227_v38  ;;  %v3201_v41 = vld [vmem:[%s6963_s3 + $0x20] sm:$0xf]  ;;  %v4269_v43 = vld [vmem:[%s6963_s3 + $0x2c] sm:$0xf]  ;;  %v3211_v44 = vld [vmem:[%s6963_s3 + $0x38] sm:$0xf0] }
  0x10   :  { %409 = vmin.xlane.f32.xlu0 %v408_v26  ;;  %v3202_v45 = vor.u32 %v4270_v42, %v3201_v41  ;;  %v3214_v46 = vor.u32 %v4269_v43, %v3211_v44  ;;  %v3185_v47 = vld [vmem:[%s6963_s3] sm:$0xf]  ;;  %v4266_v48 = vld [vmem:[%s6963_s3 + $0xc] sm:$0xf0]  ;;  %v4265_v49 = vld [vmem:[%s6963_s3 + $0xc] sm:$0xf] }
  0x11   :  { %254 = vmatpush.bf16.msra.mxu1 %v3266_v17  ;;  %4530 = vmatpush.bf16.msra.mxu2 %v3266_v17  ;;  %v3195_v50 = vld [vmem:[%s6963_s3 + $0x18] sm:$0xf0]  ;;  %v4292_v51 = vld [vmem:[%s6963_s3 + $0xe4] sm:$0xf]  ;;  %v3299_v52 = vld [vmem:[%s6963_s3 + $0xf0] sm:$0xf0]  ;;  %v3186_v56 = vor.u32 %v4266_v48, %v3185_v47 }
  0x12   :  { %341 = vmatpush.bf16.msra.mxu3 %v3278_v20  ;;  %v48_v53 = vld [vmem:[%s6960_s0] sm:$0xff]  ;;  %v3305_v54 = vld [vmem:[%s6963_s3 + $0xe8] sm:$0xf]  ;;  %v4295_v55 = vld [vmem:[%s6963_s3 + $0xf4] sm:$0xf0]  ;;  %v3198_v60 = vor.u32 %v4265_v49, %v3195_v50  ;;  %v3302_v61 = vor.u32 %v4292_v51, %v3299_v52 }
  0x13   :  { %v49_v57 = vld [vmem:[%s6960_s0 + $0x8] sm:$0xff]  ;;  %v52_v58 = vld [vmem:[%s6960_s0 + $0x20] sm:$0xff]  ;;  %v3306_v62 = vor.u32 %v4295_v55, %v3305_v54  ;;  %v3283_v0 = vld [vmem:[%s6963_s3 + $0xd0] sm:$0xf0] }
  0x14   :  { %v53_v59 = vld [vmem:[%s6960_s0 + $0x28] sm:$0xff]  ;;  %v4288_v63 = vld [vmem:[%s6963_s3 + $0xc4] sm:$0xf]  ;;  %v4893_v1 = vpack.c.bf16 %v49_v57, %v48_v53  ;;  %v4291_v4 = vld [vmem:[%s6963_s3 + $0xd4] sm:$0xf0] }
  0x15   :  { %255 = vmatpush.bf16.msra.mxu1 %v3250_v27  ;;  %4531 = vmatpush.bf16.msra.mxu2 %v3250_v27  ;;  %v4895_v2 = vpack.c.bf16 %v53_v59, %v52_v58  ;;  %v3289_v3 = vld [vmem:[%s6963_s3 + $0xc8] sm:$0xf]  ;;  %v3286_v5 = vor.u32 %v4288_v63, %v3283_v0  ;;  %v4284_v7 = vld [vmem:[%s6963_s3 + $0xa4] sm:$0xf]  ;;  %v3267_v8 = vld [vmem:[%s6963_s3 + $0xb0] sm:$0xf0] }
  0x16   :  { %342 = vmatpush.bf16.msra.mxu3 %v3262_v28  ;;  %v3290_v6 = vor.u32 %v4291_v4, %v3289_v3  ;;  %v3273_v9 = vld [vmem:[%s6963_s3 + $0xa8] sm:$0xf]  ;;  %v4287_v10 = vld [vmem:[%s6963_s3 + $0xb4] sm:$0xf0]  ;;  %v3270_v11 = vor.u32 %v4284_v7, %v3267_v8  ;;  %v4280_v13 = vld [vmem:[%s6963_s3 + $0x84] sm:$0xf] }
  0x17   :  { %v3274_v12 = vor.u32 %v4287_v10, %v3273_v9  ;;  %v3251_v14 = vld [vmem:[%s6963_s3 + $0x90] sm:$0xf0]  ;;  %v3257_v15 = vld [vmem:[%s6963_s3 + $0x88] sm:$0xf]  ;;  %v4283_v16 = vld [vmem:[%s6963_s3 + $0x94] sm:$0xf0] }
  0x18   :  { %v3254_v17 = vor.u32 %v4280_v13, %v3251_v14  ;;  %v3258_v18 = vor.u32 %v4283_v16, %v3257_v15  ;;  %v4276_v19 = vld [vmem:[%s6963_s3 + $0x64] sm:$0xf]  ;;  %v3235_v20 = vld [vmem:[%s6963_s3 + $0x70] sm:$0xf0]  ;;  %v3241_v22 = vld [vmem:[%s6963_s3 + $0x68] sm:$0xf] }
  0x19   :  { %256 = vmatpush.bf16.msra.mxu1 %v3234_v33  ;;  %4532 = vmatpush.bf16.msra.mxu2 %v3234_v33  ;;  %v50_v21 = vld [vmem:[%s6960_s0 + $0x10] sm:$0xff]  ;;  %v4279_v23 = vld [vmem:[%s6963_s3 + $0x74] sm:$0xf0]  ;;  %v3238_v27 = vor.u32 %v4276_v19, %v3235_v20  ;;  %v4272_v29 = vld [vmem:[%s6963_s3 + $0x44] sm:$0xf] }
  0x1a   :  { %343 = vmatpush.bf16.msra.mxu3 %v3246_v34  ;;  %v51_v24 = vld [vmem:[%s6960_s0 + $0x18] sm:$0xff]  ;;  %v54_v25 = vld [vmem:[%s6960_s0 + $0x30] sm:$0xff]  ;;  %v3242_v28 = vor.u32 %v4279_v23, %v3241_v22  ;;  %v3225_v33 = vld [vmem:[%s6963_s3 + $0x48] sm:$0xf] }
  0x1b   :  { %v55_v26 = vld [vmem:[%s6960_s0 + $0x38] sm:$0xff]  ;;  %v3219_v30 = vld [vmem:[%s6963_s3 + $0x50] sm:$0xf0]  ;;  %v57_v31 = vpack.c.bf16 %v51_v24, %v50_v21  ;;  %v4268_v37 = vld [vmem:[%s6963_s3 + $0x24] sm:$0xf] }
  0x1c   :  { %v59_v32 = vpack.c.bf16 %v55_v26, %v54_v25  ;;  %v4275_v34 = vld [vmem:[%s6963_s3 + $0x54] sm:$0xf0]  ;;  %v3222_v35 = vor.u32 %v4272_v29, %v3219_v30  ;;  %v3203_v38 = vld [vmem:[%s6963_s3 + $0x30] sm:$0xf0]  ;;  %v4264_v43 = vld [vmem:[%s6963_s3 + $0x4] sm:$0xf] }
  0x1d   :  { %257 = vmatpush.bf16.msra.mxu1 %v3218_v39  ;;  %4533 = vmatpush.bf16.msra.mxu2 %v3218_v39  ;;  %v3226_v36 = vor.u32 %v4275_v34, %v3225_v33  ;;  %v3209_v39 = vld [vmem:[%s6963_s3 + $0x28] sm:$0xf]  ;;  %v3206_v41 = vor.u32 %v4268_v37, %v3203_v38  ;;  %v3187_v44 = vld [vmem:[%s6963_s3 + $0x10] sm:$0xf0]  ;;  %v4998_v59 = vld [vmem:[%s6965_s5] sm:$0xf] }
  0x1e   :  { %344 = vmatpush.bf16.msra.mxu3 %v3230_v40  ;;  %v4271_v40 = vld [vmem:[%s6963_s3 + $0x34] sm:$0xf0]  ;;  %v3190_v47 = vor.u32 %v4264_v43, %v3187_v44  ;;  %v3429_v3 = vld [vmem:[%s6964_s4 + $0xe0] sm:$0xf]  ;;  %v4326_v4 = vld [vmem:[%s6964_s4 + $0xec] sm:$0xf0] }
  0x1f   :  { %v3210_v42 = vor.u32 %v4271_v40, %v3209_v39  ;;  %v3430_v7 = vor.u32 %v4326_v4, %v3429_v3  ;;  %v3437_v9 = vld [vmem:[%s6964_s4 + $0xe8] sm:$0xf]  ;;  %v4327_v10 = vld [vmem:[%s6964_s4 + $0xf4] sm:$0xf0]  ;;  %v432_v13 = vperm.slane %v4998_v59, 3 }
  0x20   :  { %v3438_v15 = vor.u32 %v4327_v10, %v3437_v9  ;;  %v3439_v16 = vld [vmem:[%s6964_s4 + $0xf8] sm:$0xf0]  ;;  %v3413_v19 = vld [vmem:[%s6964_s4 + $0xc0] sm:$0xf]  ;;  %v4322_v20 = vld [vmem:[%s6964_s4 + $0xcc] sm:$0xf0] }
  0x21   :  { %258 = vmatpush.bf16.msra.mxu1 %v3202_v45  ;;  %4534 = vmatpush.bf16.msra.mxu2 %v3202_v45  ;;  %v3193_v45 = vld [vmem:[%s6963_s3 + $0x8] sm:$0xf]  ;;  %v4320_v21 = vld [vmem:[%s6964_s4 + $0xc4] sm:$0xf]  ;;  %v3414_v22 = vor.u32 %v4322_v20, %v3413_v19  ;;  %v3415_v23 = vld [vmem:[%s6964_s4 + $0xd0] sm:$0xf0] }
  0x22   :  { %345 = vmatpush.bf16.msra.mxu3 %v3214_v46  ;;  %v4267_v46 = vld [vmem:[%s6963_s3 + $0x14] sm:$0xf0]  ;;  %757 = vmatpush.bf16.msra.mxu0 %v3430_v7  ;;  %v3421_v24 = vld [vmem:[%s6964_s4 + $0xc8] sm:$0xf]  ;;  %v3418_v26 = vor.u32 %v4320_v21, %v3415_v23  ;;  %v3423_v29 = vld [vmem:[%s6964_s4 + $0xd8] sm:$0xf0] }
  0x23   :  { %v3194_v48 = vor.u32 %v4267_v46, %v3193_v45  ;;  %v4323_v25 = vld [vmem:[%s6964_s4 + $0xd4] sm:$0xf0]  ;;  %v3397_v33 = vld [vmem:[%s6964_s4 + $0xa0] sm:$0xf]  ;;  %v4318_v34 = vld [vmem:[%s6964_s4 + $0xac] sm:$0xf0] }
  0x24   :  { %v3399_v37 = vld [vmem:[%s6964_s4 + $0xb0] sm:$0xf0]  ;;  %v3405_v39 = vld [vmem:[%s6964_s4 + $0xa8] sm:$0xf]  ;;  %v4319_v40 = vld [vmem:[%s6964_s4 + $0xb4] sm:$0xf0] }
  0x25   :  { %259 = vmatpush.bf16.msra.mxu1 %v3186_v56  ;;  %4535 = vmatpush.bf16.msra.mxu2 %v3186_v56  ;;  %v3406_v43 = vor.u32 %v4319_v40, %v3405_v39  ;;  %v4317_v44 = vld [vmem:[%s6964_s4 + $0xac] sm:$0xf]  ;;  %v3407_v45 = vld [vmem:[%s6964_s4 + $0xb8] sm:$0xf0]  ;;  %v3365_v3 = vld [vmem:[%s6964_s4 + $0x60] sm:$0xf] }
  0x26   :  { %346 = vmatpush.bf16.msra.mxu3 %v3198_v60  ;;  %758 = vmatpush.bf16.msra.mxu0 %v3414_v22  ;;  %v3410_v46 = vor.u32 %v4317_v44, %v3407_v45  ;;  %v4310_v4 = vld [vmem:[%s6964_s4 + $0x6c] sm:$0xf0]  ;;  %v4308_v7 = vld [vmem:[%s6964_s4 + $0x64] sm:$0xf]  ;;  %v3349_v21 = vld [vmem:[%s6964_s4 + $0x40] sm:$0xf] }
  0x27   :  { %v4306_v22 = vld [vmem:[%s6964_s4 + $0x4c] sm:$0xf0]  ;;  %v4304_v23 = vld [vmem:[%s6964_s4 + $0x44] sm:$0xf]  ;;  %v3335_v39 = vld [vmem:[%s6964_s4 + $0x30] sm:$0xf0] }
  0x28   :  { %260 = vmatmul.bf16.vlgmr.msra.gmra.mxu1 %v4893_v1  ;;  %270 = vmatmul.bf16.vlgmr.msra.gmra.mxu2 %v4895_v2  ;;  %v3341_v40 = vld [vmem:[%s6964_s4 + $0x28] sm:$0xf] }
  0x29   :  { %281 = vmatpush.bf16.msrb.mxu1 %v3302_v61  ;;  %310 = vmatpush.bf16.msrb.mxu2 %v3306_v62  ;;  %v429_v61 = vperm.slane %v4998_v59, 0 }
  0x2a   :  { %347 = vmatmul.bf16.vlgmr.msra.gmra.mxu3 %v4893_v1 }
  0x2d   :  { %282 = vmatpush.bf16.msrb.mxu1 %v3286_v5  ;;  %311 = vmatpush.bf16.msrb.mxu2 %v3290_v6  ;;  %v4324_v5 = vld [vmem:[%s6964_s4 + $0xe4] sm:$0xf]  ;;  %v3431_v6 = vld [vmem:[%s6964_s4 + $0xf0] sm:$0xf0] }
  0x2e   :  { %v3434_v8 = vor.u32 %v4324_v5, %v3431_v6  ;;  %v3366_v6 = vor.u32 %v4310_v4, %v3365_v3 }
  0x31   :  { %283 = vmatpush.bf16.msrb.mxu1 %v3270_v11  ;;  %312 = vmatpush.bf16.msrb.mxu2 %v3274_v12  ;;  %v4325_v11 = vld [vmem:[%s6964_s4 + $0xec] sm:$0xf] }
  0x35   :  { %284 = vmatpush.bf16.msrb.mxu1 %v3254_v17  ;;  %313 = vmatpush.bf16.msrb.mxu2 %v3258_v18  ;;  %v3442_v18 = vor.u32 %v4325_v11, %v3439_v16  ;;  %v3373_v11 = vld [vmem:[%s6964_s4 + $0x68] sm:$0xf] }
  0x37   :  { %796 = vmatpush.bf16.msrb.mxu3 %v3442_v18  ;;  %v3375_v18 = vld [vmem:[%s6964_s4 + $0x78] sm:$0xf0] }
  0x38   :  { %265 = vmatmul.bf16.gmra.mxu1 %v57_v31  ;;  %275 = vmatmul.bf16.gmra.mxu2 %v59_v32 }
  0x39   :  { %285 = vmatpush.bf16.msrb.mxu1 %v3238_v27  ;;  %314 = vmatpush.bf16.msrb.mxu2 %v3242_v28  ;;  %v3422_v27 = vor.u32 %v4323_v25, %v3421_v24  ;;  %v4321_v28 = vld [vmem:[%s6964_s4 + $0xcc] sm:$0xf]  ;;  %v3350_v24 = vor.u32 %v4306_v22, %v3349_v21  ;;  %v3351_v25 = vld [vmem:[%s6964_s4 + $0x50] sm:$0xf0] }
  0x3a   :  { %352 = vmatmul.bf16.gmra.mxu3 %v57_v31 }
  0x3d   :  { %286 = vmatpush.bf16.msrb.mxu1 %v3222_v35  ;;  %315 = vmatpush.bf16.msrb.mxu2 %v3226_v36  ;;  %v3398_v35 = vor.u32 %v4318_v34, %v3397_v33  ;;  %v4316_v36 = vld [vmem:[%s6964_s4 + $0xa4] sm:$0xf]  ;;  %v3333_v34 = vld [vmem:[%s6964_s4 + $0x20] sm:$0xf] }
  0x3e   :  { %v3402_v38 = vor.u32 %v4316_v36, %v3399_v37  ;;  %v4300_v36 = vld [vmem:[%s6964_s4 + $0x24] sm:$0xf] }
  0x3f   :  { %759 = vmatpush.bf16.msra.mxu0 %v3398_v35  ;;  %v4302_v35 = vld [vmem:[%s6964_s4 + $0x2c] sm:$0xf0]  ;;  %v3338_v44 = vor.u32 %v4300_v36, %v3335_v39 }
  0x41   :  { %287 = vmatpush.bf16.msrb.mxu1 %v3206_v41  ;;  %316 = vmatpush.bf16.msrb.mxu2 %v3210_v42 }
  0x45   :  { %288 = vmatpush.bf16.msrb.mxu1 %v3190_v47  ;;  %317 = vmatpush.bf16.msrb.mxu2 %v3194_v48  ;;  %v3381_v47 = vld [vmem:[%s6964_s4 + $0x80] sm:$0xf]  ;;  %v4314_v48 = vld [vmem:[%s6964_s4 + $0x8c] sm:$0xf0] }
  0x48   :  { %289 = vmatmul.bf16.vlgmr.msrb.gmra.mxu1 %v4893_v1  ;;  %318 = vmatmul.bf16.vlgmr.msrb.gmra.mxu2 %v4893_v1 }
  0x49   :  { %770 = vmatpush.bf16.msra.mxu1 %v3434_v8  ;;  %783 = vmatpush.bf16.msra.mxu2 %v3438_v15  ;;  %v3367_v8 = vld [vmem:[%s6964_s4 + $0x70] sm:$0xf0] }
  0x4a   :  { %357 = vmatmul.bf16.gmra.mxu3 %v4895_v2  ;;  %v3370_v10 = vor.u32 %v4308_v7, %v3367_v8  ;;  %v431_v8 = vperm.slane %v4998_v59, 2 }
  0x4d   :  { %771 = vmatpush.bf16.msra.mxu1 %v3418_v26  ;;  %784 = vmatpush.bf16.msra.mxu2 %v3422_v27  ;;  %v3357_v26 = vld [vmem:[%s6964_s4 + $0x48] sm:$0xf]  ;;  %v4307_v27 = vld [vmem:[%s6964_s4 + $0x54] sm:$0xf0] }
  0x51   :  { %772 = vmatpush.bf16.msra.mxu1 %v3402_v38  ;;  %785 = vmatpush.bf16.msra.mxu2 %v3406_v43  ;;  %v3334_v38 = vor.u32 %v4302_v35, %v3333_v34 }
  0x58   :  { %294 = vmatmul.bf16.gmra.mxu1 %v57_v31  ;;  %323 = vmatmul.bf16.gmra.mxu2 %v57_v31  ;;  %v3426_v31 = vor.u32 %v4321_v28, %v3423_v29  ;;  %v3354_v29 = vor.u32 %v4304_v23, %v3351_v25 }
  0x5a   :  { %362 = vmatmul.bf16.gmra.mxu3 %v59_v32 }
  0x5b   :  { %797 = vmatpush.bf16.msrb.mxu3 %v3426_v31  ;;  %v4305_v31 = vld [vmem:[%s6964_s4 + $0x4c] sm:$0xf] }
  0x5f   :  { %798 = vmatpush.bf16.msrb.mxu3 %v3410_v46  ;;  %v4301_v46 = vld [vmem:[%s6964_s4 + $0x2c] sm:$0xf] }
  0x68   :  { %299 = vmatmul.bf16.gmra.mxu1 %v4895_v2  ;;  %328 = vmatmul.bf16.gmra.mxu2 %v4895_v2 }
  0x78   :  { %304 = vmatmul.bf16.gmra.mxu1 %v59_v32  ;;  %333 = vmatmul.bf16.gmra.mxu2 %v59_v32 }
  0x83   :  { %v410_v49 = vpop.xlane.xlu0 %409 }
  0x84   :  { %4540 = vrsqrt.f32 %v410_v49  ;;  %vm418_vm0 = vcmp.eq.f32.partialorder %v410_v49, inf  ;;  %v421_v58 = vand.u32 2147483648, %v410_v49  ;;  %vm420_vm1 = vcmp.eq.f32.partialorder %v410_v49, 0.0 }
  0x8a   :  { %v4541_v50 = vpop.eup %4540 }
  0x8b   :  { %v412_v51 = vmul.f32 %v4541_v50, %v410_v49 }
  0x8d   :  { %v413_v52 = vmul.f32 %v4541_v50, %v412_v51  ;;  %v3383_v51 = vld [vmem:[%s6964_s4 + $0x90] sm:$0xf0] }
  0x8f   :  { %v414_v53 = vmul.f32 0.5, %v413_v52  ;;  %v3389_v52 = vld [vmem:[%s6964_s4 + $0x88] sm:$0xf] }
  0x91   :  { %v415_v54 = vsub.f32 1.5, %v414_v53  ;;  %v4315_v53 = vld [vmem:[%s6964_s4 + $0x94] sm:$0xf0] }
  0x93   :  { %v416_v55 = vmul.f32 %v4541_v50, %v415_v54  ;;  %v3382_v50 = vor.u32 %v4314_v48, %v3381_v47  ;;  %v3343_v47 = vld [vmem:[%s6964_s4 + $0x38] sm:$0xf0]  ;;  %v3317_v48 = vld [vmem:[%s6964_s4] sm:$0xf] }
  0x95   :  { %v417_v56 = vmul.f32 %v416_v55, %v410_v49  ;;  %760 = vmatpush.bf16.msra.mxu0 %v3382_v50  ;;  %v4298_v50 = vld [vmem:[%s6964_s4 + $0xc] sm:$0xf0] }
  0x97   :  { %v419_v60 = vsel %vm418_vm0, %v410_v49, %v417_v56  ;;  %v4312_v49 = vld [vmem:[%s6964_s4 + $0x84] sm:$0xf]  ;;  %v430_v56 = vperm.slane %v4998_v59, 1 }
  0x98   :  { %v5001_v62 = vsel %vm420_vm1, %v421_v58, %v419_v60  ;;  %v3390_v58 = vor.u32 %v4315_v53, %v3389_v52  ;;  %v4313_v60 = vld [vmem:[%s6964_s4 + $0x8c] sm:$0xf]  ;;  %v3319_v52 = vld [vmem:[%s6964_s4 + $0x10] sm:$0xf0] }
  0x99   :  { %v437_v0 = vmul.f32 %v429_v61, %v5001_v62  ;;  %v440_v30 = vmul.f32 %v432_v13, %v5001_v62  ;;  %v3391_v61 = vld [vmem:[%s6964_s4 + $0x98] sm:$0xf0]  ;;  %v438_v9 = vmul.f32 %v430_v56, %v5001_v62  ;;  %v4309_v13 = vld [vmem:[%s6964_s4 + $0x6c] sm:$0xf]  ;;  %761 = vmatpush.bf16.msra.mxu0 %v3366_v6  ;;  %v4299_v56 = vld [vmem:[%s6964_s4 + $0x14] sm:$0xf0] }
  0x9a   :  { %786 = vmatpush.bf16.msra.mxu2 %v3390_v58  ;;  %v3378_v20 = vor.u32 %v4309_v13, %v3375_v18 }
  0x9d   :  { %762 = vmatpush.bf16.msra.mxu0 %v3350_v24 }
  0xa1   :  { %763 = vmatpush.bf16.msra.mxu0 %v3334_v38 }
  0xa5   :  { %v261_v57 = vpop.f32.mrf.mxu1 }
  0xa6   :  { %v441_v2 = vadd.f32 %v437_v0, %v261_v57  ;;  %v3386_v57 = vor.u32 %v4312_v49, %v3383_v51  ;;  %v3346_v49 = vor.u32 %v4301_v46, %v3343_v47  ;;  %v4296_v51 = vld [vmem:[%s6964_s4 + $0x4] sm:$0xf] }
  0xa8   :  { %v3312_v12 = vmul.f32 -1.442695, %v441_v2  ;;  %v3394_v2 = vor.u32 %v4313_v60, %v3391_v61  ;;  %773 = vmatpush.bf16.msra.mxu1 %v3386_v57  ;;  %v4297_v57 = vld [vmem:[%s6964_s4 + $0xc] sm:$0xf]  ;;  %v3318_v60 = vor.u32 %v4298_v50, %v3317_v48  ;;  %v3322_v61 = vor.u32 %v4296_v51, %v3319_v52 }
  0xaa   :  { %4542 = vpow2.f32 %v3312_v12  ;;  %799 = vmatpush.bf16.msrb.mxu3 %v3394_v2  ;;  %v4311_v12 = vld [vmem:[%s6964_s4 + $0x74] sm:$0xf0]  ;;  %764 = vmatpush.bf16.msra.mxu0 %v3318_v60 }
  0xab   :  { %v5003_v63 = vpop.f32.mrf.mxu2  ;;  %v3374_v16 = vor.u32 %v4311_v12, %v3373_v11  ;;  %v439_v11 = vmul.f32 %v431_v8, %v5001_v62 }
  0xac   :  { %774 = vmatpush.bf16.msra.mxu1 %v3370_v10 }
  0xad   :  { %v5006_v1 = vpop.f32.mrf.mxu1  ;;  %v348_v32 = vpop.f32.mrf.mxu3  ;;  %787 = vmatpush.bf16.msra.mxu2 %v3374_v16 }
  0xae   :  { %v444_v41 = vadd.f32 %v440_v30, %v348_v32  ;;  %800 = vmatpush.bf16.msrb.mxu3 %v3378_v20  ;;  %v3358_v30 = vor.u32 %v4307_v27, %v3357_v26  ;;  %v3359_v32 = vld [vmem:[%s6964_s4 + $0x58] sm:$0xf0] }
  0xaf   :  { %v3362_v33 = vor.u32 %v4305_v31, %v3359_v32 }
  0xb0   :  { %v4543_v54 = vpop.eup %4542  ;;  %v3314_v0 = vmul.f32 -1.442695, %v444_v41  ;;  %775 = vmatpush.bf16.msra.mxu1 %v3354_v29  ;;  %v4303_v41 = vld [vmem:[%s6964_s4 + $0x34] sm:$0xf0] }
  0xb1   :  { %v5121_v5 = vadd.f32 1.0, %v4543_v54  ;;  %788 = vmatpush.bf16.msra.mxu2 %v3358_v30  ;;  %v3342_v45 = vor.u32 %v4303_v41, %v3341_v40  ;;  %v3325_v54 = vld [vmem:[%s6964_s4 + $0x8] sm:$0xf] }
  0xb2   :  { %4544 = vpow2.f32 %v3314_v0  ;;  %801 = vmatpush.bf16.msrb.mxu3 %v3362_v33  ;;  %v3327_v0 = vld [vmem:[%s6964_s4 + $0x18] sm:$0xf0]  ;;  %v3326_v2 = vor.u32 %v4299_v56, %v3325_v54 }
  0xb3   :  { %v5035_v17 = vpop.f32.mrf.mxu2  ;;  %4546 = vrcp.f32 %v5121_v5  ;;  %v3330_v6 = vor.u32 %v4297_v57, %v3327_v0  ;;  %vm454_vm3 = vweird.f32 %v5121_v5  ;;  %v460_v22 = vand.u32 2147483648, %v5121_v5 }
  0xb4   :  { %776 = vmatpush.bf16.msra.mxu1 %v3338_v44  ;;  %v458_v24 = vand.u32 2147483647, %v5121_v5  ;;  %v5236_v44 = vld [vmem:[%s6966_s6 + $0x1] ss:$0 sm:$0xff] }
  0xb5   :  { %v5030_v14 = vpop.f32.mrf.mxu1  ;;  %789 = vmatpush.bf16.msra.mxu2 %v3342_v45  ;;  %v461_v30 = vor.u32 1.1754944e-38, %v460_v22  ;;  %v5241_v45 = vld [vmem:[%s6966_s6] ss:$0 sm:$0xff] }
  0xb6   :  { %802 = vmatpush.bf16.msrb.mxu3 %v3346_v49  ;;  %vm459_vm8 = vcmp.eq.f32.partialorder %v458_v24, 8.507059e+37 }
  0xb8   :  { %v4545_v43 = vpop.eup %4544  ;;  %777 = vmatpush.bf16.msra.mxu1 %v3322_v61 }
  0xb9   :  { %v4547_v53 = vpop.eup %4546  ;;  %v5214_v58 = vadd.f32 1.0, %v4545_v43  ;;  %790 = vmatpush.bf16.msra.mxu2 %v3326_v2 }
  0xba   :  { %v450_v4 = vmul.f32 %v4547_v53, %v5121_v5  ;;  %803 = vmatpush.bf16.msrb.mxu3 %v3330_v6  ;;  %vm455_vm2 = vweird.f32 %v4547_v53 }
  0xbb   :  { %v5106_v55 = vpop.f32.mrf.mxu2  ;;  %vm456_vm5 = vmor %vm454_vm3, %vm455_vm2  ;;  %vm493_vm10 = vweird.f32 %v5214_v58  ;;  %v499_v39 = vand.u32 2147483648, %v5214_v58  ;;  %v497_v40 = vand.u32 2147483647, %v5214_v58 }
  0xbd   :  { %v5080_v42 = vpop.f32.mrf.mxu1  ;;  %v500_v43 = vor.u32 1.1754944e-38, %v499_v39  ;;  %vm498_vm13 = vcmp.eq.f32.partialorder %v497_v40, 8.507059e+37 }
  0xc3   :  { %v5176_v37 = vpop.f32.mrf.mxu2 }
  0xc5   :  { %v290_v15 = vpop.f32.mrf.mxu1 }
  0xc6   :  { %v442_v19 = vadd.f32 %v438_v9, %v290_v15  ;;  %v451_v9 = vsub.f32 1.0, %v450_v4 }
  0xc8   :  { %v3313_v28 = vmul.f32 -1.442695, %v442_v19  ;;  %v452_v15 = vmul.f32 %v4547_v53, %v451_v9 }
  0xca   :  { %4548 = vpow2.f32 %v3313_v28  ;;  %v453_v20 = vadd.f32 %v4547_v53, %v452_v15 }
  0xcb   :  { %4550 = vrcp.f32 %v5214_v58  ;;  %v319_v10 = vpop.f32.mrf.mxu2 }
  0xcc   :  { %v443_v12 = vadd.f32 %v439_v11, %v319_v10  ;;  %v457_v26 = vsel %vm456_vm5, %v4547_v53, %v453_v20  ;;  %v5253_v53 = vpop.f32.mrf.mxu3 }
  0xcd   :  { %v462_v33 = vsel %vm459_vm8, %v461_v30, %v457_v26  ;;  %v5251_v52 = vpop.f32.mrf.mxu1 }
  0xd0   :  { %v4549_v3 = vpop.eup %4548 }
  0xd1   :  { %v467_v7 = vadd.f32 1.0, %v4549_v3  ;;  %v4551_v13 = vpop.eup %4550 }
  0xd2   :  { %v489_v19 = vmul.f32 %v4551_v13, %v5214_v58  ;;  %vm494_vm11 = vweird.f32 %v4551_v13 }
  0xd3   :  { %4552 = vrcp.f32 %v467_v7  ;;  %v479_v21 = vand.u32 2147483648, %v467_v7  ;;  %v477_v62 = vand.u32 2147483647, %v467_v7  ;;  %vm473_vm6 = vweird.f32 %v467_v7  ;;  %vm495_vm12 = vmor %vm493_vm10, %vm494_vm11  ;;  %v5255_v54 = vpop.f32.mrf.mxu2 }
  0xd4   :  { %4554 = vtanh.f32 %v443_v12  ;;  %v490_v25 = vsub.f32 1.0, %v489_v19  ;;  %v5261_v58 = vpop.f32.mrf.mxu3  ;;  %v5287_v12 = vstv %s3311_s13  ;;  %v521_v19 = vld [vmem:[%s6961_s1 + $0x8] sm:$0xff] }
  0xd5   :  { %v480_v29 = vor.u32 1.1754944e-38, %v479_v21  ;;  %vm478_vm9 = vcmp.eq.f32.partialorder %v477_v62, 8.507059e+37  ;;  %v5257_v56 = vpop.f32.mrf.mxu1 }
  0xd6   :  { %v491_v32 = vmul.f32 %v4551_v13, %v490_v25 }
  0xd8   :  { %v492_v38 = vadd.f32 %v4551_v13, %v491_v32 }
  0xd9   :  { %v4553_v16 = vpop.eup %4552 }
  0xda   :  { %v469_v18 = vmul.f32 %v4553_v16, %v467_v7  ;;  %vm474_vm4 = vweird.f32 %v4553_v16  ;;  %v4555_v28 = vpop.eup %4554  ;;  %v496_v41 = vsel %vm495_vm12, %v4551_v13, %v492_v38  ;;  %v5289_v13 = vstv %s402_s14  ;;  %v5319_v38 = vld [vmem:[%s6965_s5] sm:$0xf] }
  0xdb   :  { %vm475_vm7 = vmor %vm473_vm6, %vm474_vm4  ;;  %v504_v36 = vmul.f32 %v4555_v28, %v462_v33  ;;  %v501_v47 = vsel %vm498_vm13, %v500_v43, %v496_v41  ;;  %v5259_v57 = vpop.f32.mrf.mxu2  ;;  %v548_v39 = vperm.slane %v5319_v38, 0  ;;  %v549_v40 = vperm.slane %v5319_v38, 1  ;;  %v3560_v43 = vld [vmem:[%s6964_s4 + $0xe0] sm:$0xf] }
  0xdc   :  { %v470_v59 = vsub.f32 1.0, %v469_v18  ;;  %v5267_v0 = vpop.f32.mrf.mxu3 }
  0xdd   :  { %v5263_v60 = vpop.f32.mrf.mxu1 }
  0xde   :  { %v471_v23 = vmul.f32 %v4553_v16, %v470_v59 }
  0xe0   :  { %v472_v27 = vadd.f32 %v4553_v16, %v471_v23 }
  0xe2   :  { %v476_v31 = vsel %vm475_vm7, %v4553_v16, %v472_v27  ;;  %v523_v16 = vld [vmem:[%s6962_s2 + $0x8] sm:$0xff] }
  0xe3   :  { %v481_v34 = vsel %vm478_vm9, %v480_v29, %v476_v31  ;;  %v5265_v61 = vpop.f32.mrf.mxu2 }
  0xe4   :  { %v503_v35 = vmul.f32 0.0, %v481_v34  ;;  %v5273_v4 = vpop.f32.mrf.mxu3 }
  0xe5   :  { %v5269_v2 = vpop.f32.mrf.mxu1 }
  0xe6   :  { %v5227_v5 = vadd.f32 %v504_v36, %v503_v35 }
  0xe8   :  { %4556 = vtanh.f32 %v5227_v5 }
  0xeb   :  { %v5271_v3 = vpop.f32.mrf.mxu2 }
  0xec   :  { %v5279_v8 = vpop.f32.mrf.mxu3 }
  0xed   :  { %v5275_v6 = vpop.f32.mrf.mxu1 }
  0xee   :  { %v4557_v46 = vpop.eup %4556 }
  0xef   :  { %v5243_v48 = vmul.f32 %v4557_v46, %v501_v47  ;;  %v4358_v46 = vld [vmem:[%s6964_s4 + $0xec] sm:$0xf0]  ;;  %v4356_v47 = vld [vmem:[%s6964_s4 + $0xe4] sm:$0xf] }
  0xf1   :  { %v564_v49 = vpack.c.bf16 %v5243_v48, %v5243_v48  ;;  %v516_v50 = vmul.f32 %v5236_v44, %v5243_v48  ;;  %v510_v51 = vmul.f32 %v5241_v45, %v5243_v48 }
  0xf3   :  { %765 = vmatmul.bf16.vlgmr.msra.gmra.mxu0 %v564_v49  ;;  %778 = vmatmul.bf16.vlgmr.msra.gmra.mxu1 %v564_v49  ;;  %v5277_v7 = vpop.f32.mrf.mxu2 }
  0xf4   :  { %791 = vmatmul.bf16.vlgmr.msra.gmra.mxu2 %v564_v49  ;;  %804 = vmatmul.bf16.vlgmr.msrb.gmra.mxu3 %v564_v49  ;;  %v5285_v11 = vpop.f32.mrf.mxu3 }
  0xf5   :  { %517 = vadd.xlane.f32.xlu1 %v516_v50  ;;  %511 = vadd.xlane.f32.xlu0 %v510_v51  ;;  %v5281_v9 = vpop.f32.mrf.mxu1  ;;  %v3561_v50 = vor.u32 %v4358_v46, %v3560_v43  ;;  %v3562_v51 = vld [vmem:[%s6964_s4 + $0xf0] sm:$0xf0]  ;;  %v4355_v43 = vld [vmem:[%s6964_s4 + $0xd4] sm:$0xf0]  ;;  %v4353_v46 = vld [vmem:[%s6964_s4 + $0xcc] sm:$0xf] }
  0xf7   :  { %1121 = vmatpush.bf16.msrb.mxu0 %v3561_v50 }
  0xfb   :  { %v5283_v10 = vpop.f32.mrf.mxu2 }
  0xfc   :  { %v5303_v26 = vpop.f32.mrf.mxu3 }
  0xfd   :  { %v5291_v15 = vpop.f32.mrf.mxu1 }
 0x103   :  { %v5301_v25 = vpop.f32.mrf.mxu2 }
 0x168   :  { %v518_v18 = vpop.xlane.xlu1 %517  ;;  %v512_v59 = vpop.xlane.xlu0 %511 }
 0x169   :  { %v520_v20 = vadd.f32 %v5287_v12, %v518_v18  ;;  %v514_v21 = vadd.f32 %v5289_v13, %v512_v59  ;;  %v4359_v18 = vld [vmem:[%s6964_s4 + $0xf4] sm:$0xf0] }
 0x16b   :  { %v524_v22 = vsub.f32 %v523_v16, %v520_v20  ;;  %v522_v23 = vsub.f32 %v521_v19, %v514_v21  ;;  %v3568_v16 = vld [vmem:[%s6964_s4 + $0xe8] sm:$0xf]  ;;  %v3565_v19 = vor.u32 %v4356_v47, %v3562_v51  ;;  %v4357_v20 = vld [vmem:[%s6964_s4 + $0xec] sm:$0xf]  ;;  %v3570_v21 = vld [vmem:[%s6964_s4 + $0xf8] sm:$0xf0] }
 0x16c   :  { %v3569_v59 = vor.u32 %v4359_v18, %v3568_v16  ;;  %v551_v47 = vperm.slane %v5319_v38, 3  ;;  %v3554_v51 = vld [vmem:[%s6964_s4 + $0xd8] sm:$0xf0]  ;;  %v3528_v16 = vld [vmem:[%s6964_s4 + $0xa0] sm:$0xf] }
 0x16d   :  { %v526_v24 = vmul.f32 %v524_v22, %v524_v22  ;;  %v525_v62 = vmul.f32 %v522_v23, %v522_v23  ;;  %v3544_v22 = vld [vmem:[%s6964_s4 + $0xc0] sm:$0xf]  ;;  %1134 = vmatpush.bf16.msrb.mxu1 %v3565_v19  ;;  %v3557_v18 = vor.u32 %v4353_v46, %v3554_v51  ;;  %v4350_v19 = vld [vmem:[%s6964_s4 + $0xac] sm:$0xf0]  ;;  %v3520_v51 = vld [vmem:[%s6964_s4 + $0x88] sm:$0xf] }
 0x16e   :  { %1147 = vmatpush.bf16.msrb.mxu2 %v3569_v59  ;;  %v4348_v59 = vld [vmem:[%s6964_s4 + $0xa4] sm:$0xf] }
 0x16f   :  { %v527_v27 = vadd.f32 %v526_v24, %v525_v62  ;;  %v3573_v24 = vor.u32 %v4357_v20, %v3570_v21  ;;  %v4354_v62 = vld [vmem:[%s6964_s4 + $0xcc] sm:$0xf0]  ;;  %v3530_v20 = vld [vmem:[%s6964_s4 + $0xb0] sm:$0xf0] }
 0x170   :  { %v5305_v28 = vpop.f32.mrf.mxu0  ;;  %v5307_v29 = vpop.f32.mrf.mxu1 }
 0x171   :  { %528 = vmin.xlane.f32.xlu1 %v527_v27  ;;  %v4352_v27 = vld [vmem:[%s6964_s4 + $0xc4] sm:$0xf]  ;;  %1160 = vmatpush.bf16.msra.mxu3 %v3573_v24  ;;  %v4351_v24 = vld [vmem:[%s6964_s4 + $0xb4] sm:$0xf0] }
 0x175   :  { %1161 = vmatpush.bf16.msra.mxu3 %v3557_v18 }
 0x177   :  { %v5309_v30 = vpop.f32.mrf.mxu2  ;;  %v5311_v31 = vpop.f32.mrf.mxu3 }
 0x178   :  { %v768_v32 = vpop.f32.mrf.mxu0  ;;  %v781_v33 = vpop.f32.mrf.mxu1 }
 0x179   :  { %v3546_v32 = vld [vmem:[%s6964_s4 + $0xd0] sm:$0xf0]  ;;  %v3545_v33 = vor.u32 %v4354_v62, %v3544_v22  ;;  %v3529_v22 = vor.u32 %v4350_v19, %v3528_v16  ;;  %v3533_v62 = vor.u32 %v4348_v59, %v3530_v20  ;;  %v4345_v16 = vld [vmem:[%s6964_s4 + $0x8c] sm:$0xf]  ;;  %v3522_v20 = vld [vmem:[%s6964_s4 + $0x98] sm:$0xf0] }
 0x17b   :  { %1122 = vmatpush.bf16.msrb.mxu0 %v3545_v33  ;;  %v3538_v33 = vld [vmem:[%s6964_s4 + $0xb8] sm:$0xf0] }
 0x17f   :  { %v794_v34 = vpop.f32.mrf.mxu2  ;;  %v807_v35 = vpop.f32.mrf.mxu3  ;;  %1123 = vmatpush.bf16.msrb.mxu0 %v3529_v22  ;;  %v4340_v22 = vld [vmem:[%s6964_s4 + $0x64] sm:$0xf] }
 0x180   :  { %v3549_v34 = vor.u32 %v4352_v27, %v3546_v32  ;;  %v3552_v35 = vld [vmem:[%s6964_s4 + $0xc8] sm:$0xf]  ;;  %v4349_v32 = vld [vmem:[%s6964_s4 + $0xac] sm:$0xf] }
 0x181   :  { %v3553_v50 = vor.u32 %v4355_v43, %v3552_v35  ;;  %v3512_v35 = vld [vmem:[%s6964_s4 + $0x80] sm:$0xf]  ;;  %v3541_v46 = vor.u32 %v4349_v32, %v3538_v33  ;;  %v4342_v32 = vld [vmem:[%s6964_s4 + $0x6c] sm:$0xf0] }
 0x182   :  { %1135 = vmatpush.bf16.msrb.mxu1 %v3549_v34  ;;  %v4346_v34 = vld [vmem:[%s6964_s4 + $0x8c] sm:$0xf0] }
 0x183   :  { %1148 = vmatpush.bf16.msrb.mxu2 %v3553_v50  ;;  %v3514_v50 = vld [vmem:[%s6964_s4 + $0x90] sm:$0xf0]  ;;  %v3513_v59 = vor.u32 %v4346_v34, %v3512_v35  ;;  %1162 = vmatpush.bf16.msra.mxu3 %v3541_v46  ;;  %v3504_v35 = vld [vmem:[%s6964_s4 + $0x68] sm:$0xf]  ;;  %v4341_v46 = vld [vmem:[%s6964_s4 + $0x6c] sm:$0xf] }
 0x185   :  { %1124 = vmatpush.bf16.msrb.mxu0 %v3513_v59 }
 0x186   :  { %1136 = vmatpush.bf16.msrb.mxu1 %v3533_v62  ;;  %v3525_v62 = vor.u32 %v4345_v16, %v3522_v20 }
 0x188   :  { %1163 = vmatpush.bf16.msra.mxu3 %v3525_v62 }
 0x1e4   :  { %v5313_v36 = vpop.xlane.xlu1 %528 }
 0x1e5   :  { %4558 = vrsqrt.f32 %v5313_v36  ;;  %vm537_vm14 = vcmp.eq.f32.partialorder %v5313_v36, inf  ;;  %vm539_vm15 = vcmp.eq.f32.partialorder %v5313_v36, 0.0  ;;  %v540_v19 = vand.u32 2147483648, %v5313_v36 }
 0x1eb   :  { %v4559_v41 = vpop.eup %4558 }
 0x1ec   :  { %v531_v49 = vmul.f32 %v4559_v41, %v5313_v36 }
 0x1ee   :  { %v532_v23 = vmul.f32 %v4559_v41, %v531_v49 }
 0x1f0   :  { %v533_v49 = vmul.f32 0.5, %v532_v23  ;;  %v3536_v23 = vld [vmem:[%s6964_s4 + $0xa8] sm:$0xf] }
 0x1f1   :  { %v3537_v27 = vor.u32 %v4351_v24, %v3536_v23  ;;  %v3496_v24 = vld [vmem:[%s6964_s4 + $0x60] sm:$0xf] }
 0x1f2   :  { %v534_v21 = vsub.f32 1.5, %v533_v49  ;;  %v4344_v49 = vld [vmem:[%s6964_s4 + $0x84] sm:$0xf] }
 0x1f3   :  { %1149 = vmatpush.bf16.msrb.mxu2 %v3537_v27  ;;  %v3498_v27 = vld [vmem:[%s6964_s4 + $0x70] sm:$0xf0] }
 0x1f4   :  { %v535_v43 = vmul.f32 %v4559_v41, %v534_v21  ;;  %v4347_v41 = vld [vmem:[%s6964_s4 + $0x94] sm:$0xf0]  ;;  %v3517_v21 = vor.u32 %v4344_v49, %v3514_v50  ;;  %v3506_v49 = vld [vmem:[%s6964_s4 + $0x78] sm:$0xf0]  ;;  %v3501_v16 = vor.u32 %v4340_v22, %v3498_v27  ;;  %v3464_v27 = vld [vmem:[%s6964_s4 + $0x20] sm:$0xf] }
 0x1f5   :  { %v3521_v23 = vor.u32 %v4347_v41, %v3520_v51  ;;  %v3497_v41 = vor.u32 %v4342_v32, %v3496_v24  ;;  %v3488_v24 = vld [vmem:[%s6964_s4 + $0x48] sm:$0xf]  ;;  %v4339_v32 = vld [vmem:[%s6964_s4 + $0x54] sm:$0xf0] }
 0x1f6   :  { %v536_v18 = vmul.f32 %v535_v43, %v5313_v36  ;;  %v4343_v43 = vld [vmem:[%s6964_s4 + $0x74] sm:$0xf0]  ;;  %1137 = vmatpush.bf16.msrb.mxu1 %v3517_v21  ;;  %v3509_v21 = vor.u32 %v4341_v46, %v3506_v49  ;;  %v3472_v46 = vld [vmem:[%s6964_s4 + $0x28] sm:$0xf] }
 0x1f7   :  { %1150 = vmatpush.bf16.msrb.mxu2 %v3521_v23  ;;  %v3482_v23 = vld [vmem:[%s6964_s4 + $0x50] sm:$0xf0]  ;;  %1125 = vmatpush.bf16.msrb.mxu0 %v3497_v41  ;;  %v4335_v49 = vld [vmem:[%s6964_s4 + $0x34] sm:$0xf0] }
 0x1f8   :  { %v538_v33 = vsel %vm537_vm14, %v5313_v36, %v536_v18  ;;  %v3505_v18 = vor.u32 %v4343_v43, %v3504_v35  ;;  %v4334_v35 = vld [vmem:[%s6964_s4 + $0x2c] sm:$0xf0]  ;;  %v4332_v43 = vld [vmem:[%s6964_s4 + $0x24] sm:$0xf]  ;;  %1164 = vmatpush.bf16.msra.mxu3 %v3509_v21 }
 0x1f9   :  { %v5448_v34 = vsel %vm539_vm15, %v540_v19, %v538_v33  ;;  %v3480_v19 = vld [vmem:[%s6964_s4 + $0x40] sm:$0xf] }
 0x1fa   :  { %v556_v50 = vmul.f32 %v548_v39, %v5448_v34  ;;  %v557_v51 = vmul.f32 %v549_v40, %v5448_v34  ;;  %v559_v36 = vmul.f32 %v551_v47, %v5448_v34  ;;  %v4338_v39 = vld [vmem:[%s6964_s4 + $0x4c] sm:$0xf0]  ;;  %v4336_v40 = vld [vmem:[%s6964_s4 + $0x44] sm:$0xf]  ;;  %1138 = vmatpush.bf16.msrb.mxu1 %v3501_v16  ;;  %v4333_v16 = vld [vmem:[%s6964_s4 + $0x2c] sm:$0xf] }
 0x1fb   :  { %v3481_v62 = vor.u32 %v4338_v39, %v3480_v19  ;;  %1151 = vmatpush.bf16.msrb.mxu2 %v3505_v18  ;;  %v3474_v18 = vld [vmem:[%s6964_s4 + $0x38] sm:$0xf0]  ;;  %v3465_v19 = vor.u32 %v4334_v35, %v3464_v27 }
 0x1fc   :  { %v560_v47 = vadd.f32 %v556_v50, %v5006_v1  ;;  %v561_v59 = vadd.f32 %v557_v51, %v5251_v52  ;;  %v563_v20 = vadd.f32 %v559_v36, %v5253_v53  ;;  %v4337_v1 = vld [vmem:[%s6964_s4 + $0x4c] sm:$0xf]  ;;  %v3490_v52 = vld [vmem:[%s6964_s4 + $0x58] sm:$0xf0]  ;;  %v3477_v21 = vor.u32 %v4333_v16, %v3474_v18 }
 0x1fd   :  { %v3493_v41 = vor.u32 %v4337_v1, %v3490_v52  ;;  %1126 = vmatpush.bf16.msrb.mxu0 %v3481_v62  ;;  %v550_v1 = vperm.slane %v5319_v38, 2  ;;  %v4329_v52 = vld [vmem:[%s6964_s4 + $0xc] sm:$0xf] }
 0x1fe   :  { %v809_v53 = vadd.f32 %v5305_v28, %v560_v47  ;;  %v810_v22 = vadd.f32 %v5307_v29, %v561_v59  ;;  %v812_v33 = vadd.f32 %v5311_v31, %v563_v20  ;;  %v3485_v28 = vor.u32 %v4336_v40, %v3482_v23  ;;  %v3466_v31 = vld [vmem:[%s6964_s4 + $0x30] sm:$0xf0]  ;;  %v3448_v47 = vld [vmem:[%s6964_s4] sm:$0xf]  ;;  %v4330_v59 = vld [vmem:[%s6964_s4 + $0xc] sm:$0xf0] }
 0x1ff   :  { %v3489_v29 = vor.u32 %v4339_v32, %v3488_v24  ;;  %v3469_v39 = vor.u32 %v4332_v43, %v3466_v31  ;;  %v3473_v40 = vor.u32 %v4335_v49, %v3472_v46  ;;  %v4328_v20 = vld [vmem:[%s6964_s4 + $0x4] sm:$0xf]  ;;  %1165 = vmatpush.bf16.msra.mxu3 %v3493_v41  ;;  %v3450_v23 = vld [vmem:[%s6964_s4 + $0x10] sm:$0xf0]  ;;  %v3456_v24 = vld [vmem:[%s6964_s4 + $0x8] sm:$0xf]  ;;  %v558_v38 = vmul.f32 %v550_v1, %v5448_v34 }
 0x200   :  { %v3443_v50 = vmul.f32 -1.442695, %v809_v53  ;;  %v3444_v51 = vmul.f32 -1.442695, %v810_v22  ;;  %v3445_v36 = vmul.f32 -1.442695, %v812_v33  ;;  %1139 = vmatpush.bf16.msrb.mxu1 %v3485_v28  ;;  %v3449_v22 = vor.u32 %v4330_v59, %v3448_v47 }
 0x201   :  { %1152 = vmatpush.bf16.msrb.mxu2 %v3489_v29  ;;  %v4331_v32 = vld [vmem:[%s6964_s4 + $0x14] sm:$0xf0]  ;;  %v3458_v53 = vld [vmem:[%s6964_s4 + $0x18] sm:$0xf0]  ;;  %1127 = vmatpush.bf16.msrb.mxu0 %v3465_v19  ;;  %v3453_v33 = vor.u32 %v4328_v20, %v3450_v23  ;;  %v562_v49 = vadd.f32 %v558_v38, %v5255_v54 }
 0x202   :  { %4560 = vpow2.f32 %v3443_v50  ;;  %v3457_v62 = vor.u32 %v4331_v32, %v3456_v24  ;;  %v3461_v35 = vor.u32 %v4329_v52, %v3458_v53 }
 0x203   :  { %4562 = vpow2.f32 %v3444_v51  ;;  %1166 = vmatpush.bf16.msra.mxu3 %v3477_v21  ;;  %v811_v51 = vadd.f32 %v5309_v30, %v562_v49 }
 0x204   :  { %4564 = vpow2.f32 %v3445_v36  ;;  %1140 = vmatpush.bf16.msrb.mxu1 %v3469_v39 }
 0x205   :  { %1153 = vmatpush.bf16.msrb.mxu2 %v3473_v40  ;;  %1128 = vmatpush.bf16.msrb.mxu0 %v3449_v22 }
 0x207   :  { %1167 = vmatpush.bf16.msra.mxu3 %v3461_v35 }
 0x208   :  { %v4561_v27 = vpop.eup %4560  ;;  %1141 = vmatpush.bf16.msrb.mxu1 %v3453_v33 }
 0x209   :  { %v4563_v43 = vpop.eup %4562  ;;  %v816_v28 = vadd.f32 1.0, %v4561_v27  ;;  %1154 = vmatpush.bf16.msrb.mxu2 %v3457_v62 }
 0x20a   :  { %v4565_v29 = vpop.eup %4564  ;;  %v835_v31 = vadd.f32 1.0, %v4563_v43 }
 0x20b   :  { %4566 = vrcp.f32 %v816_v28  ;;  %v855_v46 = vadd.f32 1.0, %v4565_v29  ;;  %v828_v39 = vand.u32 2147483648, %v816_v28  ;;  %v826_v59 = vand.u32 2147483647, %v816_v28 }
 0x20c   :  { %4568 = vrcp.f32 %v835_v31  ;;  %v847_v20 = vand.u32 2147483648, %v835_v31  ;;  %v845_v54 = vand.u32 2147483647, %v835_v31  ;;  %vm822_vm2 = vweird.f32 %v816_v28 }
 0x20d   :  { %4570 = vrcp.f32 %v855_v46  ;;  %v829_v30 = vor.u32 1.1754944e-38, %v828_v39  ;;  %vm841_vm4 = vweird.f32 %v835_v31  ;;  %vm827_vm5 = vcmp.eq.f32.partialorder %v826_v59, 8.507059e+37 }
 0x20e   :  { %4572 = vtanh.f32 %v811_v51  ;;  %v848_v52 = vor.u32 1.1754944e-38, %v847_v20  ;;  %vm846_vm7 = vcmp.eq.f32.partialorder %v845_v54, 8.507059e+37  ;;  %v867_v29 = vand.u32 2147483648, %v855_v46 }
 0x20f   :  { %vm861_vm9 = vweird.f32 %v855_v46 }
 0x211   :  { %v4567_v50 = vpop.eup %4566 }
 0x212   :  { %v4569_v36 = vpop.eup %4568  ;;  %v818_v41 = vmul.f32 %v4567_v50, %v816_v28  ;;  %vm823_vm0 = vweird.f32 %v4567_v50 }
 0x213   :  { %v4571_v16 = vpop.eup %4570  ;;  %v837_v34 = vmul.f32 %v4569_v36, %v835_v31  ;;  %vm842_vm1 = vweird.f32 %v4569_v36  ;;  %vm824_vm3 = vmor %vm822_vm2, %vm823_vm0  ;;  %v865_v31 = vand.u32 2147483647, %v855_v46 }
 0x214   :  { %v819_v18 = vsub.f32 1.0, %v818_v41  ;;  %v857_v19 = vmul.f32 %v4571_v16, %v855_v46  ;;  %vm843_vm6 = vmor %vm841_vm4, %vm842_vm1  ;;  %v4573_v53 = vpop.eup %4572  ;;  %vm862_vm8 = vweird.f32 %v4571_v16 }
 0x215   :  { %v838_v40 = vsub.f32 1.0, %v837_v34  ;;  %vm863_vm10 = vmor %vm861_vm9, %vm862_vm8  ;;  %vm866_vm11 = vcmp.eq.f32.partialorder %v865_v31, 8.507059e+37 }
 0x216   :  { %v820_v47 = vmul.f32 %v4567_v50, %v819_v18  ;;  %v858_v24 = vsub.f32 1.0, %v857_v19  ;;  %v885_v19 = vld [vmem:[%s6961_s1 + $0x10] sm:$0xff] }
 0x217   :  { %v839_v21 = vmul.f32 %v4569_v36, %v838_v40 }
 0x218   :  { %v821_v23 = vadd.f32 %v4567_v50, %v820_v47  ;;  %v859_v27 = vmul.f32 %v4571_v16, %v858_v24 }
 0x219   :  { %v840_v32 = vadd.f32 %v4569_v36, %v839_v21 }
 0x21a   :  { %v825_v1 = vsel %vm824_vm3, %v4567_v50, %v821_v23  ;;  %v860_v28 = vadd.f32 %v4571_v16, %v859_v27  ;;  %v868_v50 = vor.u32 1.1754944e-38, %v867_v29  ;;  %v4388_v29 = vld [vmem:[%s6964_s4 + $0xe4] sm:$0xf] }
 0x21b   :  { %v830_v22 = vsel %vm827_vm5, %v829_v30, %v825_v1  ;;  %v844_v33 = vsel %vm843_vm6, %v4569_v36, %v840_v32 }
 0x21c   :  { %v849_v62 = vsel %vm846_vm7, %v848_v52, %v844_v33  ;;  %v872_v35 = vmul.f32 %v4573_v53, %v830_v22  ;;  %v864_v49 = vsel %vm863_vm10, %v4571_v16, %v860_v28  ;;  %v5579_v33 = vld [vmem:[%s6965_s5] sm:$0xf]  ;;  %v4390_v28 = vld [vmem:[%s6964_s4 + $0xec] sm:$0xf0] }
 0x21d   :  { %v871_v43 = vmul.f32 %v849_v62, %v5227_v5  ;;  %v869_v36 = vsel %vm866_vm11, %v868_v50, %v864_v49  ;;  %v912_v62 = vperm.slane %v5579_v33, 0  ;;  %v913_v27 = vperm.slane %v5579_v33, 1  ;;  %v3693_v50 = vld [vmem:[%s6964_s4 + $0xf0] sm:$0xf0] }
 0x21f   :  { %v5546_v38 = vadd.f32 %v872_v35, %v871_v43  ;;  %v3691_v43 = vld [vmem:[%s6964_s4 + $0xe0] sm:$0xf] }
 0x220   :  { %v3692_v49 = vor.u32 %v4390_v28, %v3691_v43  ;;  %v3685_v43 = vld [vmem:[%s6964_s4 + $0xd8] sm:$0xf0]  ;;  %v3659_v28 = vld [vmem:[%s6964_s4 + $0xa0] sm:$0xf] }
 0x221   :  { %4574 = vtanh.f32 %v5546_v38 }
 0x222   :  { %1485 = vmatpush.bf16.msra.mxu0 %v3692_v49  ;;  %v4380_v49 = vld [vmem:[%s6964_s4 + $0xa4] sm:$0xf] }
 0x227   :  { %v4575_v51 = vpop.eup %4574 }
 0x228   :  { %v5549_v41 = vmul.f32 %v4575_v51, %v869_v36  ;;  %v3699_v51 = vld [vmem:[%s6964_s4 + $0xe8] sm:$0xf]  ;;  %v4391_v36 = vld [vmem:[%s6964_s4 + $0xf4] sm:$0xf0] }
 0x22a   :  { %v928_v5 = vpack.c.bf16 %v5549_v41, %v5549_v41  ;;  %v877_v34 = vmul.f32 %v5241_v45, %v5549_v41  ;;  %v881_v46 = vmul.f32 %v5236_v44, %v5549_v41  ;;  %v887_v45 = vld [vmem:[%s6962_s2 + $0x10] sm:$0xff] }
 0x22c   :  { %1129 = vmatmul.bf16.vlgmr.msrb.gmra.mxu0 %v928_v5  ;;  %1142 = vmatmul.bf16.vlgmr.msrb.gmra.mxu1 %v928_v5 }
 0x22d   :  { %1155 = vmatmul.bf16.vlgmr.msrb.gmra.mxu2 %v928_v5  ;;  %1168 = vmatmul.bf16.vlgmr.msra.gmra.mxu3 %v928_v5  ;;  %v3696_v5 = vor.u32 %v4388_v29, %v3693_v50  ;;  %v3661_v50 = vld [vmem:[%s6964_s4 + $0xb0] sm:$0xf0] }
 0x22e   :  { %878 = vadd.xlane.f32.xlu2 %v877_v34  ;;  %v3700_v34 = vor.u32 %v4391_v36, %v3699_v51 }
 0x22f   :  { %1498 = vmatpush.bf16.msra.mxu1 %v3696_v5  ;;  %v3667_v5 = vld [vmem:[%s6964_s4 + $0xa8] sm:$0xf] }
 0x230   :  { %1511 = vmatpush.bf16.msra.mxu2 %v3700_v34  ;;  %v4383_v34 = vld [vmem:[%s6964_s4 + $0xb4] sm:$0xf0] }
 0x236   :  { %882 = vadd.xlane.f32.xlu2 %v881_v46  ;;  %v4389_v46 = vld [vmem:[%s6964_s4 + $0xec] sm:$0xf] }
 0x2a1   :  { %v879_v16 = vpop.xlane.xlu2 %878 }
 0x2a2   :  { %v880_v18 = vadd.f32 %v879_v16, %v5289_v13  ;;  %v3701_v16 = vld [vmem:[%s6964_s4 + $0xf8] sm:$0xf0] }
 0x2a4   :  { %v886_v47 = vsub.f32 %v885_v19, %v880_v18  ;;  %v3675_v18 = vld [vmem:[%s6964_s4 + $0xc0] sm:$0xf] }
 0x2a6   :  { %v889_v21 = vmul.f32 %v886_v47, %v886_v47  ;;  %v4384_v47 = vld [vmem:[%s6964_s4 + $0xc4] sm:$0xf] }
 0x2a9   :  { %v883_v39 = vpop.xlane.xlu2 %882  ;;  %v5564_v40 = vpop.f32.mrf.mxu0 }
 0x2aa   :  { %v884_v59 = vadd.f32 %v883_v39, %v5287_v12  ;;  %v5567_v20 = vpop.f32.mrf.mxu1  ;;  %v4386_v39 = vld [vmem:[%s6964_s4 + $0xcc] sm:$0xf0] }
 0x2ac   :  { %v888_v44 = vsub.f32 %v887_v45, %v884_v59  ;;  %v3704_v45 = vor.u32 %v4389_v46, %v3701_v16  ;;  %v3677_v59 = vld [vmem:[%s6964_s4 + $0xd0] sm:$0xf0]  ;;  %v3664_v46 = vor.u32 %v4380_v49, %v3661_v50  ;;  %v3668_v16 = vor.u32 %v4383_v34, %v3667_v5  ;;  %v4374_v49 = vld [vmem:[%s6964_s4 + $0x6c] sm:$0xf0]  ;;  %v4372_v50 = vld [vmem:[%s6964_s4 + $0x64] sm:$0xf] }
 0x2ad   :  { %v3629_v5 = vld [vmem:[%s6964_s4 + $0x70] sm:$0xf0]  ;;  %v3635_v34 = vld [vmem:[%s6964_s4 + $0x68] sm:$0xf] }
 0x2ae   :  { %v890_v54 = vmul.f32 %v888_v44, %v888_v44  ;;  %v3676_v44 = vor.u32 %v4386_v39, %v3675_v18  ;;  %1524 = vmatpush.bf16.msrb.mxu3 %v3704_v45  ;;  %v4381_v18 = vld [vmem:[%s6964_s4 + $0xac] sm:$0xf]  ;;  %v3643_v45 = vld [vmem:[%s6964_s4 + $0x80] sm:$0xf] }
 0x2b0   :  { %v5569_v23 = vpop.f32.mrf.mxu2  ;;  %v5571_v24 = vpop.f32.mrf.mxu3  ;;  %v891_v30 = vadd.f32 %v890_v54, %v889_v21  ;;  %v3680_v21 = vor.u32 %v4384_v47, %v3677_v59  ;;  %v3683_v54 = vld [vmem:[%s6964_s4 + $0xc8] sm:$0xf]  ;;  %1486 = vmatpush.bf16.msra.mxu0 %v3676_v44  ;;  %v4378_v59 = vld [vmem:[%s6964_s4 + $0x8c] sm:$0xf0]  ;;  %v4376_v44 = vld [vmem:[%s6964_s4 + $0x84] sm:$0xf] }
 0x2b1   :  { %v1132_v32 = vpop.f32.mrf.mxu0 }
 0x2b2   :  { %892 = vmin.xlane.f32.xlu0 %v891_v30  ;;  %v1145_v1 = vpop.f32.mrf.mxu1  ;;  %v4387_v30 = vld [vmem:[%s6964_s4 + $0xd4] sm:$0xf0]  ;;  %v4385_v32 = vld [vmem:[%s6964_s4 + $0xcc] sm:$0xf]  ;;  %1499 = vmatpush.bf16.msra.mxu1 %v3680_v21  ;;  %v3645_v21 = vld [vmem:[%s6964_s4 + $0x90] sm:$0xf0] }
 0x2b3   :  { %v915_v1 = vperm.slane %v5579_v33, 3  ;;  %v3688_v29 = vor.u32 %v4385_v32, %v3685_v43  ;;  %v3653_v43 = vld [vmem:[%s6964_s4 + $0x98] sm:$0xf0] }
 0x2b5   :  { %1525 = vmatpush.bf16.msrb.mxu3 %v3688_v29 }
 0x2b6   :  { %1500 = vmatpush.bf16.msra.mxu1 %v3664_v46  ;;  %v4375_v46 = vld [vmem:[%s6964_s4 + $0x74] sm:$0xf0] }
 0x2b8   :  { %v1158_v52 = vpop.f32.mrf.mxu2  ;;  %v1171_v53 = vpop.f32.mrf.mxu3 }
 0x2b9   :  { %v3684_v53 = vor.u32 %v4387_v30, %v3683_v54  ;;  %v3651_v54 = vld [vmem:[%s6964_s4 + $0x88] sm:$0xf]  ;;  %v4377_v30 = vld [vmem:[%s6964_s4 + $0x8c] sm:$0xf] }
 0x2bb   :  { %1512 = vmatpush.bf16.msra.mxu2 %v3684_v53  ;;  %v3644_v53 = vor.u32 %v4378_v59, %v3643_v45  ;;  %v3632_v59 = vor.u32 %v4372_v50, %v3629_v5  ;;  %v4364_v50 = vld [vmem:[%s6964_s4 + $0x24] sm:$0xf] }
 0x2bf   :  { %1513 = vmatpush.bf16.msra.mxu2 %v3668_v16 }
 0x325   :  { %v5573_v22 = vpop.xlane.xlu0 %892 }
 0x326   :  { %4576 = vrsqrt.f32 %v5573_v22  ;;  %vm901_vm12 = vcmp.eq.f32.partialorder %v5573_v22, inf  ;;  %vm903_vm13 = vcmp.eq.f32.partialorder %v5573_v22, 0.0 }
 0x32c   :  { %v4577_v35 = vpop.eup %4576 }
 0x32d   :  { %v895_v31 = vmul.f32 %v4577_v35, %v5573_v22 }
 0x32f   :  { %v896_v19 = vmul.f32 %v4577_v35, %v895_v31  ;;  %v4382_v31 = vld [vmem:[%s6964_s4 + $0xac] sm:$0xf0] }
 0x330   :  { %v3660_v36 = vor.u32 %v4382_v31, %v3659_v28  ;;  %v3648_v28 = vor.u32 %v4376_v44, %v3645_v21  ;;  %v3627_v31 = vld [vmem:[%s6964_s4 + $0x60] sm:$0xf]  ;;  %v3636_v44 = vor.u32 %v4375_v46, %v3635_v34 }
 0x331   :  { %v897_v52 = vmul.f32 0.5, %v896_v19  ;;  %v3669_v19 = vld [vmem:[%s6964_s4 + $0xb8] sm:$0xf0]  ;;  %v3611_v21 = vld [vmem:[%s6964_s4 + $0x40] sm:$0xf] }
 0x332   :  { %v3672_v47 = vor.u32 %v4381_v18, %v3669_v19  ;;  %1487 = vmatpush.bf16.msra.mxu0 %v3660_v36  ;;  %v3656_v36 = vor.u32 %v4377_v30, %v3653_v43  ;;  %v4373_v18 = vld [vmem:[%s6964_s4 + $0x6c] sm:$0xf]  ;;  %v3637_v19 = vld [vmem:[%s6964_s4 + $0x78] sm:$0xf0]  ;;  %1501 = vmatpush.bf16.msra.mxu1 %v3648_v28 }
 0x333   :  { %v898_v51 = vsub.f32 1.5, %v897_v52  ;;  %v904_v52 = vand.u32 2147483648, %v5573_v22  ;;  %v3640_v30 = vor.u32 %v4373_v18, %v3637_v19  ;;  %v4365_v19 = vld [vmem:[%s6964_s4 + $0x2c] sm:$0xf] }
 0x334   :  { %1526 = vmatpush.bf16.msrb.mxu3 %v3672_v47  ;;  %v3628_v47 = vor.u32 %v4374_v49, %v3627_v31  ;;  %v3595_v31 = vld [vmem:[%s6964_s4 + $0x20] sm:$0xf]  ;;  %v4366_v49 = vld [vmem:[%s6964_s4 + $0x2c] sm:$0xf0] }
 0x335   :  { %v899_v39 = vmul.f32 %v4577_v35, %v898_v51  ;;  %v4379_v35 = vld [vmem:[%s6964_s4 + $0x94] sm:$0xf0] }
 0x336   :  { %v3652_v29 = vor.u32 %v4379_v35, %v3651_v54  ;;  %1488 = vmatpush.bf16.msra.mxu0 %v3644_v53  ;;  %v4371_v53 = vld [vmem:[%s6964_s4 + $0x54] sm:$0xf0]  ;;  %1502 = vmatpush.bf16.msra.mxu1 %v3632_v59  ;;  %v3579_v59 = vld [vmem:[%s6964_s4] sm:$0xf] }
 0x337   :  { %v900_v32 = vmul.f32 %v899_v39, %v5573_v22 }
 0x338   :  { %1514 = vmatpush.bf16.msra.mxu2 %v3652_v29  ;;  %1527 = vmatpush.bf16.msrb.mxu3 %v3656_v36  ;;  %v4367_v36 = vld [vmem:[%s6964_s4 + $0x34] sm:$0xf0] }
 0x339   :  { %v902_v51 = vsel %vm901_vm12, %v5573_v22, %v900_v32  ;;  %v3613_v32 = vld [vmem:[%s6964_s4 + $0x50] sm:$0xf0] }
 0x33a   :  { %v5708_v16 = vsel %vm903_vm13, %v904_v52, %v902_v51  ;;  %v3619_v52 = vld [vmem:[%s6964_s4 + $0x48] sm:$0xf]  ;;  %1489 = vmatpush.bf16.msra.mxu0 %v3628_v47 }
 0x33b   :  { %v920_v45 = vmul.f32 %v912_v62, %v5708_v16  ;;  %v921_v39 = vmul.f32 %v913_v27, %v5708_v16  ;;  %v923_v22 = vmul.f32 %v915_v1, %v5708_v16  ;;  %v4370_v62 = vld [vmem:[%s6964_s4 + $0x4c] sm:$0xf0]  ;;  %v4368_v27 = vld [vmem:[%s6964_s4 + $0x44] sm:$0xf]  ;;  %v3603_v51 = vld [vmem:[%s6964_s4 + $0x28] sm:$0xf] }
 0x33c   :  { %v3612_v29 = vor.u32 %v4370_v62, %v3611_v21  ;;  %1515 = vmatpush.bf16.msra.mxu2 %v3636_v44  ;;  %1528 = vmatpush.bf16.msrb.mxu3 %v3640_v30  ;;  %v3604_v47 = vor.u32 %v4367_v36, %v3603_v51  ;;  %v4362_v44 = vld [vmem:[%s6964_s4 + $0xc] sm:$0xf0]  ;;  %v4360_v21 = vld [vmem:[%s6964_s4 + $0x4] sm:$0xf]  ;;  %v4361_v30 = vld [vmem:[%s6964_s4 + $0xc] sm:$0xf] }
 0x33d   :  { %v924_v1 = vadd.f32 %v920_v45, %v5030_v14  ;;  %v925_v54 = vadd.f32 %v921_v39, %v5257_v56  ;;  %v927_v35 = vadd.f32 %v923_v22, %v5261_v58  ;;  %v4369_v14 = vld [vmem:[%s6964_s4 + $0x4c] sm:$0xf]  ;;  %v3621_v56 = vld [vmem:[%s6964_s4 + $0x58] sm:$0xf0]  ;;  %v3596_v39 = vor.u32 %v4366_v49, %v3595_v31 }
 0x33e   :  { %v3624_v18 = vor.u32 %v4369_v14, %v3621_v56  ;;  %v3605_v45 = vld [vmem:[%s6964_s4 + $0x38] sm:$0xf0]  ;;  %1490 = vmatpush.bf16.msra.mxu0 %v3612_v29 }
 0x33f   :  { %v1173_v58 = vadd.f32 %v5564_v40, %v924_v1  ;;  %v1174_v43 = vadd.f32 %v5567_v20, %v925_v54  ;;  %v1176_v28 = vadd.f32 %v5571_v24, %v927_v35  ;;  %v3616_v40 = vor.u32 %v4368_v27, %v3613_v32  ;;  %v3597_v24 = vld [vmem:[%s6964_s4 + $0x30] sm:$0xf0]  ;;  %v3587_v1 = vld [vmem:[%s6964_s4 + $0x8] sm:$0xf]  ;;  %v4363_v54 = vld [vmem:[%s6964_s4 + $0x14] sm:$0xf0] }
 0x340   :  { %v3620_v20 = vor.u32 %v4371_v53, %v3619_v52  ;;  %v3600_v22 = vor.u32 %v4364_v50, %v3597_v24  ;;  %1529 = vmatpush.bf16.msrb.mxu3 %v3624_v18  ;;  %v3608_v62 = vor.u32 %v4365_v19, %v3605_v45  ;;  %v3581_v27 = vld [vmem:[%s6964_s4 + $0x10] sm:$0xf0]  ;;  %v914_v35 = vperm.slane %v5579_v33, 2  ;;  %v3589_v32 = vld [vmem:[%s6964_s4 + $0x18] sm:$0xf0] }
 0x341   :  { %v3574_v5 = vmul.f32 -1.442695, %v1173_v58  ;;  %v3575_v34 = vmul.f32 -1.442695, %v1174_v43  ;;  %v3576_v46 = vmul.f32 -1.442695, %v1176_v28  ;;  %1503 = vmatpush.bf16.msra.mxu1 %v3616_v40  ;;  %v3580_v52 = vor.u32 %v4362_v44, %v3579_v59 }
 0x342   :  { %1516 = vmatpush.bf16.msra.mxu2 %v3620_v20  ;;  %1491 = vmatpush.bf16.msra.mxu0 %v3596_v39  ;;  %v3584_v53 = vor.u32 %v4360_v21, %v3581_v27  ;;  %v3588_v14 = vor.u32 %v4363_v54, %v3587_v1  ;;  %v3592_v58 = vor.u32 %v4361_v30, %v3589_v32 }
 0x343   :  { %4578 = vpow2.f32 %v3574_v5  ;;  %v922_v33 = vmul.f32 %v914_v35, %v5708_v16 }
 0x344   :  { %4580 = vpow2.f32 %v3575_v34  ;;  %1530 = vmatpush.bf16.msrb.mxu3 %v3608_v62 }
 0x345   :  { %4582 = vpow2.f32 %v3576_v46  ;;  %1504 = vmatpush.bf16.msra.mxu1 %v3600_v22  ;;  %v926_v50 = vadd.f32 %v922_v33, %v5259_v57 }
 0x346   :  { %1517 = vmatpush.bf16.msra.mxu2 %v3604_v47  ;;  %1492 = vmatpush.bf16.msra.mxu0 %v3580_v52 }
 0x347   :  { %v1175_v20 = vadd.f32 %v5569_v23, %v926_v50  ;;  %v5816_v50 = vld [vmem:[%s6966_s6 + $0x1] ss:$0 sm:$0xff] }
 0x348   :  { %1531 = vmatpush.bf16.msrb.mxu3 %v3592_v58 }
 0x349   :  { %v4579_v56 = vpop.eup %4578  ;;  %1505 = vmatpush.bf16.msra.mxu1 %v3584_v53 }
 0x34a   :  { %v4581_v43 = vpop.eup %4580  ;;  %v1180_v28 = vadd.f32 1.0, %v4579_v56  ;;  %1518 = vmatpush.bf16.msra.mxu2 %v3588_v14 }
 0x34b   :  { %v4583_v29 = vpop.eup %4582  ;;  %v1199_v31 = vadd.f32 1.0, %v4581_v43 }
 0x34c   :  { %4584 = vrcp.f32 %v1180_v28  ;;  %v1219_v49 = vadd.f32 1.0, %v4583_v29  ;;  %v1192_v46 = vand.u32 2147483648, %v1180_v28  ;;  %v1190_v45 = vand.u32 2147483647, %v1180_v28 }
 0x34d   :  { %4586 = vrcp.f32 %v1199_v31  ;;  %v1211_v39 = vand.u32 2147483648, %v1199_v31  ;;  %v1209_v57 = vand.u32 2147483647, %v1199_v31  ;;  %vm1186_vm0 = vweird.f32 %v1180_v28 }
 0x34e   :  { %4588 = vrcp.f32 %v1219_v49  ;;  %v1193_v23 = vor.u32 1.1754944e-38, %v1192_v46  ;;  %vm1205_vm2 = vweird.f32 %v1199_v31  ;;  %vm1191_vm3 = vcmp.eq.f32.partialorder %v1190_v45, 8.507059e+37 }
 0x34f   :  { %4590 = vtanh.f32 %v1175_v20  ;;  %v1212_v62 = vor.u32 1.1754944e-38, %v1211_v39  ;;  %vm1210_vm5 = vcmp.eq.f32.partialorder %v1209_v57, 8.507059e+37  ;;  %v1231_v56 = vand.u32 2147483648, %v1219_v49 }
 0x350   :  { %vm1225_vm7 = vweird.f32 %v1219_v49  ;;  %v1229_v58 = vand.u32 2147483647, %v1219_v49 }
 0x351   :  { %v1232_v33 = vor.u32 1.1754944e-38, %v1231_v56 }
 0x352   :  { %v4585_v40 = vpop.eup %4584  ;;  %vm1230_vm9 = vcmp.eq.f32.partialorder %v1229_v58, 8.507059e+37 }
 0x353   :  { %v4587_v24 = vpop.eup %4586  ;;  %v1182_v51 = vmul.f32 %v4585_v40, %v1180_v28  ;;  %vm1187_vm14 = vweird.f32 %v4585_v40 }
 0x354   :  { %v4589_v36 = vpop.eup %4588  ;;  %v1201_v16 = vmul.f32 %v4587_v24, %v1199_v31  ;;  %vm1206_vm15 = vweird.f32 %v4587_v24  ;;  %vm1188_vm1 = vmor %vm1186_vm0, %vm1187_vm14 }
 0x355   :  { %v1183_v5 = vsub.f32 1.0, %v1182_v51  ;;  %v1221_v34 = vmul.f32 %v4589_v36, %v1219_v49  ;;  %vm1207_vm4 = vmor %vm1205_vm2, %vm1206_vm15  ;;  %v4591_v27 = vpop.eup %4590  ;;  %vm1226_vm6 = vweird.f32 %v4589_v36  ;;  %v5823_v49 = vld [vmem:[%s6966_s6] ss:$0 sm:$0xff] }
 0x356   :  { %v1202_v18 = vsub.f32 1.0, %v1201_v16  ;;  %vm1227_vm8 = vmor %vm1225_vm7, %vm1226_vm6 }
 0x357   :  { %v1184_v19 = vmul.f32 %v4585_v40, %v1183_v5  ;;  %v1222_v59 = vsub.f32 1.0, %v1221_v34 }
 0x358   :  { %v1203_v22 = vmul.f32 %v4587_v24, %v1202_v18 }
 0x359   :  { %v1185_v47 = vadd.f32 %v4585_v40, %v1184_v19  ;;  %v1223_v30 = vmul.f32 %v4589_v36, %v1222_v59 }
 0x35a   :  { %v1204_v44 = vadd.f32 %v4587_v24, %v1203_v22 }
 0x35b   :  { %v1189_v21 = vsel %vm1188_vm1, %v4585_v40, %v1185_v47  ;;  %v1224_v14 = vadd.f32 %v4589_v36, %v1223_v30 }
 0x35c   :  { %v1194_v1 = vsel %vm1191_vm3, %v1193_v23, %v1189_v21  ;;  %v1208_v54 = vsel %vm1207_vm4, %v4587_v24, %v1204_v44  ;;  %v1251_v24 = vld [vmem:[%s6962_s2 + $0x18] sm:$0xff] }
 0x35d   :  { %v1213_v35 = vsel %vm1210_vm5, %v1212_v62, %v1208_v54  ;;  %v1236_v32 = vmul.f32 %v4591_v27, %v1194_v1  ;;  %v1228_v43 = vsel %vm1227_vm8, %v4589_v36, %v1224_v14  ;;  %v1249_v36 = vld [vmem:[%s6961_s1 + $0x18] sm:$0xff]  ;;  %v5849_v1 = vld [vmem:[%s6965_s5] sm:$0xf]  ;;  %v4420_v14 = vld [vmem:[%s6964_s4 + $0xe4] sm:$0xf] }
 0x35e   :  { %v1235_v52 = vmul.f32 %v1213_v35, %v5546_v38  ;;  %v1233_v29 = vsel %vm1230_vm9, %v1232_v33, %v1228_v43  ;;  %v1276_v54 = vperm.slane %v5849_v1, 0  ;;  %v1277_v35 = vperm.slane %v5849_v1, 1  ;;  %v3824_v43 = vld [vmem:[%s6964_s4 + $0xf0] sm:$0xf0]  ;;  %v3830_v33 = vld [vmem:[%s6964_s4 + $0xe8] sm:$0xf] }
 0x360   :  { %v5806_v53 = vadd.f32 %v1236_v32, %v1235_v52  ;;  %v3822_v32 = vld [vmem:[%s6964_s4 + $0xe0] sm:$0xf]  ;;  %v4422_v52 = vld [vmem:[%s6964_s4 + $0xec] sm:$0xf0] }
 0x361   :  { %v3823_v58 = vor.u32 %v4422_v52, %v3822_v32  ;;  %v3790_v32 = vld [vmem:[%s6964_s4 + $0xa0] sm:$0xf] }
 0x362   :  { %4592 = vtanh.f32 %v5806_v53 }
 0x363   :  { %1849 = vmatpush.bf16.msrb.mxu0 %v3823_v58  ;;  %v3792_v58 = vld [vmem:[%s6964_s4 + $0xb0] sm:$0xf0] }
 0x368   :  { %v4593_v28 = vpop.eup %4592 }
 0x369   :  { %v5809_v31 = vmul.f32 %v4593_v28, %v1233_v29  ;;  %v4423_v28 = vld [vmem:[%s6964_s4 + $0xf4] sm:$0xf0]  ;;  %v3827_v29 = vor.u32 %v4420_v14, %v3824_v43  ;;  %v4414_v14 = vld [vmem:[%s6964_s4 + $0xac] sm:$0xf0] }
 0x36b   :  { %v1292_v38 = vpack.c.bf16 %v5809_v31, %v5809_v31  ;;  %v1245_v40 = vmul.f32 %v5816_v50, %v5809_v31  ;;  %v1241_v20 = vmul.f32 %v5823_v49, %v5809_v31  ;;  %1862 = vmatpush.bf16.msrb.mxu1 %v3827_v29  ;;  %v4415_v29 = vld [vmem:[%s6964_s4 + $0xb4] sm:$0xf0] }
 0x36d   :  { %1493 = vmatmul.bf16.vlgmr.msra.gmra.mxu0 %v1292_v38  ;;  %1506 = vmatmul.bf16.vlgmr.msra.gmra.mxu1 %v1292_v38 }
 0x36e   :  { %1519 = vmatmul.bf16.vlgmr.msra.gmra.mxu2 %v1292_v38  ;;  %1532 = vmatmul.bf16.vlgmr.msrb.gmra.mxu3 %v1292_v38  ;;  %v3831_v38 = vor.u32 %v4423_v28, %v3830_v33  ;;  %v3791_v33 = vor.u32 %v4414_v14, %v3790_v32  ;;  %v3798_v28 = vld [vmem:[%s6964_s4 + $0xa8] sm:$0xf]  ;;  %v4406_v14 = vld [vmem:[%s6964_s4 + $0x6c] sm:$0xf0] }
 0x36f   :  { %1246 = vadd.xlane.f32.xlu2 %v1245_v40  ;;  %1242 = vadd.xlane.f32.xlu1 %v1241_v20  ;;  %v4421_v40 = vld [vmem:[%s6964_s4 + $0xec] sm:$0xf]  ;;  %v3832_v20 = vld [vmem:[%s6964_s4 + $0xf8] sm:$0xf0] }
 0x370   :  { %1875 = vmatpush.bf16.msrb.mxu2 %v3831_v38 }
 0x3e2   :  { %v1247_v51 = vpop.xlane.xlu2 %1246  ;;  %v1243_v16 = vpop.xlane.xlu1 %1242 }
 0x3e3   :  { %v1248_v5 = vadd.f32 %v1247_v51, %v5287_v12  ;;  %v1244_v34 = vadd.f32 %v1243_v16, %v5289_v13  ;;  %v4418_v16 = vld [vmem:[%s6964_s4 + $0xcc] sm:$0xf0] }
 0x3e5   :  { %v1252_v46 = vsub.f32 %v1251_v24, %v1248_v5  ;;  %v1250_v18 = vsub.f32 %v1249_v36, %v1244_v34  ;;  %v3806_v24 = vld [vmem:[%s6964_s4 + $0xc0] sm:$0xf]  ;;  %v3835_v36 = vor.u32 %v4421_v40, %v3832_v20  ;;  %v4416_v5 = vld [vmem:[%s6964_s4 + $0xc4] sm:$0xf]  ;;  %v3808_v34 = vld [vmem:[%s6964_s4 + $0xd0] sm:$0xf0]  ;;  %v3799_v40 = vor.u32 %v4415_v29, %v3798_v28 }
 0x3e6   :  { %v4413_v20 = vld [vmem:[%s6964_s4 + $0xac] sm:$0xf]  ;;  %v3766_v28 = vld [vmem:[%s6964_s4 + $0x68] sm:$0xf]  ;;  %v4407_v29 = vld [vmem:[%s6964_s4 + $0x74] sm:$0xf0] }
 0x3e7   :  { %v1254_v19 = vmul.f32 %v1252_v46, %v1252_v46  ;;  %v1253_v45 = vmul.f32 %v1250_v18, %v1250_v18  ;;  %v3807_v46 = vor.u32 %v4418_v16, %v3806_v24  ;;  %v3811_v18 = vor.u32 %v4416_v5, %v3808_v34  ;;  %1888 = vmatpush.bf16.msra.mxu3 %v3835_v36  ;;  %v3800_v24 = vld [vmem:[%s6964_s4 + $0xb8] sm:$0xf0]  ;;  %v4410_v5 = vld [vmem:[%s6964_s4 + $0x8c] sm:$0xf0]  ;;  %v4408_v34 = vld [vmem:[%s6964_s4 + $0x84] sm:$0xf] }
 0x3e8   :  { %v3803_v16 = vor.u32 %v4413_v20, %v3800_v24  ;;  %v3768_v20 = vld [vmem:[%s6964_s4 + $0x78] sm:$0xf0] }
 0x3e9   :  { %v1255_v39 = vadd.f32 %v1254_v19, %v1253_v45  ;;  %v3814_v19 = vld [vmem:[%s6964_s4 + $0xc8] sm:$0xf]  ;;  %v4419_v45 = vld [vmem:[%s6964_s4 + $0xd4] sm:$0xf0]  ;;  %1850 = vmatpush.bf16.msrb.mxu0 %v3807_v46  ;;  %1863 = vmatpush.bf16.msrb.mxu1 %v3811_v18  ;;  %v3776_v46 = vld [vmem:[%s6964_s4 + $0x90] sm:$0xf0] }
 0x3ea   :  { %v5835_v22 = vpop.f32.mrf.mxu0  ;;  %v5837_v57 = vpop.f32.mrf.mxu1  ;;  %v3782_v18 = vld [vmem:[%s6964_s4 + $0x88] sm:$0xf] }
 0x3eb   :  { %1256 = vmin.xlane.f32.xlu0 %v1255_v39  ;;  %v4417_v39 = vld [vmem:[%s6964_s4 + $0xcc] sm:$0xf] }
 0x3ed   :  { %1851 = vmatpush.bf16.msrb.mxu0 %v3791_v33  ;;  %v3760_v33 = vld [vmem:[%s6964_s4 + $0x70] sm:$0xf0] }
 0x3f1   :  { %v5839_v47 = vpop.f32.mrf.mxu2  ;;  %v5841_v59 = vpop.f32.mrf.mxu3 }
 0x3f2   :  { %v1496_v23 = vpop.f32.mrf.mxu0  ;;  %v1509_v44 = vpop.f32.mrf.mxu1 }
 0x3f3   :  { %v1279_v23 = vperm.slane %v5849_v1, 3 }
 0x3f9   :  { %v1522_v21 = vpop.f32.mrf.mxu2  ;;  %v1535_v62 = vpop.f32.mrf.mxu3 }
 0x3fa   :  { %v3815_v21 = vor.u32 %v4419_v45, %v3814_v19  ;;  %v3816_v62 = vld [vmem:[%s6964_s4 + $0xd8] sm:$0xf0]  ;;  %v4409_v19 = vld [vmem:[%s6964_s4 + $0x8c] sm:$0xf] }
 0x3fb   :  { %v3819_v52 = vor.u32 %v4417_v39, %v3816_v62  ;;  %v3779_v62 = vor.u32 %v4408_v34, %v3776_v46  ;;  %v3742_v34 = vld [vmem:[%s6964_s4 + $0x40] sm:$0xf] }
 0x3fc   :  { %1876 = vmatpush.bf16.msrb.mxu2 %v3815_v21  ;;  %v3784_v21 = vld [vmem:[%s6964_s4 + $0x98] sm:$0xf0] }
 0x3fd   :  { %1889 = vmatpush.bf16.msra.mxu3 %v3819_v52  ;;  %v3758_v52 = vld [vmem:[%s6964_s4 + $0x60] sm:$0xf] }
 0x400   :  { %1877 = vmatpush.bf16.msrb.mxu2 %v3799_v40  ;;  %v4405_v40 = vld [vmem:[%s6964_s4 + $0x6c] sm:$0xf] }
 0x401   :  { %1890 = vmatpush.bf16.msra.mxu3 %v3803_v16 }
 0x45e   :  { %v5843_v27 = vpop.xlane.xlu0 %1256 }
 0x45f   :  { %4594 = vrsqrt.f32 %v5843_v27  ;;  %vm1265_vm10 = vcmp.eq.f32.partialorder %v5843_v27, inf  ;;  %vm1267_vm11 = vcmp.eq.f32.partialorder %v5843_v27, 0.0  ;;  %v1268_v39 = vand.u32 2147483648, %v5843_v27 }
 0x465   :  { %v4595_v30 = vpop.eup %4594 }
 0x466   :  { %v1259_v56 = vmul.f32 %v4595_v30, %v5843_v27 }
 0x468   :  { %v1260_v51 = vmul.f32 %v4595_v30, %v1259_v56  ;;  %v4412_v56 = vld [vmem:[%s6964_s4 + $0xa4] sm:$0xf] }
 0x469   :  { %v3795_v38 = vor.u32 %v4412_v56, %v3792_v58  ;;  %v4404_v56 = vld [vmem:[%s6964_s4 + $0x64] sm:$0xf] }
 0x46a   :  { %v1261_v44 = vmul.f32 0.5, %v1260_v51  ;;  %v3774_v51 = vld [vmem:[%s6964_s4 + $0x80] sm:$0xf]  ;;  %v3763_v16 = vor.u32 %v4404_v56, %v3760_v33  ;;  %v3734_v56 = vld [vmem:[%s6964_s4 + $0x28] sm:$0xf] }
 0x46b   :  { %1864 = vmatpush.bf16.msrb.mxu1 %v3795_v38 }
 0x46c   :  { %v1262_v43 = vsub.f32 1.5, %v1261_v44  ;;  %v3775_v44 = vor.u32 %v4410_v5, %v3774_v51  ;;  %v3767_v5 = vor.u32 %v4407_v29, %v3766_v28 }
 0x46e   :  { %v1263_v36 = vmul.f32 %v4595_v30, %v1262_v43  ;;  %v4411_v30 = vld [vmem:[%s6964_s4 + $0x94] sm:$0xf0]  ;;  %v3787_v43 = vor.u32 %v4409_v19, %v3784_v21  ;;  %1852 = vmatpush.bf16.msrb.mxu0 %v3775_v44  ;;  %v3744_v19 = vld [vmem:[%s6964_s4 + $0x50] sm:$0xf0] }
 0x46f   :  { %v3783_v32 = vor.u32 %v4411_v30, %v3782_v18  ;;  %1865 = vmatpush.bf16.msrb.mxu1 %v3779_v62  ;;  %v3771_v30 = vor.u32 %v4405_v40, %v3768_v20  ;;  %v4397_v40 = vld [vmem:[%s6964_s4 + $0x2c] sm:$0xf]  ;;  %v3736_v20 = vld [vmem:[%s6964_s4 + $0x38] sm:$0xf0] }
 0x470   :  { %v1264_v45 = vmul.f32 %v1263_v36, %v5843_v27  ;;  %v3759_v36 = vor.u32 %v4406_v14, %v3758_v52  ;;  %1891 = vmatpush.bf16.msra.mxu3 %v3787_v43  ;;  %v4398_v52 = vld [vmem:[%s6964_s4 + $0x2c] sm:$0xf0]  ;;  %v4396_v14 = vld [vmem:[%s6964_s4 + $0x24] sm:$0xf] }
 0x471   :  { %1878 = vmatpush.bf16.msrb.mxu2 %v3783_v32  ;;  %v3726_v32 = vld [vmem:[%s6964_s4 + $0x20] sm:$0xf] }
 0x472   :  { %v1266_v58 = vsel %vm1265_vm10, %v5843_v27, %v1264_v45  ;;  %v3750_v45 = vld [vmem:[%s6964_s4 + $0x48] sm:$0xf]  ;;  %1853 = vmatpush.bf16.msrb.mxu0 %v3759_v36  ;;  %v3710_v36 = vld [vmem:[%s6964_s4] sm:$0xf] }
 0x473   :  { %v5978_v38 = vsel %vm1267_vm11, %v1268_v39, %v1266_v58  ;;  %v4403_v39 = vld [vmem:[%s6964_s4 + $0x54] sm:$0xf0]  ;;  %1866 = vmatpush.bf16.msrb.mxu1 %v3763_v16  ;;  %v4394_v16 = vld [vmem:[%s6964_s4 + $0xc] sm:$0xf0] }
 0x474   :  { %v1284_v24 = vmul.f32 %v1276_v54, %v5978_v38  ;;  %v1285_v51 = vmul.f32 %v1277_v35, %v5978_v38  ;;  %v1287_v27 = vmul.f32 %v1279_v23, %v5978_v38  ;;  %v4402_v54 = vld [vmem:[%s6964_s4 + $0x4c] sm:$0xf0]  ;;  %v4400_v35 = vld [vmem:[%s6964_s4 + $0x44] sm:$0xf]  ;;  %v4399_v58 = vld [vmem:[%s6964_s4 + $0x34] sm:$0xf0]  ;;  %1892 = vmatpush.bf16.msra.mxu3 %v3771_v30 }
 0x475   :  { %v3743_v62 = vor.u32 %v4402_v54, %v3742_v34  ;;  %1879 = vmatpush.bf16.msrb.mxu2 %v3767_v5  ;;  %v4392_v5 = vld [vmem:[%s6964_s4 + $0x4] sm:$0xf]  ;;  %v3739_v34 = vor.u32 %v4397_v40, %v3736_v20  ;;  %v3712_v54 = vld [vmem:[%s6964_s4 + $0x10] sm:$0xf0]  ;;  %v3720_v30 = vld [vmem:[%s6964_s4 + $0x18] sm:$0xf0] }
 0x476   :  { %v1288_v23 = vadd.f32 %v1284_v24, %v5080_v42  ;;  %v1289_v46 = vadd.f32 %v1285_v51, %v5263_v60  ;;  %v1291_v18 = vadd.f32 %v1287_v27, %v5267_v0  ;;  %v4401_v42 = vld [vmem:[%s6964_s4 + $0x4c] sm:$0xf]  ;;  %v3752_v60 = vld [vmem:[%s6964_s4 + $0x58] sm:$0xf0]  ;;  %v3727_v24 = vor.u32 %v4398_v52, %v3726_v32 }
 0x477   :  { %v3755_v29 = vor.u32 %v4401_v42, %v3752_v60  ;;  %1854 = vmatpush.bf16.msrb.mxu0 %v3743_v62  ;;  %v3735_v27 = vor.u32 %v4399_v58, %v3734_v56 }
 0x478   :  { %v1537_v0 = vadd.f32 %v5835_v22, %v1288_v23  ;;  %v1538_v44 = vadd.f32 %v5837_v57, %v1289_v46  ;;  %v1540_v21 = vadd.f32 %v5841_v59, %v1291_v18  ;;  %v3747_v22 = vor.u32 %v4400_v35, %v3744_v19  ;;  %v3728_v59 = vld [vmem:[%s6964_s4 + $0x30] sm:$0xf0]  ;;  %v3718_v35 = vld [vmem:[%s6964_s4 + $0x8] sm:$0xf]  ;;  %v4395_v23 = vld [vmem:[%s6964_s4 + $0x14] sm:$0xf0] }
 0x479   :  { %v3751_v57 = vor.u32 %v4403_v39, %v3750_v45  ;;  %v3731_v51 = vor.u32 %v4396_v14, %v3728_v59  ;;  %1893 = vmatpush.bf16.msra.mxu3 %v3755_v29  ;;  %v1278_v46 = vperm.slane %v5849_v1, 2  ;;  %v4393_v18 = vld [vmem:[%s6964_s4 + $0xc] sm:$0xf]  ;;  %v3711_v19 = vor.u32 %v4394_v16, %v3710_v36 }
 0x47a   :  { %v3705_v43 = vmul.f32 -1.442695, %v1537_v0  ;;  %v3706_v33 = vmul.f32 -1.442695, %v1538_v44  ;;  %v3707_v28 = vmul.f32 -1.442695, %v1540_v21  ;;  %1867 = vmatpush.bf16.msrb.mxu1 %v3747_v22  ;;  %v3715_v45 = vor.u32 %v4392_v5, %v3712_v54 }
 0x47b   :  { %1880 = vmatpush.bf16.msrb.mxu2 %v3751_v57  ;;  %1855 = vmatpush.bf16.msrb.mxu0 %v3727_v24  ;;  %v3719_v39 = vor.u32 %v4395_v23, %v3718_v35  ;;  %v3723_v60 = vor.u32 %v4393_v18, %v3720_v30  ;;  %v1286_v1 = vmul.f32 %v1278_v46, %v5978_v38 }
 0x47c   :  { %4596 = vpow2.f32 %v3705_v43 }
 0x47d   :  { %4598 = vpow2.f32 %v3706_v33  ;;  %1894 = vmatpush.bf16.msra.mxu3 %v3739_v34  ;;  %v1290_v52 = vadd.f32 %v1286_v1, %v5265_v61 }
 0x47e   :  { %4600 = vpow2.f32 %v3707_v28  ;;  %1868 = vmatpush.bf16.msrb.mxu1 %v3731_v51 }
 0x47f   :  { %1881 = vmatpush.bf16.msrb.mxu2 %v3735_v27  ;;  %1856 = vmatpush.bf16.msrb.mxu0 %v3711_v19  ;;  %v1539_v22 = vadd.f32 %v5839_v47, %v1290_v52 }
 0x481   :  { %1895 = vmatpush.bf16.msra.mxu3 %v3723_v60 }
 0x482   :  { %v4597_v42 = vpop.eup %4596  ;;  %1869 = vmatpush.bf16.msrb.mxu1 %v3715_v45 }
 0x483   :  { %v4599_v0 = vpop.eup %4598  ;;  %v1544_v44 = vadd.f32 1.0, %v4597_v42  ;;  %1882 = vmatpush.bf16.msrb.mxu2 %v3719_v39 }
 0x484   :  { %v4601_v21 = vpop.eup %4600  ;;  %v1563_v62 = vadd.f32 1.0, %v4599_v0 }
 0x485   :  { %4602 = vrcp.f32 %v1544_v44  ;;  %v1583_v32 = vadd.f32 1.0, %v4601_v21  ;;  %v1556_v33 = vand.u32 2147483648, %v1544_v44  ;;  %v1554_v40 = vand.u32 2147483647, %v1544_v44 }
 0x486   :  { %4604 = vrcp.f32 %v1563_v62  ;;  %v1575_v20 = vand.u32 2147483648, %v1563_v62  ;;  %v1573_v61 = vand.u32 2147483647, %v1563_v62  ;;  %vm1550_vm14 = vweird.f32 %v1544_v44 }
 0x487   :  { %4606 = vrcp.f32 %v1583_v32  ;;  %v1557_v47 = vor.u32 1.1754944e-38, %v1556_v33  ;;  %vm1569_vm0 = vweird.f32 %v1563_v62  ;;  %vm1555_vm1 = vcmp.eq.f32.partialorder %v1554_v40, 8.507059e+37 }
 0x488   :  { %4608 = vtanh.f32 %v1539_v22  ;;  %v1576_v5 = vor.u32 1.1754944e-38, %v1575_v20  ;;  %vm1574_vm3 = vcmp.eq.f32.partialorder %v1573_v61, 8.507059e+37  ;;  %v1595_v39 = vand.u32 2147483648, %v1583_v32  ;;  %v1613_v22 = vld [vmem:[%s6961_s1 + $0x20] sm:$0xff] }
 0x489   :  { %vm1589_vm5 = vweird.f32 %v1583_v32  ;;  %v1593_v42 = vand.u32 2147483647, %v1583_v32 }
 0x48a   :  { %v1596_v0 = vor.u32 1.1754944e-38, %v1595_v39  ;;  %v3961_v39 = vld [vmem:[%s6964_s4 + $0xe8] sm:$0xf] }
 0x48b   :  { %v4603_v14 = vpop.eup %4602  ;;  %vm1594_vm7 = vcmp.eq.f32.partialorder %v1593_v42, 8.507059e+37  ;;  %v4455_v42 = vld [vmem:[%s6964_s4 + $0xf4] sm:$0xf0] }
 0x48c   :  { %v4605_v57 = vpop.eup %4604  ;;  %v1546_v59 = vmul.f32 %v4603_v14, %v1544_v44  ;;  %vm1551_vm12 = vweird.f32 %v4603_v14 }
 0x48d   :  { %v4607_v56 = vpop.eup %4606  ;;  %v1565_v38 = vmul.f32 %v4605_v57, %v1563_v62  ;;  %vm1570_vm13 = vweird.f32 %v4605_v57  ;;  %vm1552_vm15 = vmor %vm1550_vm14, %vm1551_vm12 }
 0x48e   :  { %v1547_v58 = vsub.f32 1.0, %v1546_v59  ;;  %v1585_v43 = vmul.f32 %v4607_v56, %v1583_v32  ;;  %vm1571_vm2 = vmor %vm1569_vm0, %vm1570_vm13  ;;  %v4609_v34 = vpop.eup %4608  ;;  %vm1590_vm4 = vweird.f32 %v4607_v56  ;;  %v1615_v32 = vld [vmem:[%s6962_s2 + $0x20] sm:$0xff] }
 0x48f   :  { %v1566_v28 = vsub.f32 1.0, %v1565_v38  ;;  %vm1591_vm6 = vmor %vm1589_vm5, %vm1590_vm4 }
 0x490   :  { %v1548_v29 = vmul.f32 %v4603_v14, %v1547_v58  ;;  %v1586_v27 = vsub.f32 1.0, %v1585_v43 }
 0x491   :  { %v1567_v24 = vmul.f32 %v4605_v57, %v1566_v28 }
 0x492   :  { %v1549_v51 = vadd.f32 %v4603_v14, %v1548_v29  ;;  %v1587_v46 = vmul.f32 %v4607_v56, %v1586_v27 }
 0x493   :  { %v1568_v36 = vadd.f32 %v4605_v57, %v1567_v24 }
 0x494   :  { %v1553_v16 = vsel %vm1552_vm15, %v4603_v14, %v1549_v51  ;;  %v1588_v45 = vadd.f32 %v4607_v56, %v1587_v46  ;;  %v4452_v46 = vld [vmem:[%s6964_s4 + $0xe4] sm:$0xf] }
 0x495   :  { %v1558_v54 = vsel %vm1555_vm1, %v1557_v47, %v1553_v16  ;;  %v1572_v35 = vsel %vm1571_vm2, %v4605_v57, %v1568_v36  ;;  %v6109_v16 = vld [vmem:[%s6965_s5] sm:$0xf] }
 0x496   :  { %v1577_v23 = vsel %vm1574_vm3, %v1576_v5, %v1572_v35  ;;  %v1600_v18 = vmul.f32 %v4609_v34, %v1558_v54  ;;  %v1592_v60 = vsel %vm1591_vm6, %v4607_v56, %v1588_v45  ;;  %v1640_v5 = vperm.slane %v6109_v16, 0  ;;  %v3953_v35 = vld [vmem:[%s6964_s4 + $0xe0] sm:$0xf]  ;;  %v3955_v45 = vld [vmem:[%s6964_s4 + $0xf0] sm:$0xf0] }
 0x497   :  { %v1599_v30 = vmul.f32 %v1577_v23, %v5806_v53  ;;  %v1597_v44 = vsel %vm1594_vm7, %v1596_v0, %v1592_v60  ;;  %v1641_v34 = vperm.slane %v6109_v16, 1  ;;  %v4454_v23 = vld [vmem:[%s6964_s4 + $0xec] sm:$0xf0]  ;;  %v3958_v60 = vor.u32 %v4452_v46, %v3955_v45  ;;  %v4447_v45 = vld [vmem:[%s6964_s4 + $0xb4] sm:$0xf0] }
 0x498   :  { %v3962_v0 = vor.u32 %v4455_v42, %v3961_v39 }
 0x499   :  { %v6076_v19 = vadd.f32 %v1600_v18, %v1599_v30  ;;  %v3954_v30 = vor.u32 %v4454_v23, %v3953_v35  ;;  %2226 = vmatpush.bf16.msra.mxu1 %v3958_v60  ;;  %v4444_v35 = vld [vmem:[%s6964_s4 + $0xa4] sm:$0xf]  ;;  %v3923_v23 = vld [vmem:[%s6964_s4 + $0xb0] sm:$0xf0]  ;;  %v4445_v60 = vld [vmem:[%s6964_s4 + $0xac] sm:$0xf] }
 0x49a   :  { %2239 = vmatpush.bf16.msra.mxu2 %v3962_v0  ;;  %v3926_v39 = vor.u32 %v4444_v35, %v3923_v23  ;;  %v3931_v0 = vld [vmem:[%s6964_s4 + $0xb8] sm:$0xf0]  ;;  %v3891_v35 = vld [vmem:[%s6964_s4 + $0x70] sm:$0xf0]  ;;  %v3897_v23 = vld [vmem:[%s6964_s4 + $0x68] sm:$0xf] }
 0x49b   :  { %4610 = vtanh.f32 %v6076_v19  ;;  %2213 = vmatpush.bf16.msra.mxu0 %v3954_v30  ;;  %v3929_v30 = vld [vmem:[%s6964_s4 + $0xa8] sm:$0xf] }
 0x49c   :  { %v3930_v42 = vor.u32 %v4447_v45, %v3929_v30  ;;  %v4437_v30 = vld [vmem:[%s6964_s4 + $0x6c] sm:$0xf]  ;;  %v3899_v45 = vld [vmem:[%s6964_s4 + $0x78] sm:$0xf0] }
 0x4a1   :  { %v4611_v1 = vpop.eup %4610 }
 0x4a2   :  { %v6079_v21 = vmul.f32 %v4611_v1, %v1597_v44  ;;  %v4453_v1 = vld [vmem:[%s6964_s4 + $0xec] sm:$0xf]  ;;  %v3963_v44 = vld [vmem:[%s6964_s4 + $0xf8] sm:$0xf0] }
 0x4a4   :  { %v1656_v53 = vpack.c.bf16 %v6079_v21, %v6079_v21  ;;  %v1609_v62 = vmul.f32 %v5816_v50, %v6079_v21  ;;  %v1605_v52 = vmul.f32 %v5823_v49, %v6079_v21 }
 0x4a6   :  { %1857 = vmatmul.bf16.vlgmr.msrb.gmra.mxu0 %v1656_v53  ;;  %1870 = vmatmul.bf16.vlgmr.msrb.gmra.mxu1 %v1656_v53 }
 0x4a7   :  { %1883 = vmatmul.bf16.vlgmr.msrb.gmra.mxu2 %v1656_v53  ;;  %1896 = vmatmul.bf16.vlgmr.msra.gmra.mxu3 %v1656_v53  ;;  %v3937_v53 = vld [vmem:[%s6964_s4 + $0xc0] sm:$0xf] }
 0x4a8   :  { %1610 = vadd.xlane.f32.xlu2 %v1609_v62  ;;  %1606 = vadd.xlane.f32.xlu1 %v1605_v52  ;;  %v3966_v52 = vor.u32 %v4453_v1, %v3963_v44  ;;  %v3905_v1 = vld [vmem:[%s6964_s4 + $0x80] sm:$0xf] }
 0x4aa   :  { %2252 = vmatpush.bf16.msrb.mxu3 %v3966_v52  ;;  %v4440_v52 = vld [vmem:[%s6964_s4 + $0x84] sm:$0xf] }
 0x51b   :  { %v1611_v14 = vpop.xlane.xlu2 %1610  ;;  %v1607_v57 = vpop.xlane.xlu1 %1606 }
 0x51c   :  { %v1612_v59 = vadd.f32 %v1611_v14, %v5287_v12  ;;  %v1608_v56 = vadd.f32 %v1607_v57, %v5289_v13  ;;  %v4448_v14 = vld [vmem:[%s6964_s4 + $0xc4] sm:$0xf] }
 0x51e   :  { %v1616_v38 = vsub.f32 %v1615_v32, %v1612_v59  ;;  %v1614_v58 = vsub.f32 %v1613_v22, %v1608_v56  ;;  %v4450_v32 = vld [vmem:[%s6964_s4 + $0xcc] sm:$0xf0]  ;;  %v3939_v22 = vld [vmem:[%s6964_s4 + $0xd0] sm:$0xf0]  ;;  %v3945_v56 = vld [vmem:[%s6964_s4 + $0xc8] sm:$0xf] }
 0x51f   :  { %v3938_v57 = vor.u32 %v4450_v32, %v3937_v53  ;;  %v3942_v59 = vor.u32 %v4448_v14, %v3939_v22  ;;  %v3934_v53 = vor.u32 %v4445_v60, %v3931_v0  ;;  %v3907_v32 = vld [vmem:[%s6964_s4 + $0x90] sm:$0xf0]  ;;  %v3913_v14 = vld [vmem:[%s6964_s4 + $0x88] sm:$0xf]  ;;  %v4441_v22 = vld [vmem:[%s6964_s4 + $0x8c] sm:$0xf] }
 0x520   :  { %v1618_v43 = vmul.f32 %v1616_v38, %v1616_v38  ;;  %v1617_v33 = vmul.f32 %v1614_v58, %v1614_v58  ;;  %v4451_v38 = vld [vmem:[%s6964_s4 + $0xd4] sm:$0xf0]  ;;  %v4449_v58 = vld [vmem:[%s6964_s4 + $0xcc] sm:$0xf] }
 0x521   :  { %2214 = vmatpush.bf16.msra.mxu0 %v3938_v57  ;;  %2227 = vmatpush.bf16.msra.mxu1 %v3942_v59 }
 0x522   :  { %v1619_v28 = vadd.f32 %v1618_v43, %v1617_v33  ;;  %v1643_v43 = vperm.slane %v6109_v16, 3 }
 0x523   :  { %v6095_v29 = vpop.f32.mrf.mxu0  ;;  %v6097_v40 = vpop.f32.mrf.mxu1 }
 0x524   :  { %1620 = vmin.xlane.f32.xlu0 %v1619_v28  ;;  %v3946_v28 = vor.u32 %v4451_v38, %v3945_v56  ;;  %v3915_v38 = vld [vmem:[%s6964_s4 + $0x98] sm:$0xf0] }
 0x525   :  { %2228 = vmatpush.bf16.msra.mxu1 %v3926_v39 }
 0x526   :  { %2240 = vmatpush.bf16.msra.mxu2 %v3946_v28  ;;  %v3889_v28 = vld [vmem:[%s6964_s4 + $0x60] sm:$0xf] }
 0x52a   :  { %v6099_v20 = vpop.f32.mrf.mxu2  ;;  %v6101_v24 = vpop.f32.mrf.mxu3  ;;  %2241 = vmatpush.bf16.msra.mxu2 %v3930_v42 }
 0x52b   :  { %v1860_v61 = vpop.f32.mrf.mxu0  ;;  %v1873_v51 = vpop.f32.mrf.mxu1 }
 0x52c   :  { %v3947_v61 = vld [vmem:[%s6964_s4 + $0xd8] sm:$0xf0]  ;;  %v3921_v51 = vld [vmem:[%s6964_s4 + $0xa0] sm:$0xf] }
 0x532   :  { %v1886_v27 = vpop.f32.mrf.mxu2  ;;  %v1899_v47 = vpop.f32.mrf.mxu3 }
 0x533   :  { %v3950_v27 = vor.u32 %v4449_v58, %v3947_v61  ;;  %v4446_v47 = vld [vmem:[%s6964_s4 + $0xac] sm:$0xf0]  ;;  %v3910_v58 = vor.u32 %v4440_v52, %v3907_v32  ;;  %v3902_v52 = vor.u32 %v4437_v30, %v3899_v45  ;;  %v3875_v32 = vld [vmem:[%s6964_s4 + $0x50] sm:$0xf0] }
 0x534   :  { %v4438_v61 = vld [vmem:[%s6964_s4 + $0x6c] sm:$0xf0] }
 0x535   :  { %2253 = vmatpush.bf16.msrb.mxu3 %v3950_v27  ;;  %v3890_v60 = vor.u32 %v4438_v61, %v3889_v28  ;;  %2229 = vmatpush.bf16.msra.mxu1 %v3910_v58  ;;  %v4428_v58 = vld [vmem:[%s6964_s4 + $0x24] sm:$0xf]  ;;  %v4431_v28 = vld [vmem:[%s6964_s4 + $0x34] sm:$0xf0] }
 0x539   :  { %2254 = vmatpush.bf16.msrb.mxu3 %v3934_v53 }
 0x597   :  { %v6103_v36 = vpop.xlane.xlu0 %1620 }
 0x598   :  { %4612 = vrsqrt.f32 %v6103_v36  ;;  %vm1629_vm8 = vcmp.eq.f32.partialorder %v6103_v36, inf  ;;  %vm1631_vm9 = vcmp.eq.f32.partialorder %v6103_v36, 0.0  ;;  %v1632_v59 = vand.u32 2147483648, %v6103_v36 }
 0x59e   :  { %v4613_v54 = vpop.eup %4612 }
 0x59f   :  { %v1623_v18 = vmul.f32 %v4613_v54, %v6103_v36 }
 0x5a1   :  { %v1624_v62 = vmul.f32 %v4613_v54, %v1623_v18  ;;  %v3922_v18 = vor.u32 %v4446_v47, %v3921_v51  ;;  %v4436_v51 = vld [vmem:[%s6964_s4 + $0x64] sm:$0xf]  ;;  %v3918_v47 = vor.u32 %v4441_v22, %v3915_v38  ;;  %v4430_v38 = vld [vmem:[%s6964_s4 + $0x2c] sm:$0xf0] }
 0x5a2   :  { %v3894_v0 = vor.u32 %v4436_v51, %v3891_v35  ;;  %v4429_v35 = vld [vmem:[%s6964_s4 + $0x2c] sm:$0xf] }
 0x5a3   :  { %v1625_v33 = vmul.f32 0.5, %v1624_v62  ;;  %v4442_v62 = vld [vmem:[%s6964_s4 + $0x8c] sm:$0xf0]  ;;  %2215 = vmatpush.bf16.msra.mxu0 %v3922_v18  ;;  %2255 = vmatpush.bf16.msrb.mxu3 %v3918_v47 }
 0x5a4   :  { %v3906_v56 = vor.u32 %v4442_v62, %v3905_v1  ;;  %2230 = vmatpush.bf16.msra.mxu1 %v3894_v0  ;;  %v3843_v0 = vld [vmem:[%s6964_s4 + $0x10] sm:$0xf0] }
 0x5a5   :  { %v1626_v46 = vsub.f32 1.5, %v1625_v33 }
 0x5a7   :  { %v1627_v44 = vmul.f32 %v4613_v54, %v1626_v46  ;;  %v4443_v54 = vld [vmem:[%s6964_s4 + $0x94] sm:$0xf0]  ;;  %2216 = vmatpush.bf16.msra.mxu0 %v3906_v56  ;;  %v3857_v56 = vld [vmem:[%s6964_s4 + $0x20] sm:$0xf]  ;;  %2256 = vmatpush.bf16.msrb.mxu3 %v3902_v52 }
 0x5a8   :  { %v3914_v33 = vor.u32 %v4443_v54, %v3913_v14  ;;  %v4439_v46 = vld [vmem:[%s6964_s4 + $0x74] sm:$0xf0]  ;;  %v3881_v14 = vld [vmem:[%s6964_s4 + $0x48] sm:$0xf] }
 0x5a9   :  { %v1628_v57 = vmul.f32 %v1627_v44, %v6103_v36  ;;  %v3898_v1 = vor.u32 %v4439_v46, %v3897_v23  ;;  %v3873_v44 = vld [vmem:[%s6964_s4 + $0x40] sm:$0xf]  ;;  %v4435_v54 = vld [vmem:[%s6964_s4 + $0x54] sm:$0xf0]  ;;  %v3867_v23 = vld [vmem:[%s6964_s4 + $0x38] sm:$0xf0]  ;;  %v3858_v46 = vor.u32 %v4430_v38, %v3857_v56 }
 0x5aa   :  { %2242 = vmatpush.bf16.msra.mxu2 %v3914_v33  ;;  %v3865_v33 = vld [vmem:[%s6964_s4 + $0x28] sm:$0xf] }
 0x5ab   :  { %v1630_v27 = vsel %vm1629_vm8, %v6103_v36, %v1628_v57  ;;  %2217 = vmatpush.bf16.msra.mxu0 %v3890_v60  ;;  %v3866_v45 = vor.u32 %v4431_v28, %v3865_v33  ;;  %v3870_v60 = vor.u32 %v4429_v35, %v3867_v23 }
 0x5ac   :  { %v6238_v18 = vsel %vm1631_vm9, %v1632_v59, %v1630_v27 }
 0x5ad   :  { %v1648_v39 = vmul.f32 %v1640_v5, %v6238_v18  ;;  %v1649_v42 = vmul.f32 %v1641_v34, %v6238_v18  ;;  %v1651_v36 = vmul.f32 %v1643_v43, %v6238_v18  ;;  %v4434_v5 = vld [vmem:[%s6964_s4 + $0x4c] sm:$0xf0]  ;;  %v4432_v34 = vld [vmem:[%s6964_s4 + $0x44] sm:$0xf] }
 0x5ae   :  { %v3874_v59 = vor.u32 %v4434_v5, %v3873_v44  ;;  %2243 = vmatpush.bf16.msra.mxu2 %v3898_v1  ;;  %v3849_v1 = vld [vmem:[%s6964_s4 + $0x8] sm:$0xf]  ;;  %v4427_v44 = vld [vmem:[%s6964_s4 + $0x14] sm:$0xf0]  ;;  %v1642_v5 = vperm.slane %v6109_v16, 2 }
 0x5af   :  { %v1652_v43 = vadd.f32 %v1648_v39, %v5003_v63  ;;  %v1653_v53 = vadd.f32 %v1649_v42, %v5269_v2  ;;  %v1655_v62 = vadd.f32 %v1651_v36, %v5273_v4  ;;  %v4433_v63 = vld [vmem:[%s6964_s4 + $0x4c] sm:$0xf]  ;;  %v3883_v2 = vld [vmem:[%s6964_s4 + $0x58] sm:$0xf0]  ;;  %v3841_v39 = vld [vmem:[%s6964_s4] sm:$0xf]  ;;  %v3850_v52 = vor.u32 %v4427_v44, %v3849_v1 }
 0x5b0   :  { %v3886_v47 = vor.u32 %v4433_v63, %v3883_v2  ;;  %2218 = vmatpush.bf16.msra.mxu0 %v3874_v59  ;;  %v4426_v42 = vld [vmem:[%s6964_s4 + $0xc] sm:$0xf0]  ;;  %v4424_v36 = vld [vmem:[%s6964_s4 + $0x4] sm:$0xf]  ;;  %v1650_v16 = vmul.f32 %v1642_v5, %v6238_v18 }
 0x5b1   :  { %v1901_v4 = vadd.f32 %v6095_v29, %v1652_v43  ;;  %v1902_v22 = vadd.f32 %v6097_v40, %v1653_v53  ;;  %v1904_v57 = vadd.f32 %v6101_v24, %v1655_v62  ;;  %v3878_v29 = vor.u32 %v4432_v34, %v3875_v32  ;;  %v3859_v24 = vld [vmem:[%s6964_s4 + $0x30] sm:$0xf0]  ;;  %v4425_v34 = vld [vmem:[%s6964_s4 + $0xc] sm:$0xf]  ;;  %v3851_v43 = vld [vmem:[%s6964_s4 + $0x18] sm:$0xf0] }
 0x5b2   :  { %v3882_v40 = vor.u32 %v4435_v54, %v3881_v14  ;;  %v3862_v30 = vor.u32 %v4428_v58, %v3859_v24  ;;  %2257 = vmatpush.bf16.msrb.mxu3 %v3886_v47  ;;  %v3842_v53 = vor.u32 %v4426_v42, %v3841_v39  ;;  %v3846_v62 = vor.u32 %v4424_v36, %v3843_v0 }
 0x5b3   :  { %v3836_v61 = vmul.f32 -1.442695, %v1901_v4  ;;  %v3837_v51 = vmul.f32 -1.442695, %v1902_v22  ;;  %v3838_v27 = vmul.f32 -1.442695, %v1904_v57  ;;  %2231 = vmatpush.bf16.msra.mxu1 %v3878_v29  ;;  %v3854_v14 = vor.u32 %v4425_v34, %v3851_v43 }
 0x5b4   :  { %2244 = vmatpush.bf16.msra.mxu2 %v3882_v40  ;;  %2219 = vmatpush.bf16.msra.mxu0 %v3858_v46  ;;  %v1654_v57 = vadd.f32 %v1650_v16, %v5271_v3 }
 0x5b5   :  { %4614 = vpow2.f32 %v3836_v61 }
 0x5b6   :  { %4616 = vpow2.f32 %v3837_v51  ;;  %2258 = vmatpush.bf16.msrb.mxu3 %v3870_v60  ;;  %v1903_v56 = vadd.f32 %v6099_v20, %v1654_v57 }
 0x5b7   :  { %4618 = vpow2.f32 %v3838_v27  ;;  %2232 = vmatpush.bf16.msra.mxu1 %v3862_v30 }
 0x5b8   :  { %2245 = vmatpush.bf16.msra.mxu2 %v3866_v45  ;;  %2220 = vmatpush.bf16.msra.mxu0 %v3842_v53 }
 0x5ba   :  { %2259 = vmatpush.bf16.msrb.mxu3 %v3854_v14 }
 0x5bb   :  { %v4615_v32 = vpop.eup %4614  ;;  %2233 = vmatpush.bf16.msra.mxu1 %v3846_v62 }
 0x5bc   :  { %v4617_v54 = vpop.eup %4616  ;;  %v1908_v63 = vadd.f32 1.0, %v4615_v32  ;;  %2246 = vmatpush.bf16.msra.mxu2 %v3850_v52 }
 0x5bd   :  { %v4619_v2 = vpop.eup %4618  ;;  %v1927_v4 = vadd.f32 1.0, %v4617_v54 }
 0x5be   :  { %4620 = vrcp.f32 %v1908_v63  ;;  %v1947_v22 = vadd.f32 1.0, %v4619_v2  ;;  %v1920_v33 = vand.u32 2147483648, %v1908_v63  ;;  %v1918_v51 = vand.u32 2147483647, %v1908_v63  ;;  %v1979_v2 = vld [vmem:[%s6962_s2 + $0x28] sm:$0xff] }
 0x5bf   :  { %4622 = vrcp.f32 %v1927_v4  ;;  %v1939_v27 = vand.u32 2147483648, %v1927_v4  ;;  %v1937_v3 = vand.u32 2147483647, %v1927_v4  ;;  %vm1914_vm12 = vweird.f32 %v1908_v63 }
 0x5c0   :  { %4624 = vrcp.f32 %v1947_v22  ;;  %v1921_v20 = vor.u32 1.1754944e-38, %v1920_v33  ;;  %vm1933_vm14 = vweird.f32 %v1927_v4  ;;  %vm1919_vm15 = vcmp.eq.f32.partialorder %v1918_v51, 8.507059e+37 }
 0x5c1   :  { %4626 = vtanh.f32 %v1903_v56  ;;  %v1940_v45 = vor.u32 1.1754944e-38, %v1939_v27  ;;  %vm1938_vm1 = vcmp.eq.f32.partialorder %v1937_v3, 8.507059e+37  ;;  %v1959_v43 = vand.u32 2147483648, %v1947_v22  ;;  %v6369_v3 = vld [vmem:[%s6965_s5] sm:$0xf] }
 0x5c2   :  { %vm1953_vm3 = vweird.f32 %v1947_v22  ;;  %v1957_v53 = vand.u32 2147483647, %v1947_v22 }
 0x5c3   :  { %v1960_v52 = vor.u32 1.1754944e-38, %v1959_v43  ;;  %v4094_v43 = vld [vmem:[%s6964_s4 + $0xf8] sm:$0xf0] }
 0x5c4   :  { %v4621_v59 = vpop.eup %4620  ;;  %vm1958_vm5 = vcmp.eq.f32.partialorder %v1957_v53, 8.507059e+37  ;;  %v4068_v53 = vld [vmem:[%s6964_s4 + $0xc0] sm:$0xf] }
 0x5c5   :  { %v4623_v38 = vpop.eup %4622  ;;  %v1910_v58 = vmul.f32 %v4621_v59, %v1908_v63  ;;  %vm1915_vm10 = vweird.f32 %v4621_v59 }
 0x5c6   :  { %v4625_v29 = vpop.eup %4624  ;;  %v1929_v18 = vmul.f32 %v4623_v38, %v1927_v4  ;;  %vm1934_vm11 = vweird.f32 %v4623_v38  ;;  %vm1916_vm13 = vmor %vm1914_vm12, %vm1915_vm10 }
 0x5c7   :  { %v1911_v40 = vsub.f32 1.0, %v1910_v58  ;;  %v1949_v24 = vmul.f32 %v4625_v29, %v1947_v22  ;;  %vm1935_vm0 = vmor %vm1933_vm14, %vm1934_vm11  ;;  %v4627_v39 = vpop.eup %4626  ;;  %vm1954_vm2 = vweird.f32 %v4625_v29  ;;  %v1977_v22 = vld [vmem:[%s6961_s1 + $0x28] sm:$0xff] }
 0x5c8   :  { %v1930_v28 = vsub.f32 1.0, %v1929_v18  ;;  %vm1955_vm4 = vmor %vm1953_vm3, %vm1954_vm2 }
 0x5c9   :  { %v1912_v61 = vmul.f32 %v4621_v59, %v1911_v40  ;;  %v1950_v23 = vsub.f32 1.0, %v1949_v24 }
 0x5ca   :  { %v1931_v47 = vmul.f32 %v4623_v38, %v1930_v28 }
 0x5cb   :  { %v1913_v35 = vadd.f32 %v4621_v59, %v1912_v61  ;;  %v1951_v0 = vmul.f32 %v4625_v29, %v1950_v23  ;;  %v2005_v23 = vperm.slane %v6369_v3, 1 }
 0x5cc   :  { %v1932_v46 = vadd.f32 %v4623_v38, %v1931_v47 }
 0x5cd   :  { %v1917_v30 = vsel %vm1916_vm13, %v4621_v59, %v1913_v35  ;;  %v1952_v34 = vadd.f32 %v4625_v29, %v1951_v0  ;;  %v2004_v35 = vperm.slane %v6369_v3, 0  ;;  %v4487_v0 = vld [vmem:[%s6964_s4 + $0xf4] sm:$0xf0] }
 0x5ce   :  { %v1922_v42 = vsel %vm1919_vm15, %v1921_v20, %v1917_v30  ;;  %v1936_v36 = vsel %vm1935_vm0, %v4623_v38, %v1932_v46  ;;  %v4084_v46 = vld [vmem:[%s6964_s4 + $0xe0] sm:$0xf]  ;;  %v4486_v30 = vld [vmem:[%s6964_s4 + $0xec] sm:$0xf0] }
 0x5cf   :  { %v1941_v60 = vsel %vm1938_vm1, %v1940_v45, %v1936_v36  ;;  %v1964_v1 = vmul.f32 %v4627_v39, %v1922_v42  ;;  %v1956_v62 = vsel %vm1955_vm4, %v4625_v29, %v1952_v34  ;;  %v4484_v45 = vld [vmem:[%s6964_s4 + $0xe4] sm:$0xf]  ;;  %v4085_v42 = vor.u32 %v4486_v30, %v4084_v46  ;;  %v4086_v36 = vld [vmem:[%s6964_s4 + $0xf0] sm:$0xf0]  ;;  %v4485_v34 = vld [vmem:[%s6964_s4 + $0xec] sm:$0xf] }
 0x5d0   :  { %v1963_v44 = vmul.f32 %v1941_v60, %v6076_v19  ;;  %v1961_v14 = vsel %vm1958_vm5, %v1960_v52, %v1956_v62  ;;  %v4092_v60 = vld [vmem:[%s6964_s4 + $0xe8] sm:$0xf]  ;;  %v4097_v52 = vor.u32 %v4485_v34, %v4094_v43  ;;  %v4479_v46 = vld [vmem:[%s6964_s4 + $0xb4] sm:$0xf0]  ;;  %v4038_v34 = vld [vmem:[%s6964_s4 + $0x90] sm:$0xf0] }
 0x5d1   :  { %2577 = vmatpush.bf16.msrb.mxu0 %v4085_v42  ;;  %v4062_v42 = vld [vmem:[%s6964_s4 + $0xb8] sm:$0xf0]  ;;  %v4044_v43 = vld [vmem:[%s6964_s4 + $0x88] sm:$0xf] }
 0x5d2   :  { %v6336_v5 = vadd.f32 %v1964_v1, %v1963_v44  ;;  %v4089_v1 = vor.u32 %v4484_v45, %v4086_v36  ;;  %v4093_v44 = vor.u32 %v4487_v0, %v4092_v60  ;;  %2616 = vmatpush.bf16.msra.mxu3 %v4097_v52  ;;  %v4036_v36 = vld [vmem:[%s6964_s4 + $0x80] sm:$0xf] }
 0x5d4   :  { %4628 = vtanh.f32 %v6336_v5  ;;  %2590 = vmatpush.bf16.msrb.mxu1 %v4089_v1  ;;  %2603 = vmatpush.bf16.msrb.mxu2 %v4093_v44  ;;  %v4474_v1 = vld [vmem:[%s6964_s4 + $0x8c] sm:$0xf0]  ;;  %v4472_v44 = vld [vmem:[%s6964_s4 + $0x84] sm:$0xf] }
 0x5da   :  { %v4629_v32 = vpop.eup %4628 }
 0x5db   :  { %v6339_v54 = vmul.f32 %v4629_v32, %v1961_v14  ;;  %v4482_v32 = vld [vmem:[%s6964_s4 + $0xcc] sm:$0xf0]  ;;  %v4480_v14 = vld [vmem:[%s6964_s4 + $0xc4] sm:$0xf] }
 0x5dd   :  { %v2020_v19 = vpack.c.bf16 %v6339_v54, %v6339_v54  ;;  %v1973_v16 = vmul.f32 %v5816_v50, %v6339_v54  ;;  %v1969_v63 = vmul.f32 %v5823_v49, %v6339_v54 }
 0x5df   :  { %2221 = vmatmul.bf16.vlgmr.msra.gmra.mxu0 %v2020_v19  ;;  %2234 = vmatmul.bf16.vlgmr.msra.gmra.mxu1 %v2020_v19 }
 0x5e0   :  { %2247 = vmatmul.bf16.vlgmr.msra.gmra.mxu2 %v2020_v19  ;;  %2260 = vmatmul.bf16.vlgmr.msrb.gmra.mxu3 %v2020_v19  ;;  %v4070_v19 = vld [vmem:[%s6964_s4 + $0xd0] sm:$0xf0] }
 0x5e1   :  { %1974 = vadd.xlane.f32.xlu2 %v1973_v16  ;;  %1970 = vadd.xlane.f32.xlu1 %v1969_v63  ;;  %v4069_v16 = vor.u32 %v4482_v32, %v4068_v53  ;;  %v4073_v63 = vor.u32 %v4480_v14, %v4070_v19  ;;  %v4473_v53 = vld [vmem:[%s6964_s4 + $0x8c] sm:$0xf]  ;;  %v4037_v32 = vor.u32 %v4474_v1, %v4036_v36  ;;  %v4046_v14 = vld [vmem:[%s6964_s4 + $0x98] sm:$0xf0]  ;;  %v4006_v36 = vld [vmem:[%s6964_s4 + $0x50] sm:$0xf0] }
 0x5e2   :  { %v4041_v19 = vor.u32 %v4472_v44, %v4038_v34 }
 0x5e3   :  { %2578 = vmatpush.bf16.msrb.mxu0 %v4069_v16  ;;  %2591 = vmatpush.bf16.msrb.mxu1 %v4073_v63  ;;  %v4020_v63 = vld [vmem:[%s6964_s4 + $0x60] sm:$0xf] }
 0x654   :  { %v1975_v4 = vpop.xlane.xlu2 %1974  ;;  %v1971_v57 = vpop.xlane.xlu1 %1970 }
 0x655   :  { %v1976_v50 = vadd.f32 %v1975_v4, %v5287_v12  ;;  %v1972_v49 = vadd.f32 %v1971_v57, %v5289_v13  ;;  %v4483_v4 = vld [vmem:[%s6964_s4 + $0xd4] sm:$0xf0]  ;;  %v2007_v57 = vperm.slane %v6369_v3, 3 }
 0x657   :  { %v1980_v59 = vsub.f32 %v1979_v2, %v1976_v50  ;;  %v1978_v56 = vsub.f32 %v1977_v22, %v1972_v49  ;;  %v4076_v2 = vld [vmem:[%s6964_s4 + $0xc8] sm:$0xf]  ;;  %v4481_v22 = vld [vmem:[%s6964_s4 + $0xcc] sm:$0xf] }
 0x658   :  { %v4077_v49 = vor.u32 %v4483_v4, %v4076_v2  ;;  %v4470_v2 = vld [vmem:[%s6964_s4 + $0x6c] sm:$0xf0]  ;;  %v4468_v4 = vld [vmem:[%s6964_s4 + $0x64] sm:$0xf] }
 0x659   :  { %v1982_v38 = vmul.f32 %v1980_v59, %v1980_v59  ;;  %v1981_v58 = vmul.f32 %v1978_v56, %v1978_v56  ;;  %v4078_v59 = vld [vmem:[%s6964_s4 + $0xd8] sm:$0xf0]  ;;  %v4052_v56 = vld [vmem:[%s6964_s4 + $0xa0] sm:$0xf] }
 0x65a   :  { %2604 = vmatpush.bf16.msrb.mxu2 %v4077_v49  ;;  %v4022_v49 = vld [vmem:[%s6964_s4 + $0x70] sm:$0xf0] }
 0x65b   :  { %v1983_v29 = vadd.f32 %v1982_v38, %v1981_v58  ;;  %v4081_v38 = vor.u32 %v4481_v22, %v4078_v59  ;;  %v4478_v58 = vld [vmem:[%s6964_s4 + $0xac] sm:$0xf0]  ;;  %v4028_v59 = vld [vmem:[%s6964_s4 + $0x68] sm:$0xf] }
 0x65c   :  { %v6355_v18 = vpop.f32.mrf.mxu0  ;;  %v6357_v40 = vpop.f32.mrf.mxu1 }
 0x65d   :  { %1984 = vmin.xlane.f32.xlu0 %v1983_v29  ;;  %v4476_v29 = vld [vmem:[%s6964_s4 + $0xa4] sm:$0xf]  ;;  %2617 = vmatpush.bf16.msra.mxu3 %v4081_v38 }
 0x663   :  { %v6359_v24 = vpop.f32.mrf.mxu2  ;;  %v6361_v33 = vpop.f32.mrf.mxu3 }
 0x664   :  { %v2224_v28 = vpop.f32.mrf.mxu0  ;;  %v2237_v61 = vpop.f32.mrf.mxu1 }
 0x665   :  { %v4054_v28 = vld [vmem:[%s6964_s4 + $0xb0] sm:$0xf0] }
 0x666   :  { %v4057_v30 = vor.u32 %v4476_v29, %v4054_v28  ;;  %v4030_v29 = vld [vmem:[%s6964_s4 + $0x78] sm:$0xf0] }
 0x668   :  { %2592 = vmatpush.bf16.msrb.mxu1 %v4057_v30  ;;  %v4004_v30 = vld [vmem:[%s6964_s4 + $0x40] sm:$0xf] }
 0x66b   :  { %v2250_v51 = vpop.f32.mrf.mxu2  ;;  %v2263_v27 = vpop.f32.mrf.mxu3 }
 0x66c   :  { %v4053_v51 = vor.u32 %v4478_v58, %v4052_v56  ;;  %v4060_v27 = vld [vmem:[%s6964_s4 + $0xa8] sm:$0xf]  ;;  %v4471_v56 = vld [vmem:[%s6964_s4 + $0x74] sm:$0xf0]  ;;  %v4469_v58 = vld [vmem:[%s6964_s4 + $0x6c] sm:$0xf]  ;;  %2593 = vmatpush.bf16.msrb.mxu1 %v4041_v19 }
 0x66d   :  { %v4061_v45 = vor.u32 %v4479_v46, %v4060_v27  ;;  %v4025_v27 = vor.u32 %v4468_v4, %v4022_v49  ;;  %v4029_v46 = vor.u32 %v4471_v56, %v4028_v59  ;;  %v3972_v49 = vld [vmem:[%s6964_s4] sm:$0xf]  ;;  %v4458_v59 = vld [vmem:[%s6964_s4 + $0xc] sm:$0xf0]  ;;  %v4456_v56 = vld [vmem:[%s6964_s4 + $0x4] sm:$0xf] }
 0x66e   :  { %2579 = vmatpush.bf16.msrb.mxu0 %v4053_v51  ;;  %v4021_v51 = vor.u32 %v4470_v2, %v4020_v63  ;;  %v4461_v63 = vld [vmem:[%s6964_s4 + $0x2c] sm:$0xf]  ;;  %v3998_v2 = vld [vmem:[%s6964_s4 + $0x38] sm:$0xf0] }
 0x66f   :  { %2605 = vmatpush.bf16.msrb.mxu2 %v4061_v45 }
 0x670   :  { %2594 = vmatpush.bf16.msrb.mxu1 %v4025_v27  ;;  %v3982_v27 = vld [vmem:[%s6964_s4 + $0x18] sm:$0xf0] }
 0x672   :  { %2580 = vmatpush.bf16.msrb.mxu0 %v4037_v32 }
 0x676   :  { %2581 = vmatpush.bf16.msrb.mxu0 %v4021_v51  ;;  %v4457_v51 = vld [vmem:[%s6964_s4 + $0xc] sm:$0xf] }
 0x6d0   :  { %v6363_v47 = vpop.xlane.xlu0 %1984 }
 0x6d1   :  { %4630 = vrsqrt.f32 %v6363_v47  ;;  %vm1993_vm6 = vcmp.eq.f32.partialorder %v6363_v47, inf  ;;  %vm1995_vm7 = vcmp.eq.f32.partialorder %v6363_v47, 0.0  ;;  %v1996_v52 = vand.u32 2147483648, %v6363_v47 }
 0x6d7   :  { %v4631_v20 = vpop.eup %4630 }
 0x6d8   :  { %v1987_v39 = vmul.f32 %v4631_v20, %v6363_v47 }
 0x6da   :  { %v1988_v62 = vmul.f32 %v4631_v20, %v1987_v39  ;;  %v4477_v39 = vld [vmem:[%s6964_s4 + $0xac] sm:$0xf] }
 0x6db   :  { %v4065_v0 = vor.u32 %v4477_v39, %v4062_v42  ;;  %v4033_v42 = vor.u32 %v4469_v58, %v4030_v29  ;;  %v4001_v58 = vor.u32 %v4461_v63, %v3998_v2  ;;  %v3974_v29 = vld [vmem:[%s6964_s4 + $0x10] sm:$0xf0] }
 0x6dc   :  { %v1989_v50 = vmul.f32 0.5, %v1988_v62 }
 0x6dd   :  { %2618 = vmatpush.bf16.msra.mxu3 %v4065_v0  ;;  %v4467_v0 = vld [vmem:[%s6964_s4 + $0x54] sm:$0xf0] }
 0x6de   :  { %v1990_v61 = vsub.f32 1.5, %v1989_v50  ;;  %v4049_v50 = vor.u32 %v4473_v53, %v4046_v14  ;;  %v4460_v53 = vld [vmem:[%s6964_s4 + $0x24] sm:$0xf] }
 0x6e0   :  { %v1991_v60 = vmul.f32 %v4631_v20, %v1990_v61  ;;  %v4475_v20 = vld [vmem:[%s6964_s4 + $0x94] sm:$0xf0] }
 0x6e1   :  { %v4045_v16 = vor.u32 %v4475_v20, %v4044_v43  ;;  %2619 = vmatpush.bf16.msra.mxu3 %v4049_v50  ;;  %v3988_v43 = vld [vmem:[%s6964_s4 + $0x20] sm:$0xf]  ;;  %v4462_v20 = vld [vmem:[%s6964_s4 + $0x2c] sm:$0xf0] }
 0x6e2   :  { %v1992_v62 = vmul.f32 %v1991_v60, %v6363_v47  ;;  %v4012_v60 = vld [vmem:[%s6964_s4 + $0x48] sm:$0xf]  ;;  %v3989_v4 = vor.u32 %v4462_v20, %v3988_v43 }
 0x6e3   :  { %2606 = vmatpush.bf16.msrb.mxu2 %v4045_v16 }
 0x6e4   :  { %v1994_v22 = vsel %vm1993_vm6, %v6363_v47, %v1992_v62  ;;  %v3996_v62 = vld [vmem:[%s6964_s4 + $0x28] sm:$0xf] }
 0x6e5   :  { %v6498_v38 = vsel %vm1995_vm7, %v1996_v52, %v1994_v22  ;;  %v4463_v52 = vld [vmem:[%s6964_s4 + $0x34] sm:$0xf0]  ;;  %2620 = vmatpush.bf16.msra.mxu3 %v4033_v42 }
 0x6e6   :  { %v2012_v28 = vmul.f32 %v2004_v35, %v6498_v38  ;;  %v2013_v61 = vmul.f32 %v2005_v23, %v6498_v38  ;;  %v2015_v47 = vmul.f32 %v2007_v57, %v6498_v38  ;;  %v4466_v35 = vld [vmem:[%s6964_s4 + $0x4c] sm:$0xf0]  ;;  %v4464_v23 = vld [vmem:[%s6964_s4 + $0x44] sm:$0xf]  ;;  %v3997_v50 = vor.u32 %v4463_v52, %v3996_v62 }
 0x6e7   :  { %v4005_v34 = vor.u32 %v4466_v35, %v4004_v30  ;;  %2607 = vmatpush.bf16.msrb.mxu2 %v4029_v46  ;;  %v3973_v46 = vor.u32 %v4458_v59, %v3972_v49  ;;  %v3977_v30 = vor.u32 %v4456_v56, %v3974_v29 }
 0x6e8   :  { %v2016_v57 = vadd.f32 %v2012_v28, %v5035_v17  ;;  %v2017_v45 = vadd.f32 %v2013_v61, %v5275_v6  ;;  %v2019_v39 = vadd.f32 %v2015_v47, %v5279_v8  ;;  %v4465_v17 = vld [vmem:[%s6964_s4 + $0x4c] sm:$0xf]  ;;  %v4014_v6 = vld [vmem:[%s6964_s4 + $0x58] sm:$0xf0]  ;;  %v3980_v28 = vld [vmem:[%s6964_s4 + $0x8] sm:$0xf] }
 0x6e9   :  { %v4017_v16 = vor.u32 %v4465_v17, %v4014_v6  ;;  %2582 = vmatpush.bf16.msrb.mxu0 %v4005_v34  ;;  %v4459_v61 = vld [vmem:[%s6964_s4 + $0x14] sm:$0xf0]  ;;  %v2006_v47 = vperm.slane %v6369_v3, 2 }
 0x6ea   :  { %v2265_v8 = vadd.f32 %v6355_v18, %v2016_v57  ;;  %v2266_v1 = vadd.f32 %v6357_v40, %v2017_v45  ;;  %v2268_v44 = vadd.f32 %v6361_v33, %v2019_v39  ;;  %v4009_v18 = vor.u32 %v4464_v23, %v4006_v36  ;;  %v3990_v33 = vld [vmem:[%s6964_s4 + $0x30] sm:$0xf0] }
 0x6eb   :  { %v4013_v40 = vor.u32 %v4467_v0, %v4012_v60  ;;  %v3993_v22 = vor.u32 %v4460_v53, %v3990_v33  ;;  %2621 = vmatpush.bf16.msra.mxu3 %v4017_v16  ;;  %v3981_v35 = vor.u32 %v4459_v61, %v3980_v28  ;;  %v3985_v57 = vor.u32 %v4457_v51, %v3982_v27 }
 0x6ec   :  { %v3967_v32 = vmul.f32 -1.442695, %v2265_v8  ;;  %v3968_v14 = vmul.f32 -1.442695, %v2266_v1  ;;  %v3969_v19 = vmul.f32 -1.442695, %v2268_v44  ;;  %2595 = vmatpush.bf16.msrb.mxu1 %v4009_v18  ;;  %v2014_v3 = vmul.f32 %v2006_v47, %v6498_v38 }
 0x6ed   :  { %2608 = vmatpush.bf16.msrb.mxu2 %v4013_v40  ;;  %2583 = vmatpush.bf16.msrb.mxu0 %v3989_v4 }
 0x6ee   :  { %4632 = vpow2.f32 %v3967_v32  ;;  %v2018_v0 = vadd.f32 %v2014_v3, %v5277_v7 }
 0x6ef   :  { %4634 = vpow2.f32 %v3968_v14  ;;  %2622 = vmatpush.bf16.msra.mxu3 %v4001_v58 }
 0x6f0   :  { %4636 = vpow2.f32 %v3969_v19  ;;  %2596 = vmatpush.bf16.msrb.mxu1 %v3993_v22  ;;  %v2267_v6 = vadd.f32 %v6359_v24, %v2018_v0 }
 0x6f1   :  { %2609 = vmatpush.bf16.msrb.mxu2 %v3997_v50  ;;  %2584 = vmatpush.bf16.msrb.mxu0 %v3973_v46 }
 0x6f3   :  { %2623 = vmatpush.bf16.msra.mxu3 %v3985_v57 }
 0x6f4   :  { %v4633_v23 = vpop.eup %4632  ;;  %2597 = vmatpush.bf16.msrb.mxu1 %v3977_v30  ;;  %v6606_v30 = vld [vmem:[%s6966_s6 + $0x1] ss:$0 sm:$0xff] }
 0x6f5   :  { %v4635_v45 = vpop.eup %4634  ;;  %v2272_v39 = vadd.f32 1.0, %v4633_v23  ;;  %2610 = vmatpush.bf16.msrb.mxu2 %v3981_v35  ;;  %v6613_v23 = vld [vmem:[%s6966_s6] ss:$0 sm:$0xff] }
 0x6f6   :  { %v4637_v42 = vpop.eup %4636  ;;  %v2291_v36 = vadd.f32 1.0, %v4635_v45  ;;  %v2343_v45 = vld [vmem:[%s6962_s2 + $0x30] sm:$0xff] }
 0x6f7   :  { %4638 = vrcp.f32 %v2272_v39  ;;  %v2311_v60 = vadd.f32 1.0, %v4637_v42  ;;  %v2284_v20 = vand.u32 2147483648, %v2272_v39  ;;  %v2282_v40 = vand.u32 2147483647, %v2272_v39 }
 0x6f8   :  { %4640 = vrcp.f32 %v2291_v36  ;;  %v2303_v33 = vand.u32 2147483648, %v2291_v36  ;;  %v2301_v7 = vand.u32 2147483647, %v2291_v36  ;;  %vm2278_vm10 = vweird.f32 %v2272_v39 }
 0x6f9   :  { %4642 = vrcp.f32 %v2311_v60  ;;  %v2285_v24 = vor.u32 1.1754944e-38, %v2284_v20  ;;  %vm2297_vm12 = vweird.f32 %v2291_v36  ;;  %vm2283_vm13 = vcmp.eq.f32.partialorder %v2282_v40, 8.507059e+37 }
 0x6fa   :  { %4644 = vtanh.f32 %v2267_v6  ;;  %v2304_v16 = vor.u32 1.1754944e-38, %v2303_v33  ;;  %vm2302_vm15 = vcmp.eq.f32.partialorder %v2301_v7, 8.507059e+37  ;;  %v2323_v29 = vand.u32 2147483648, %v2311_v60  ;;  %v4215_v33 = vld [vmem:[%s6964_s4 + $0xe0] sm:$0xf] }
 0x6fb   :  { %vm2317_vm1 = vweird.f32 %v2311_v60  ;;  %v2321_v28 = vand.u32 2147483647, %v2311_v60 }
 0x6fc   :  { %v2324_v47 = vor.u32 1.1754944e-38, %v2323_v29  ;;  %v4223_v29 = vld [vmem:[%s6964_s4 + $0xe8] sm:$0xf] }
 0x6fd   :  { %v4639_v17 = vpop.eup %4638  ;;  %vm2322_vm3 = vcmp.eq.f32.partialorder %v2321_v28, 8.507059e+37 }
 0x6fe   :  { %v4641_v8 = vpop.eup %4640  ;;  %v2274_v1 = vmul.f32 %v4639_v17, %v2272_v39  ;;  %vm2279_vm8 = vweird.f32 %v4639_v17  ;;  %v2341_v39 = vld [vmem:[%s6961_s1 + $0x30] sm:$0xff] }
 0x6ff   :  { %v4643_v44 = vpop.eup %4642  ;;  %v2293_v38 = vmul.f32 %v4641_v8, %v2291_v36  ;;  %vm2298_vm9 = vweird.f32 %v4641_v8  ;;  %vm2280_vm11 = vmor %vm2278_vm10, %vm2279_vm8 }
 0x700   :  { %v2275_v34 = vsub.f32 1.0, %v2274_v1  ;;  %v2313_v43 = vmul.f32 %v4643_v44, %v2311_v60  ;;  %vm2299_vm14 = vmor %vm2297_vm12, %vm2298_vm9  ;;  %v4645_v63 = vpop.eup %4644  ;;  %vm2318_vm0 = vweird.f32 %v4643_v44 }
 0x701   :  { %v2294_v53 = vsub.f32 1.0, %v2293_v38  ;;  %vm2319_vm2 = vmor %vm2317_vm1, %vm2318_vm0 }
 0x702   :  { %v2276_v18 = vmul.f32 %v4639_v17, %v2275_v34  ;;  %v2314_v32 = vsub.f32 1.0, %v2313_v43 }
 0x703   :  { %v2295_v62 = vmul.f32 %v4641_v8, %v2294_v53 }
 0x704   :  { %v2277_v52 = vadd.f32 %v4639_v17, %v2276_v18  ;;  %v2315_v50 = vmul.f32 %v4643_v44, %v2314_v32  ;;  %v4514_v32 = vld [vmem:[%s6964_s4 + $0xcc] sm:$0xf0] }
 0x705   :  { %v2296_v14 = vadd.f32 %v4641_v8, %v2295_v62  ;;  %v4518_v62 = vld [vmem:[%s6964_s4 + $0xec] sm:$0xf0] }
 0x706   :  { %v2281_v19 = vsel %vm2280_vm11, %v4639_v17, %v2277_v52  ;;  %v2316_v58 = vadd.f32 %v4643_v44, %v2315_v50  ;;  %v4216_v7 = vor.u32 %v4518_v62, %v4215_v33  ;;  %v4199_v52 = vld [vmem:[%s6964_s4 + $0xc0] sm:$0xf]  ;;  %v4498_v33 = vld [vmem:[%s6964_s4 + $0x4c] sm:$0xf0]  ;;  %v4508_v62 = vld [vmem:[%s6964_s4 + $0xa4] sm:$0xf] }
 0x707   :  { %v2286_v2 = vsel %vm2283_vm13, %v2285_v24, %v2281_v19  ;;  %v2300_v4 = vsel %vm2299_vm14, %v4641_v8, %v2296_v14  ;;  %v4200_v24 = vor.u32 %v4514_v32, %v4199_v52  ;;  %v4183_v19 = vld [vmem:[%s6964_s4 + $0xa0] sm:$0xf]  ;;  %v4185_v52 = vld [vmem:[%s6964_s4 + $0xb0] sm:$0xf0]  ;;  %v4191_v32 = vld [vmem:[%s6964_s4 + $0xa8] sm:$0xf] }
 0x708   :  { %v2305_v22 = vsel %vm2302_vm15, %v2304_v16, %v2300_v4  ;;  %v2328_v49 = vmul.f32 %v4645_v63, %v2286_v2  ;;  %v2320_v61 = vsel %vm2319_vm2, %v4643_v44, %v2316_v58  ;;  %2941 = vmatpush.bf16.msra.mxu0 %v4216_v7  ;;  %v4510_v16 = vld [vmem:[%s6964_s4 + $0xac] sm:$0xf0]  ;;  %v4167_v2 = vld [vmem:[%s6964_s4 + $0x80] sm:$0xf]  ;;  %v4217_v58 = vld [vmem:[%s6964_s4 + $0xf0] sm:$0xf0] }
 0x709   :  { %v2327_v59 = vmul.f32 %v2305_v22, %v6336_v5  ;;  %v2325_v27 = vsel %vm2322_vm3, %v2324_v47, %v2320_v61  ;;  %v4184_v63 = vor.u32 %v4510_v16, %v4183_v19  ;;  %v4506_v4 = vld [vmem:[%s6964_s4 + $0x8c] sm:$0xf0]  ;;  %v6663_v50 = vld [vmem:[%s6965_s5] sm:$0xf]  ;;  %v4519_v47 = vld [vmem:[%s6964_s4 + $0xf4] sm:$0xf0] }
 0x70a   :  { %v2369_v19 = vperm.slane %v6663_v50, 1 }
 0x70b   :  { %v6596_v56 = vadd.f32 %v2328_v49, %v2327_v59  ;;  %v4168_v49 = vor.u32 %v4506_v4, %v4167_v2  ;;  %v4516_v59 = vld [vmem:[%s6964_s4 + $0xe4] sm:$0xf]  ;;  %v4509_v2 = vld [vmem:[%s6964_s4 + $0xac] sm:$0xf]  ;;  %v4193_v4 = vld [vmem:[%s6964_s4 + $0xb8] sm:$0xf0] }
 0x70c   :  { %2942 = vmatpush.bf16.msra.mxu0 %v4200_v24  ;;  %v4220_v61 = vor.u32 %v4516_v59, %v4217_v58  ;;  %v4511_v24 = vld [vmem:[%s6964_s4 + $0xb4] sm:$0xf0]  ;;  %v4196_v59 = vor.u32 %v4509_v2, %v4193_v4  ;;  %v4119_v58 = vld [vmem:[%s6964_s4 + $0x20] sm:$0xf]  ;;  %v4496_v2 = vld [vmem:[%s6964_s4 + $0x44] sm:$0xf] }
 0x70d   :  { %4646 = vtanh.f32 %v6596_v56 }
 0x70e   :  { %2954 = vmatpush.bf16.msra.mxu1 %v4220_v61 }
 0x710   :  { %2943 = vmatpush.bf16.msra.mxu0 %v4184_v63  ;;  %v4188_v63 = vor.u32 %v4508_v62, %v4185_v52 }
 0x713   :  { %v4647_v51 = vpop.eup %4646 }
 0x714   :  { %v6599_v46 = vmul.f32 %v4647_v51, %v2325_v27  ;;  %v4517_v51 = vld [vmem:[%s6964_s4 + $0xec] sm:$0xf]  ;;  %v4225_v27 = vld [vmem:[%s6964_s4 + $0xf8] sm:$0xf0]  ;;  %2944 = vmatpush.bf16.msra.mxu0 %v4168_v49  ;;  %v4192_v49 = vor.u32 %v4511_v24, %v4191_v32 }
 0x716   :  { %v2384_v5 = vpack.c.bf16 %v6599_v46, %v6599_v46  ;;  %v2337_v35 = vmul.f32 %v6606_v30, %v6599_v46  ;;  %v2333_v57 = vmul.f32 %v6613_v23, %v6599_v46 }
 0x718   :  { %2585 = vmatmul.bf16.vlgmr.msrb.gmra.mxu0 %v2384_v5  ;;  %2598 = vmatmul.bf16.vlgmr.msrb.gmra.mxu1 %v2384_v5 }
 0x719   :  { %2611 = vmatmul.bf16.vlgmr.msrb.gmra.mxu2 %v2384_v5  ;;  %2624 = vmatmul.bf16.vlgmr.msra.gmra.mxu3 %v2384_v5  ;;  %v4224_v5 = vor.u32 %v4519_v47, %v4223_v29  ;;  %v4494_v29 = vld [vmem:[%s6964_s4 + $0x2c] sm:$0xf0]  ;;  %v4169_v47 = vld [vmem:[%s6964_s4 + $0x90] sm:$0xf0] }
 0x71a   :  { %2338 = vadd.xlane.f32.xlu2 %v2337_v35  ;;  %2334 = vadd.xlane.f32.xlu1 %v2333_v57  ;;  %v4228_v35 = vor.u32 %v4517_v51, %v4225_v27  ;;  %v4151_v57 = vld [vmem:[%s6964_s4 + $0x60] sm:$0xf]  ;;  %v4175_v51 = vld [vmem:[%s6964_s4 + $0x88] sm:$0xf]  ;;  %v4507_v27 = vld [vmem:[%s6964_s4 + $0x94] sm:$0xf0] }
 0x71b   :  { %2967 = vmatpush.bf16.msra.mxu2 %v4224_v5  ;;  %v2371_v5 = vperm.slane %v6663_v50, 3 }
 0x71c   :  { %2980 = vmatpush.bf16.msrb.mxu3 %v4228_v35  ;;  %v4120_v35 = vor.u32 %v4494_v29, %v4119_v58  ;;  %v4499_v58 = vld [vmem:[%s6964_s4 + $0x54] sm:$0xf0]  ;;  %v4497_v29 = vld [vmem:[%s6964_s4 + $0x4c] sm:$0xf] }
 0x78d   :  { %v2339_v3 = vpop.xlane.xlu2 %2338  ;;  %v2335_v42 = vpop.xlane.xlu1 %2334 }
 0x78e   :  { %v2340_v36 = vadd.f32 %v2339_v3, %v5287_v12  ;;  %v2336_v60 = vadd.f32 %v2335_v42, %v5289_v13  ;;  %v4512_v3 = vld [vmem:[%s6964_s4 + $0xc4] sm:$0xf] }
 0x790   :  { %v2344_v0 = vsub.f32 %v2343_v45, %v2340_v36  ;;  %v2342_v17 = vsub.f32 %v2341_v39, %v2336_v60  ;;  %v4502_v45 = vld [vmem:[%s6964_s4 + $0x6c] sm:$0xf0]  ;;  %v4201_v36 = vld [vmem:[%s6964_s4 + $0xd0] sm:$0xf0]  ;;  %v4207_v60 = vld [vmem:[%s6964_s4 + $0xc8] sm:$0xf] }
 0x791   :  { %v4152_v42 = vor.u32 %v4502_v45, %v4151_v57  ;;  %v4177_v57 = vld [vmem:[%s6964_s4 + $0x98] sm:$0xf0] }
 0x792   :  { %v2346_v6 = vmul.f32 %v2344_v0, %v2344_v0  ;;  %v2345_v8 = vmul.f32 %v2342_v17, %v2342_v17  ;;  %v4515_v0 = vld [vmem:[%s6964_s4 + $0xd4] sm:$0xf0]  ;;  %v4204_v17 = vor.u32 %v4512_v3, %v4201_v36  ;;  %v4490_v36 = vld [vmem:[%s6964_s4 + $0xc] sm:$0xf0] }
 0x793   :  { %2945 = vmatpush.bf16.msra.mxu0 %v4152_v42  ;;  %v4103_v42 = vld [vmem:[%s6964_s4] sm:$0xf] }
 0x794   :  { %v2347_v1 = vadd.f32 %v2346_v6, %v2345_v8  ;;  %v4208_v6 = vor.u32 %v4515_v0, %v4207_v60  ;;  %v4513_v8 = vld [vmem:[%s6964_s4 + $0xcc] sm:$0xf]  ;;  %2955 = vmatpush.bf16.msra.mxu1 %v4204_v17  ;;  %v4176_v60 = vor.u32 %v4507_v27, %v4175_v51  ;;  %v4500_v17 = vld [vmem:[%s6964_s4 + $0x64] sm:$0xf]  ;;  %v4104_v62 = vor.u32 %v4490_v36, %v4103_v42  ;;  %v4121_v27 = vld [vmem:[%s6964_s4 + $0x30] sm:$0xf0] }
 0x795   :  { %v6625_v44 = vpop.f32.mrf.mxu0  ;;  %v6627_v38 = vpop.f32.mrf.mxu1  ;;  %v4492_v51 = vld [vmem:[%s6964_s4 + $0x24] sm:$0xf]  ;;  %v4525_v42 = vld [vmem:[%s6968_s8 + $0x28] sm:$0xff] }
 0x796   :  { %2348 = vmin.xlane.f32.xlu0 %v2347_v1  ;;  %v4209_v1 = vld [vmem:[%s6964_s4 + $0xd8] sm:$0xf0]  ;;  %2968 = vmatpush.bf16.msra.mxu2 %v4208_v6  ;;  %v4153_v6 = vld [vmem:[%s6964_s4 + $0x70] sm:$0xf0] }
 0x797   :  { %v4156_v24 = vor.u32 %v4500_v17, %v4153_v6  ;;  %v4105_v17 = vld [vmem:[%s6964_s4 + $0x10] sm:$0xf0]  ;;  %v4111_v6 = vld [vmem:[%s6964_s4 + $0x8] sm:$0xf] }
 0x798   :  { %2956 = vmatpush.bf16.msra.mxu1 %v4188_v63 }
 0x79a   :  { %2969 = vmatpush.bf16.msra.mxu2 %v4192_v49 }
 0x79c   :  { %v6629_v34 = vpop.f32.mrf.mxu2  ;;  %v6631_v43 = vpop.f32.mrf.mxu3 }
 0x79d   :  { %v2588_v20 = vpop.f32.mrf.mxu0  ;;  %v2601_v53 = vpop.f32.mrf.mxu1 }
 0x79e   :  { %v4135_v20 = vld [vmem:[%s6964_s4 + $0x40] sm:$0xf]  ;;  %v2368_v53 = vperm.slane %v6663_v50, 0  ;;  %2970 = vmatpush.bf16.msra.mxu2 %v4176_v60 }
 0x79f   :  { %v4136_v7 = vor.u32 %v4498_v33, %v4135_v20  ;;  %v4503_v20 = vld [vmem:[%s6964_s4 + $0x74] sm:$0xf0] }
 0x7a1   :  { %2946 = vmatpush.bf16.msra.mxu0 %v4136_v7 }
 0x7a4   :  { %v2614_v18 = vpop.f32.mrf.mxu2  ;;  %v2627_v40 = vpop.f32.mrf.mxu3 }
 0x7a5   :  { %v4212_v40 = vor.u32 %v4513_v8, %v4209_v1  ;;  %v4159_v8 = vld [vmem:[%s6964_s4 + $0x68] sm:$0xf]  ;;  %2947 = vmatpush.bf16.msra.mxu0 %v4120_v35  ;;  %v4493_v35 = vld [vmem:[%s6964_s4 + $0x2c] sm:$0xf] }
 0x7a6   :  { %v4160_v63 = vor.u32 %v4503_v20, %v4159_v8  ;;  %v4491_v8 = vld [vmem:[%s6964_s4 + $0x14] sm:$0xf0]  ;;  %v4113_v20 = vld [vmem:[%s6964_s4 + $0x18] sm:$0xf0] }
 0x7a7   :  { %2981 = vmatpush.bf16.msrb.mxu3 %v4212_v40  ;;  %v4161_v40 = vld [vmem:[%s6964_s4 + $0x78] sm:$0xf0] }
 0x7a8   :  { %2971 = vmatpush.bf16.msra.mxu2 %v4160_v63 }
 0x7a9   :  { %2948 = vmatpush.bf16.msra.mxu0 %v4104_v62  ;;  %v4112_v62 = vor.u32 %v4491_v8, %v4111_v6 }
 0x7ab   :  { %2982 = vmatpush.bf16.msrb.mxu3 %v4196_v59 }
 0x809   :  { %v6645_v14 = vpop.xlane.xlu0 %2348 }
 0x80a   :  { %4648 = vrsqrt.f32 %v6645_v14  ;;  %vm2357_vm4 = vcmp.eq.f32.partialorder %v6645_v14, inf  ;;  %vm2359_vm5 = vcmp.eq.f32.partialorder %v6645_v14, 0.0  ;;  %v2360_v3 = vand.u32 2147483648, %v6645_v14 }
 0x810   :  { %v4649_v22 = vpop.eup %4648 }
 0x811   :  { %v2351_v28 = vmul.f32 %v4649_v22, %v6645_v14 }
 0x813   :  { %v2352_v39 = vmul.f32 %v4649_v22, %v2351_v28  ;;  %v4504_v28 = vld [vmem:[%s6964_s4 + $0x84] sm:$0xf] }
 0x815   :  { %v2353_v18 = vmul.f32 0.5, %v2352_v39  ;;  %v4172_v39 = vor.u32 %v4504_v28, %v4169_v47  ;;  %v4145_v28 = vld [vmem:[%s6964_s4 + $0x58] sm:$0xf0]  ;;  %v4526_v47 = vld [vmem:[%s6968_s8 + $0x30] sm:$0xff] }
 0x817   :  { %v2354_v16 = vsub.f32 1.5, %v2353_v18  ;;  %v4501_v18 = vld [vmem:[%s6964_s4 + $0x6c] sm:$0xf]  ;;  %2957 = vmatpush.bf16.msra.mxu1 %v4172_v39  ;;  %v4124_v39 = vor.u32 %v4492_v51, %v4121_v27 }
 0x819   :  { %v2355_v61 = vmul.f32 %v4649_v22, %v2354_v16  ;;  %v4505_v22 = vld [vmem:[%s6964_s4 + $0x8c] sm:$0xf]  ;;  %v4527_v16 = vld [vmem:[%s6968_s8 + $0x38] sm:$0xff] }
 0x81a   :  { %v4180_v0 = vor.u32 %v4505_v22, %v4177_v57  ;;  %v4129_v22 = vld [vmem:[%s6964_s4 + $0x38] sm:$0xf0]  ;;  %3141 = vmatpush.bf16.msrb.mxu0 %v4527_v16 }
 0x81b   :  { %v2356_v45 = vmul.f32 %v2355_v61, %v6645_v14  ;;  %2958 = vmatpush.bf16.msra.mxu1 %v4156_v24  ;;  %v4132_v60 = vor.u32 %v4493_v35, %v4129_v22 }
 0x81c   :  { %2983 = vmatpush.bf16.msrb.mxu3 %v4180_v0  ;;  %v4488_v0 = vld [vmem:[%s6964_s4 + $0x4] sm:$0xf] }
 0x81d   :  { %v2358_v1 = vsel %vm2357_vm4, %v6645_v14, %v2356_v45  ;;  %v4164_v14 = vor.u32 %v4501_v18, %v4161_v40  ;;  %v2370_v18 = vperm.slane %v6663_v50, 2  ;;  %v4108_v40 = vor.u32 %v4488_v0, %v4105_v17 }
 0x81e   :  { %v6792_v33 = vsel %vm2359_vm5, %v2360_v3, %v2358_v1  ;;  %3142 = vmatpush.bf16.msrb.mxu0 %v4526_v47  ;;  %v4489_v1 = vld [vmem:[%s6964_s4 + $0xc] sm:$0xf] }
 0x81f   :  { %v2376_v7 = vmul.f32 %v2368_v53, %v6792_v33  ;;  %v2377_v52 = vmul.f32 %v2369_v19, %v6792_v33  ;;  %v2379_v32 = vmul.f32 %v2371_v5, %v6792_v33  ;;  %v4137_v53 = vld [vmem:[%s6964_s4 + $0x50] sm:$0xf0]  ;;  %v4143_v19 = vld [vmem:[%s6964_s4 + $0x48] sm:$0xf]  ;;  %v4495_v5 = vld [vmem:[%s6964_s4 + $0x34] sm:$0xf0]  ;;  %v2378_v16 = vmul.f32 %v2370_v18, %v6792_v33 }
 0x820   :  { %2984 = vmatpush.bf16.msrb.mxu3 %v4164_v14  ;;  %v4522_v33 = vld [vmem:[%s6968_s8 + $0x10] sm:$0xff] }
 0x821   :  { %v2380_v4 = vadd.f32 %v2376_v7, %v5106_v55  ;;  %v2381_v49 = vadd.f32 %v2377_v52, %v5281_v9  ;;  %v2383_v59 = vadd.f32 %v2379_v32, %v5285_v11  ;;  %v4140_v11 = vor.u32 %v4496_v2, %v4137_v53  ;;  %v4524_v32 = vld [vmem:[%s6968_s8 + $0x20] sm:$0xff] }
 0x822   :  { %v4116_v7 = vor.u32 %v4489_v1, %v4113_v20  ;;  %3143 = vmatpush.bf16.msrb.mxu0 %v4525_v42  ;;  %v2382_v53 = vadd.f32 %v2378_v16, %v5283_v10  ;;  %v4521_v10 = vld [vmem:[%s6968_s8 + $0x8] sm:$0xff]  ;;  %v3069_v16 = vpack.c.bf16 %v5549_v41, %v5243_v48 }
 0x823   :  { %v2629_v61 = vadd.f32 %v6625_v44, %v2380_v4  ;;  %v2630_v55 = vadd.f32 %v6627_v38, %v2381_v49  ;;  %v2632_v9 = vadd.f32 %v6631_v43, %v2383_v59  ;;  %v4127_v44 = vld [vmem:[%s6964_s4 + $0x28] sm:$0xf]  ;;  %v4144_v38 = vor.u32 %v4499_v58, %v4143_v19  ;;  %2959 = vmatpush.bf16.msra.mxu1 %v4140_v11  ;;  %v4523_v19 = vld [vmem:[%s6968_s8 + $0x18] sm:$0xff] }
 0x824   :  { %v4148_v43 = vor.u32 %v4497_v29, %v4145_v28  ;;  %v4128_v36 = vor.u32 %v4495_v5, %v4127_v44  ;;  %v2631_v49 = vadd.f32 %v6629_v34, %v2382_v53  ;;  %v4520_v5 = vld [vmem:[%s6968_s8] sm:$0xff] }
 0x825   :  { %v4098_v57 = vmul.f32 -1.442695, %v2629_v61  ;;  %v4099_v45 = vmul.f32 -1.442695, %v2630_v55  ;;  %v4100_v3 = vmul.f32 -1.442695, %v2632_v9  ;;  %2972 = vmatpush.bf16.msra.mxu2 %v4144_v38 }
 0x826   :  { %2985 = vmatpush.bf16.msrb.mxu3 %v4148_v43  ;;  %3144 = vmatpush.bf16.msrb.mxu0 %v4524_v32 }
 0x827   :  { %4650 = vpow2.f32 %v4098_v57  ;;  %2960 = vmatpush.bf16.msra.mxu1 %v4124_v39 }
 0x828   :  { %4652 = vpow2.f32 %v4099_v45 }
 0x829   :  { %4654 = vpow2.f32 %v4100_v3  ;;  %2973 = vmatpush.bf16.msra.mxu2 %v4128_v36 }
 0x82a   :  { %2986 = vmatpush.bf16.msrb.mxu3 %v4132_v60  ;;  %3145 = vmatpush.bf16.msrb.mxu0 %v4523_v19 }
 0x82b   :  { %2961 = vmatpush.bf16.msra.mxu1 %v4108_v40 }
 0x82d   :  { %v4651_v52 = vpop.eup %4650  ;;  %2974 = vmatpush.bf16.msra.mxu2 %v4112_v62 }
 0x82e   :  { %v4653_v24 = vpop.eup %4652  ;;  %v2636_v63 = vadd.f32 1.0, %v4651_v52  ;;  %2987 = vmatpush.bf16.msrb.mxu3 %v4116_v7  ;;  %3146 = vmatpush.bf16.msrb.mxu0 %v4522_v33 }
 0x82f   :  { %v4655_v14 = vpop.eup %4654  ;;  %v2655_v2 = vadd.f32 1.0, %v4653_v24 }
 0x830   :  { %4656 = vrcp.f32 %v2636_v63  ;;  %v2675_v50 = vadd.f32 1.0, %v4655_v14  ;;  %v2648_v9 = vand.u32 2147483648, %v2636_v63  ;;  %v2646_v51 = vand.u32 2147483647, %v2636_v63 }
 0x831   :  { %4658 = vrcp.f32 %v2655_v2  ;;  %v2667_v27 = vand.u32 2147483648, %v2655_v2  ;;  %v2665_v34 = vand.u32 2147483647, %v2655_v2  ;;  %vm2642_vm8 = vweird.f32 %v2636_v63 }
 0x832   :  { %4660 = vrcp.f32 %v2675_v50  ;;  %3147 = vmatpush.bf16.msrb.mxu0 %v4521_v10  ;;  %v2649_v35 = vor.u32 1.1754944e-38, %v2648_v9  ;;  %vm2661_vm10 = vweird.f32 %v2655_v2  ;;  %vm2647_vm11 = vcmp.eq.f32.partialorder %v2646_v51, 8.507059e+37 }
 0x833   :  { %4662 = vtanh.f32 %v2631_v49  ;;  %v2668_v45 = vor.u32 1.1754944e-38, %v2667_v27  ;;  %vm2666_vm13 = vcmp.eq.f32.partialorder %v2665_v34, 8.507059e+37  ;;  %v2687_v1 = vand.u32 2147483648, %v2675_v50 }
 0x834   :  { %vm2681_vm15 = vweird.f32 %v2675_v50  ;;  %v2685_v20 = vand.u32 2147483647, %v2675_v50 }
 0x835   :  { %v2688_v40 = vor.u32 1.1754944e-38, %v2687_v1 }
 0x836   :  { %v4657_v4 = vpop.eup %4656  ;;  %3148 = vmatpush.bf16.msrb.mxu0 %v4520_v5  ;;  %vm2686_vm1 = vcmp.eq.f32.partialorder %v2685_v20, 8.507059e+37 }
 0x837   :  { %v4659_v59 = vpop.eup %4658  ;;  %v2638_v58 = vmul.f32 %v4657_v4, %v2636_v63  ;;  %vm2643_vm6 = vweird.f32 %v4657_v4  ;;  %v3070_v63 = vpack.c.bf16 %v6079_v21, %v5809_v31 }
 0x838   :  { %v4661_v29 = vpop.eup %4660  ;;  %v2657_v28 = vmul.f32 %v4659_v59, %v2655_v2  ;;  %vm2662_vm7 = vweird.f32 %v4659_v59  ;;  %vm2644_vm9 = vmor %vm2642_vm8, %vm2643_vm6  ;;  %v2705_v2 = vld [vmem:[%s6961_s1 + $0x38] sm:$0xff] }
 0x839   :  { %v2639_v61 = vsub.f32 1.0, %v2638_v58  ;;  %v2677_v55 = vmul.f32 %v4661_v29, %v2675_v50  ;;  %vm2663_vm12 = vmor %vm2661_vm10, %vm2662_vm7  ;;  %v4663_v3 = vpop.eup %4662  ;;  %vm2682_vm14 = vweird.f32 %v4661_v29 }
 0x83a   :  { %v2658_v11 = vsub.f32 1.0, %v2657_v28  ;;  %vm2683_vm0 = vmor %vm2681_vm15, %vm2682_vm14 }
 0x83b   :  { %v2640_v47 = vmul.f32 %v4657_v4, %v2639_v61  ;;  %v2678_v43 = vsub.f32 1.0, %v2677_v55 }
 0x83c   :  { %v2659_v44 = vmul.f32 %v4659_v59, %v2658_v11 }
 0x83d   :  { %v2641_v38 = vadd.f32 %v4657_v4, %v2640_v47  ;;  %v2679_v60 = vmul.f32 %v4661_v29, %v2678_v43 }
 0x83e   :  { %v2660_v22 = vadd.f32 %v4659_v59, %v2659_v44 }
 0x83f   :  { %v2645_v57 = vsel %vm2644_vm9, %v4657_v4, %v2641_v38  ;;  %v2680_v8 = vadd.f32 %v4661_v29, %v2679_v60 }
 0x840   :  { %v2650_v39 = vsel %vm2647_vm11, %v2649_v35, %v2645_v57  ;;  %v2664_v42 = vsel %vm2663_vm12, %v4659_v59, %v2660_v22 }
 0x841   :  { %v2669_v36 = vsel %vm2666_vm13, %v2668_v45, %v2664_v42  ;;  %v2692_v0 = vmul.f32 %v4663_v3, %v2650_v39  ;;  %v2684_v18 = vsel %vm2683_vm0, %v4661_v29, %v2680_v8  ;;  %v6916_v29 = vld [vmem:[%s6969_s9] ss:$0 sm:$0xff] }
 0x842   :  { %v2691_v17 = vmul.f32 %v2669_v36, %v6596_v56  ;;  %v2689_v7 = vsel %vm2686_vm1, %v2688_v40, %v2684_v18  ;;  %v2730_v3 = vld [vmem:[%s6965_s5] sm:$0xf] }
 0x843   :  { %v2732_v42 = vperm.slane %v2730_v3, 0  ;;  %v2733_v36 = vperm.slane %v2730_v3, 1  ;;  %v2735_v60 = vperm.slane %v2730_v3, 3 }
 0x844   :  { %v6886_v6 = vadd.f32 %v2692_v0, %v2691_v17 }
 0x846   :  { %4664 = vtanh.f32 %v6886_v6 }
 0x84c   :  { %v4665_v62 = vpop.eup %4664 }
 0x84d   :  { %v6889_v52 = vmul.f32 %v4665_v62, %v2689_v7 }
 0x84f   :  { %v2748_v56 = vpack.c.bf16 %v6889_v52, %v6889_v52  ;;  %v2701_v32 = vmul.f32 %v6606_v30, %v6889_v52  ;;  %v2697_v24 = vmul.f32 %v6613_v23, %v6889_v52  ;;  %v3071_v30 = vpack.c.bf16 %v6599_v46, %v6339_v54  ;;  %v2707_v23 = vld [vmem:[%s6962_s2 + $0x38] sm:$0xff] }
 0x851   :  { %2949 = vmatmul.bf16.vlgmr.msra.gmra.mxu0 %v2748_v56  ;;  %2962 = vmatmul.bf16.vlgmr.msra.gmra.mxu1 %v2748_v56 }
 0x852   :  { %2975 = vmatmul.bf16.vlgmr.msra.gmra.mxu2 %v2748_v56  ;;  %2988 = vmatmul.bf16.vlgmr.msrb.gmra.mxu3 %v2748_v56 }
 0x853   :  { %2702 = vadd.xlane.f32.xlu2 %v2701_v32  ;;  %2698 = vadd.xlane.f32.xlu1 %v2697_v24 }
 0x861   :  { %3149 = vmatmul.bf16.vlgmr.msrb.gmra.mxu0 %v3069_v16 }
 0x871   :  { %3154 = vmatmul.bf16.gmra.mxu0 %v3070_v63 }
 0x881   :  { %3159 = vmatmul.bf16.gmra.mxu0 %v3071_v30 }
 0x8c6   :  { %v2703_v14 = vpop.xlane.xlu2 %2702  ;;  %v2699_v50 = vpop.xlane.xlu1 %2698 }
 0x8c7   :  { %v2704_v48 = vadd.f32 %v2703_v14, %v5287_v12  ;;  %v2700_v41 = vadd.f32 %v2699_v50, %v5289_v13  ;;  %v2734_v14 = vperm.slane %v2730_v3, 2 }
 0x8c9   :  { %v2708_v31 = vsub.f32 %v2707_v23, %v2704_v48  ;;  %v2706_v21 = vsub.f32 %v2705_v2, %v2700_v41 }
 0x8cb   :  { %v2710_v53 = vmul.f32 %v2708_v31, %v2708_v31  ;;  %v2709_v19 = vmul.f32 %v2706_v21, %v2706_v21 }
 0x8cd   :  { %v2711_v54 = vadd.f32 %v2710_v53, %v2709_v19 }
 0x8ce   :  { %v2950_v46 = vpop.f32.mrf.mxu0  ;;  %v2963_v33 = vpop.f32.mrf.mxu1 }
 0x8cf   :  { %2712 = vmin.xlane.f32.xlu0 %v2711_v54 }
 0x8d5   :  { %v6911_v4 = vpop.f32.mrf.mxu2  ;;  %v2989_v49 = vpop.f32.mrf.mxu3 }
 0x8d6   :  { %v2952_v59 = vpop.f32.mrf.mxu0  ;;  %v2965_v58 = vpop.f32.mrf.mxu1 }
 0x8dd   :  { %v2978_v12 = vpop.f32.mrf.mxu2  ;;  %v2991_v13 = vpop.f32.mrf.mxu3 }
 0x8de   :  { %v3150_v28 = vpop.f32.mrf.mxu0 }
 0x8df   :  { %v3151_v61 = vadd.f32 %v6916_v29, %v3150_v28 }
 0x8e1   :  { %3170 = vst [vmem:[%s6970_s10] sm:$0xff] %v3151_v61 }
 0x8e6   :  { %v3152_v55 = vpop.f32.mrf.mxu0 }
 0x8e7   :  { %v3153_v10 = vadd.f32 %v6916_v29, %v3152_v55 }
 0x8e9   :  { %3171 = vst [vmem:[%s6970_s10 + $0x8] sm:$0xff] %v3153_v10 }
 0x8ee   :  { %v3155_v9 = vpop.f32.mrf.mxu0 }
 0x8ef   :  { %v3156_v11 = vadd.f32 %v6916_v29, %v3155_v9 }
 0x8f1   :  { %3172 = vst [vmem:[%s6970_s10 + $0x10] sm:$0xff] %v3156_v11 }
 0x8f6   :  { %v3157_v47 = vpop.f32.mrf.mxu0 }
 0x8f7   :  { %v3158_v51 = vadd.f32 %v6916_v29, %v3157_v47 }
 0x8f9   :  { %3173 = vst [vmem:[%s6970_s10 + $0x18] sm:$0xff] %v3158_v51 }
 0x8fe   :  { %v3160_v27 = vpop.f32.mrf.mxu0 }
 0x8ff   :  { %v3161_v44 = vadd.f32 %v6916_v29, %v3160_v27 }
 0x901   :  { %3174 = vst [vmem:[%s6970_s10 + $0x20] sm:$0xff] %v3161_v44 }
 0x906   :  { %v3162_v34 = vpop.f32.mrf.mxu0 }
 0x907   :  { %v3163_v38 = vadd.f32 %v6916_v29, %v3162_v34 }
 0x909   :  { %3175 = vst [vmem:[%s6970_s10 + $0x28] sm:$0xff] %v3163_v38 }
 0x942   :  { %v2713_v43 = vpop.xlane.xlu0 %2712 }
 0x943   :  { %4666 = vrsqrt.f32 %v2713_v43  ;;  %vm2721_vm2 = vcmp.eq.f32.partialorder %v2713_v43, inf  ;;  %v2724_v17 = vand.u32 2147483648, %v2713_v43  ;;  %vm2723_vm3 = vcmp.eq.f32.partialorder %v2713_v43, 0.0 }
 0x949   :  { %v4667_v5 = vpop.eup %4666 }
 0x94a   :  { %v2715_v35 = vmul.f32 %v4667_v5, %v2713_v43 }
 0x94c   :  { %v2716_v22 = vmul.f32 %v4667_v5, %v2715_v35 }
 0x94e   :  { %v2717_v57 = vmul.f32 0.5, %v2716_v22 }
 0x950   :  { %v2718_v45 = vsub.f32 1.5, %v2717_v57 }
 0x952   :  { %v2719_v39 = vmul.f32 %v4667_v5, %v2718_v45 }
 0x954   :  { %v2720_v0 = vmul.f32 %v2719_v39, %v2713_v43 }
 0x956   :  { %v2722_v8 = vsel %vm2721_vm2, %v2713_v43, %v2720_v0 }
 0x957   :  { %v2725_v1 = vsel %vm2723_vm3, %v2724_v17, %v2722_v8 }
 0x958   :  { %v2740_v20 = vmul.f32 %v2732_v42, %v2725_v1  ;;  %v2741_v18 = vmul.f32 %v2733_v36, %v2725_v1  ;;  %v2743_v40 = vmul.f32 %v2735_v60, %v2725_v1  ;;  %v2742_v48 = vmul.f32 %v2734_v14, %v2725_v1 }
 0x95a   :  { %v2744_v62 = vadd.f32 %v2740_v20, %v5176_v37  ;;  %v2745_v7 = vadd.f32 %v2741_v18, %v5291_v15  ;;  %v2747_v56 = vadd.f32 %v2743_v40, %v5303_v26  ;;  %v2746_v15 = vadd.f32 %v2742_v48, %v5301_v25 }
 0x95c   :  { %v2993_v32 = vadd.f32 %v2950_v46, %v2744_v62  ;;  %v2994_v24 = vadd.f32 %v2963_v33, %v2745_v7  ;;  %v2996_v16 = vadd.f32 %v2989_v49, %v2747_v56  ;;  %v2995_v53 = vadd.f32 %v6911_v4, %v2746_v15 }
 0x95e   :  { %v4229_v63 = vmul.f32 -1.442695, %v2993_v32  ;;  %v4230_v30 = vmul.f32 -1.442695, %v2994_v24  ;;  %v4231_v23 = vmul.f32 -1.442695, %v2996_v16 }
 0x960   :  { %4668 = vpow2.f32 %v4229_v63 }
 0x961   :  { %4670 = vpow2.f32 %v4230_v30 }
 0x962   :  { %4672 = vpow2.f32 %v4231_v23 }
 0x966   :  { %v4669_v2 = vpop.eup %4668 }
 0x967   :  { %v4671_v50 = vpop.eup %4670  ;;  %v3000_v41 = vadd.f32 1.0, %v4669_v2 }
 0x968   :  { %v4673_v31 = vpop.eup %4672  ;;  %v3019_v37 = vadd.f32 1.0, %v4671_v50 }
 0x969   :  { %4674 = vrcp.f32 %v3000_v41  ;;  %v3039_v26 = vadd.f32 1.0, %v4673_v31  ;;  %v3010_v59 = vand.u32 2147483647, %v3000_v41  ;;  %v3012_v58 = vand.u32 2147483648, %v3000_v41 }
 0x96a   :  { %4676 = vrcp.f32 %v3019_v37  ;;  %v3031_v28 = vand.u32 2147483648, %v3019_v37  ;;  %v3029_v25 = vand.u32 2147483647, %v3019_v37  ;;  %vm3006_vm6 = vweird.f32 %v3000_v41 }
 0x96b   :  { %4678 = vrcp.f32 %v3039_v26  ;;  %v3013_v4 = vor.u32 1.1754944e-38, %v3012_v58  ;;  %vm3025_vm8 = vweird.f32 %v3019_v37  ;;  %vm3011_vm9 = vcmp.eq.f32.partialorder %v3010_v59, 8.507059e+37 }
 0x96c   :  { %4680 = vtanh.f32 %v2995_v53  ;;  %v3032_v51 = vor.u32 1.1754944e-38, %v3031_v28  ;;  %vm3030_vm11 = vcmp.eq.f32.partialorder %v3029_v25, 8.507059e+37  ;;  %v3051_v45 = vand.u32 2147483648, %v3039_v26 }
 0x96d   :  { %vm3045_vm13 = vweird.f32 %v3039_v26  ;;  %v3049_v3 = vand.u32 2147483647, %v3039_v26 }
 0x96e   :  { %v3052_v42 = vor.u32 1.1754944e-38, %v3051_v45 }
 0x96f   :  { %v4675_v21 = vpop.eup %4674  ;;  %vm3050_vm15 = vcmp.eq.f32.partialorder %v3049_v3, 8.507059e+37 }
 0x970   :  { %v4677_v19 = vpop.eup %4676  ;;  %v3002_v54 = vmul.f32 %v4675_v21, %v3000_v41  ;;  %vm3007_vm4 = vweird.f32 %v4675_v21 }
 0x971   :  { %v3021_v46 = vmul.f32 %v4677_v19, %v3019_v37  ;;  %v4679_v49 = vpop.eup %4678  ;;  %vm3026_vm5 = vweird.f32 %v4677_v19  ;;  %vm3008_vm7 = vmor %vm3006_vm6, %vm3007_vm4 }
 0x972   :  { %v3003_v33 = vsub.f32 1.0, %v3002_v54  ;;  %v3041_v61 = vmul.f32 %v4679_v49, %v3039_v26  ;;  %vm3027_vm10 = vmor %vm3025_vm8, %vm3026_vm5  ;;  %v4681_v27 = vpop.eup %4680  ;;  %vm3046_vm12 = vweird.f32 %v4679_v49 }
 0x973   :  { %v3022_v12 = vsub.f32 1.0, %v3021_v46  ;;  %vm3047_vm14 = vmor %vm3045_vm13, %vm3046_vm12 }
 0x974   :  { %v3004_v13 = vmul.f32 %v4675_v21, %v3003_v33  ;;  %v3042_v9 = vsub.f32 1.0, %v3041_v61 }
 0x975   :  { %v3023_v55 = vmul.f32 %v4677_v19, %v3022_v12 }
 0x976   :  { %v3005_v10 = vadd.f32 %v4675_v21, %v3004_v13  ;;  %v3043_v43 = vmul.f32 %v4679_v49, %v3042_v9 }
 0x977   :  { %v3024_v11 = vadd.f32 %v4677_v19, %v3023_v55 }
 0x978   :  { %v3009_v47 = vsel %vm3008_vm7, %v4675_v21, %v3005_v10  ;;  %v3044_v57 = vadd.f32 %v4679_v49, %v3043_v43 }
 0x979   :  { %v3014_v44 = vsel %vm3011_vm9, %v3013_v4, %v3009_v47  ;;  %v3028_v34 = vsel %vm3027_vm10, %v4677_v19, %v3024_v11 }
 0x97a   :  { %v3033_v38 = vsel %vm3030_vm11, %v3032_v51, %v3028_v34  ;;  %v3056_v5 = vmul.f32 %v4681_v27, %v3014_v44  ;;  %v3048_v39 = vsel %vm3047_vm14, %v4679_v49, %v3044_v57 }
 0x97b   :  { %v3055_v35 = vmul.f32 %v3033_v38, %v6886_v6  ;;  %v3053_v60 = vsel %vm3050_vm15, %v3052_v42, %v3048_v39 }
 0x97d   :  { %v3057_v22 = vadd.f32 %v3056_v5, %v3055_v35 }
 0x97f   :  { %4682 = vtanh.f32 %v3057_v22 }
 0x985   :  { %v4683_v36 = vpop.eup %4682 }
 0x986   :  { %v3059_v0 = vmul.f32 %v4683_v36, %v3053_v60 }
 0x988   :  { %v3072_v17 = vpack.c.bf16 %v3059_v0, %v6889_v52 }
 0x98a   :  { %3164 = vmatmul.bf16.gmra.mxu0 %v3072_v17 }
 0xa07   :  { %v3165_v8 = vpop.f32.mrf.mxu0 }
 0xa08   :  { %v3166_v6 = vadd.f32 %v6916_v29, %v3165_v8 }
 0xa0a   :  { %3176 = vst [vmem:[%s6970_s10 + $0x30] sm:$0xff] %v3166_v6 }
 0xa0f   :  { %v3167_v1 = vpop.f32.mrf.mxu0 }
 0xa10   :  { %v3168_v20 = vadd.f32 %v6916_v29, %v3167_v1 }
 0xa12   :  { %3177 = vst [vmem:[%s6970_s10 + $0x38] sm:$0xff] %v3168_v20 }
 0xa13   :  { %3182 = vsyncpa [#allocation5], 1 }

</bundles_post_ra>
